<compile_context>
chip_gen: v6e
topology: v6e:2x2x1
jax: 0.10.0
libtpu: 0.0.40
codegen_flags: <defaults>
</compile_context>

<pallas_src>
import jax
import jax.numpy as jnp
from jax.experimental import pallas as pl
from jax.experimental.pallas import tpu as pltpu

_LANES = 128  # batch samples packed per lane-row


def _round_up(n, m):
    return ((n + m - 1) // m) * m


def _linreg_kernel(x_ref, w_ref, b_ref, o_ref):
    # x_ref: (TBg, 128*D) lane-packed inputs (128 batch rows per sublane row)
    # w_ref: (128*D, 128) block-diagonal weight, resident across the whole grid
    # b_ref: (1, 1)       SMEM scalar bias
    # o_ref: (TBg, 128)   lane-dense output tile
    acc = jnp.dot(x_ref[...], w_ref[...], preferred_element_type=jnp.float32)
    o_ref[...] = (acc + b_ref[0, 0]).astype(o_ref.dtype)


def _choose_block_groups(g_rows, max_groups):
    # Number of grid steps; force >= 2 for non-tiny batches so that the
    # "parallel" grid axis actually gives both v7x TensorCores work.
    n_blocks = pl.cdiv(g_rows, max_groups)
    if n_blocks == 1 and g_rows > 8:
        n_blocks = 2
    tb = _round_up(pl.cdiv(g_rows, n_blocks), 8)  # keep blocks sublane-aligned
    return min(tb, g_rows)


def linear_regression_forward(x, weight, bias, *, block_samples=16384):
    """Forward pass of LinearRegression: flatten(x, 1) @ W.T + b (W is (1, D))."""
    B = x.shape[0]
    x2d = x.reshape(B, -1)                       # torch.flatten(x, 1)
    D = x2d.shape[1]
    O, Dw = weight.shape
    assert Dw == D, f"weight in_dim {Dw} != flattened dim {D}"
    assert O == 1, "kernel is specialized for output_dim=1 (LinearRegression)"

    G = _LANES
    B_pad = _round_up(B, G)
    if B_pad != B:
        # Extra copy only when B is not a multiple of 128 (cheap for the small
        # batches where this typically happens; big batches are aligned).
        x2d = jnp.pad(x2d, ((0, B_pad - B), (0, 0)))
    g_rows = B_pad // G
    # Lane-pack: packed row g holds samples g*128 .. g*128+127, 60 values each.
    x_packed = x2d.reshape(g_rows, G * D)        # free, contiguous reshape

    # Block-diagonal weight: w_bd[j*D + k, j] = weight[0, k]; shape (G*D, G).
    w_bd = (
        jnp.eye(G, dtype=jnp.float32)[:, None, :]
        * weight.reshape(D).astype(jnp.float32)[None, :, None]
    ).reshape(G * D, G)

    tb_g = _choose_block_groups(g_rows, max(1, block_samples // G))
    grid = (pl.cdiv(g_rows, tb_g),)

    out_packed = pl.pallas_call(
        _linreg_kernel,
        out_shape=jax.ShapeDtypeStruct((g_rows, G), x2d.dtype),
        grid=grid,
        in_specs=[
            # x: lane-packed batch tile, auto double-buffered by BlockSpec.
            pl.BlockSpec((tb_g, G * D), lambda i: (i, 0)),
            # block-diagonal weight: constant index_map -> resident in VMEM.
            pl.BlockSpec((G * D, G), lambda i: (0, 0)),
            # bias: scalar in SMEM (no padded VMEM tile, no pipelining).
            pl.BlockSpec(memory_space=pltpu.MemorySpace.SMEM),
        ],
        out_specs=pl.BlockSpec((tb_g, G), lambda i: (i, 0)),
        compiler_params=pltpu.CompilerParams(
            dimension_semantics=("parallel",),     # batch tiles are independent
            vmem_limit_bytes=32 * 1024 * 1024,     # ~15 MiB actually needed
        ),
        cost_estimate=pl.CostEstimate(
            flops=2 * g_rows * (G * D) * G,
            transcendentals=0,
            bytes_accessed=4 * (g_rows * G * D + G * D * G + g_rows * G),
        ),
    )(x_packed, w_bd, bias.reshape(1, 1).astype(jnp.float32))

    return out_packed.reshape(B_pad, 1)[:B]


if __name__ == "__main__":
    input_dim = 60
    output_dim = 1

    key = jax.random.PRNGKey(0)
    kx, kw, kb, kx2, kx3 = jax.random.split(key, 5)

    # PyTorch-style uniform(-1/sqrt(in), 1/sqrt(in)) init, deterministic.
    bound = 1.0 / (input_dim ** 0.5)
    weight = jax.random.uniform(
        kw, (output_dim, input_dim), jnp.float32, minval=-bound, maxval=bound
    )
    bias = jax.random.uniform(
        kb, (output_dim,), jnp.float32, minval=-bound, maxval=bound
    )

    def ref_fwd(xx):
        x2 = xx.reshape(xx.shape[0], -1)
        # Exact f32 reference (elementwise multiply + reduce, no MXU).
        return jnp.sum(x2 * weight[0][None, :], axis=-1, keepdims=True) + bias

    def check(xx):
        out = jax.block_until_ready(linear_regression_forward(xx, weight, bias))
        ref = ref_fwd(xx)
        assert out.shape == ref.shape
        # Tolerance accommodates possible reduced-precision MXU passes for the
        # in-kernel f32 matmul; any mapping/bias bug would be orders larger.
        assert jnp.allclose(out, ref, atol=1e-2, rtol=1e-2), float(
            jnp.max(jnp.abs(out - ref))
        )

    # Small case matching the module defaults: flatten(2, 4, 15) -> (2, 60).
    check(jax.random.normal(kx, (2, 4, 15), jnp.float32))
    # Non-multiple-of-128 batch: exercises the pad path.
    check(jax.random.normal(kx2, (300, 4, 15), jnp.float32))
    # Larger batch: exercises a multi-step grid with a partial last tile.
    check(jax.random.normal(kx3, (2176, 4, 15), jnp.float32))

    print("KERNEL_OK")
</pallas_src>

<mosaic_0001>
module attributes {stable_mosaic.version = 11 : i64} {
  func.func @_linreg_kernel(%arg0: i32, %arg1: memref<1x7680xf32, #tpu.memory_space<vmem>>, %arg2: memref<7680x128xf32, #tpu.memory_space<vmem>>, %arg3: memref<1x1xf32, #tpu.memory_space<smem>>, %arg4: memref<1x128xf32, #tpu.memory_space<vmem>>) attributes {dimension_semantics = [#tpu.dimension_semantics<parallel>], iteration_bounds = array<i64: 1>, scalar_prefetch = 0 : i64, scratch_operands = 0 : i64, tpu.core_type = #tpu.core_type<tc>, window_params = [{transform_indices = @transform_0, window_bounds = array<i64: 1, 7680>}, {pipeline_mode = #tpu.pipeline_mode<synchronous>, transform_indices = @transform_1, window_bounds = array<i64: 7680, 128>}, {transform_indices = @transform_2, window_bounds = array<i64: 1, 1>}, {transform_indices = @transform_3, window_bounds = array<i64: 1, 128>}]} {
    %c0 = arith.constant 0 : index
    %c0_0 = arith.constant 0 : index
    %0 = vector.load %arg1[%c0, %c0_0] : memref<1x7680xf32, #tpu.memory_space<vmem>>, vector<1x7680xf32>
    %c0_1 = arith.constant 0 : index
    %c0_2 = arith.constant 0 : index
    %1 = vector.load %arg2[%c0_1, %c0_2] : memref<7680x128xf32, #tpu.memory_space<vmem>>, vector<7680x128xf32>
    %cst = arith.constant dense<0.000000e+00> : vector<1x128xf32>
    %2 = tpu.matmul %0, %1, %cst {dimension_numbers = #tpu.dot_dimension_numbers<[1], [0], [0], [1], [0, 0, 1, 1], [], []>} : vector<1x7680xf32>, vector<7680x128xf32>, vector<1x128xf32> -> vector<1x128xf32>
    %c0_3 = arith.constant 0 : index
    %c0_4 = arith.constant 0 : index
    %3 = memref.load %arg3[%c0_3, %c0_4] : memref<1x1xf32, #tpu.memory_space<smem>>
    %4 = vector.broadcast %3 : f32 to vector<1x128xf32>
    %5 = arith.addf %2, %4 : vector<1x128xf32>
    %c0_5 = arith.constant 0 : index
    %c0_6 = arith.constant 0 : index
    %6 = vector.load %arg4[%c0_5, %c0_6] : memref<1x128xf32, #tpu.memory_space<vmem>>, vector<1x128xf32>
    tpu.vector_store %arg4[%c0_5, %c0_6], %5 {strides = array<i32>} : memref<1x128xf32, #tpu.memory_space<vmem>>, vector<1x128xf32>,
    return
  }
  func.func @transform_0(%arg0: i32) -> (i32, i32) {
    %c0_i32 = arith.constant 0 : i32
    %c0_i32_0 = arith.constant 0 : i32
    return %arg0, %c0_i32 : i32, i32
  }
  func.func @transform_1(%arg0: i32) -> (i32, i32) {
    %c0_i32 = arith.constant 0 : i32
    %c0_i32_0 = arith.constant 0 : i32
    %c0_i32_1 = arith.constant 0 : i32
    return %c0_i32, %c0_i32_0 : i32, i32
  }
  func.func @transform_2(%arg0: i32) -> (i32, i32) {
    %c0_i32 = arith.constant 0 : i32
    %c0_i32_0 = arith.constant 0 : i32
    %c0_i32_1 = arith.constant 0 : i32
    return %c0_i32, %c0_i32_0 : i32, i32
  }
  func.func @transform_3(%arg0: i32) -> (i32, i32) {
    %c0_i32 = arith.constant 0 : i32
    %c0_i32_0 = arith.constant 0 : i32
    return %arg0, %c0_i32 : i32, i32
  }
}

</mosaic_0001>

<bundles_post_ra>
// kernel: tpu_custom_call.1
= control target key start
LH: loop header
LB: loop body
LE: loop exit
PB: predicated region body
PF: predicated region fallthrough
CT: control target
= control target key end

     0   :  { %9 = vsyncpa [#allocation4], 0  ;;  %s4751_s0 = inlined_call_operand.hbm [shape: f32[1,7680], index: 0, kind: input, shape index: {}]   ;;  %s4752_s1 = inlined_call_operand.hbm [shape: f32[7680,128], index: 1, kind: input, shape index: {}]   ;;  %s4753_s2 = inlined_call_operand.<no memory space> [shape: f32[1,1], index: 2, kind: input, shape index: {}]   ;;  %s4754_s3 = inlined_call_operand.hbm [shape: f32[1,128], index: 3, kind: output, shape index: {}]  }
   0x1   :  { %10 = vsyncpa [#allocation7], 0 }
   0x2   :  { %11 = vsyncpa [#allocation5], 0  ;;  %s4558_s12 = smov [#allocation3]   ;;  %s4559_s14 = smov [#allocation6]  }
   0x3   :  { %s18_s13 = sshll.u32 %s4558_s12, 4  ;;  %s27_s15 = sshll.u32 %s4559_s14, 4  ;;  %s19_s13 = int_to_ptr.vmem [resolvable:$true] %s18_s13  ;;  %s28_s15 = int_to_ptr.vmem [resolvable:$true] %s27_s15 }
   0x4   :  { %s4500_s16 = scalar_lea.vmem %s19_s13, 960  ;;  %p4505_p1 = scmp.lt.s32.totalorder %s19_s13, %s19_s13 }
   0x5   :  { %p4501_p0 = scmp.ne.s32.totalorder %s19_s13, %s4500_s16  ;;  %p4506_p2 = scmp.lt.s32.totalorder %s4500_s16, %s4500_s16 }
   0x7   :  { %p4507_p3 = por %p4506_p2, %p4505_p1 }
   0x9   :  { %p4508_p4 = pnand %p4507_p3, %p4501_p0 }
   0xb   :  { %4511 = shalt.err (!%p4508_p4)
}
   0xc   :  { %21 = dma.hbm_to_vmem [thread:$0]  %s4751_s0, 960, %s19_s13, [#allocation4]  }
   0xd   :  { %s4520_s19 = scalar_lea.vmem %s28_s15, 122880  ;;  %p4525_p6 = scmp.lt.s32.totalorder %s28_s15, %s28_s15 }
   0xe   :  { %p4521_p5 = scmp.ne.s32.totalorder %s28_s15, %s4520_s19  ;;  %p4526_p7 = scmp.lt.s32.totalorder %s4520_s19, %s4520_s19 }
  0x10   :  { %p4527_p8 = por %p4526_p7, %p4525_p6 }
  0x12   :  { %p4528_p9 = pnand %p4527_p8, %p4521_p5 }
  0x14   :  { %4531 = shalt.err (!%p4528_p9)
}
  0x15   :  { %s4560_s20 = smov 128   ;;  %s4561_s21 = smov 8  }
  0x16   :  { %33 = dma.hbm_to_vmem [thread:$0]  %s4752_s1, 122880, %s28_s15, [#allocation7], %s4560_s20, %s4560_s20, %s4561_s21  }
  0x17   :  { %4552 = dma.done.wait [#allocation4], 960  }
  0x18   :  { %4553 = vsyncadd [#allocation4], 4294966336 }
  0x19   :  { %4554 = dma.done.wait [#allocation7], 122880  }
  0x1a   :  { %4555 = vsyncadd [#allocation7], 4294844416  ;;  %v81_v0 = vld [vmem:[#allocation6 + $0xf8] sm:$0xff]  ;;  %v80_v4 = vld [vmem:[#allocation6 + $0xf0] sm:$0xff]  ;;  %v1020_v38 = vlaneseq }
  0x1b   :  { %v113_v1 = vld [vmem:[#allocation6 + $0x1f8] sm:$0xff]  ;;  %3437 = vmatprep.subr.mxu0 %v81_v0  ;;  %v112_v5 = vld [vmem:[#allocation6 + $0x1f0] sm:$0xff]  ;;  %v79_v8 = vld [vmem:[#allocation6 + $0xe8] sm:$0xff] }
  0x1c   :  { %v65_v2 = vld [vmem:[#allocation6 + $0x78] sm:$0xff]  ;;  %3472 = vmatprep.subr.mxu1 %v113_v1  ;;  %v64_v6 = vld [vmem:[#allocation6 + $0x70] sm:$0xff]  ;;  %v111_v9 = vld [vmem:[#allocation6 + $0x1e8] sm:$0xff]  ;;  %v4589_v47 = vshrl.u32 %v1020_v38, 7 }
  0x1d   :  { %v97_v3 = vld [vmem:[#allocation6 + $0x178] sm:$0xff]  ;;  %3438 = vmatpush3.msra.mxu0 %v65_v2  ;;  %v96_v7 = vld [vmem:[#allocation6 + $0x170] sm:$0xff]  ;;  %v63_v10 = vld [vmem:[#allocation6 + $0x68] sm:$0xff] }
  0x1e   :  { %3473 = vmatpush3.msra.mxu1 %v97_v3  ;;  %3439 = vmatprep.subr.mxu0 %v80_v4  ;;  %v95_v11 = vld [vmem:[#allocation6 + $0x168] sm:$0xff]  ;;  %v78_v12 = vld [vmem:[#allocation6 + $0xe0] sm:$0xff]  ;;  %v77_v16 = vld [vmem:[#allocation6 + $0xd8] sm:$0xff]  ;;  %v4592_v56 = vsub.s32 1, %v4589_v47  ;;  %v4597_v60 = vsub.s32 0, %v4589_v47  ;;  %v4600_v63 = vsub.s32 3, %v4589_v47 }
  0x1f   :  { %3474 = vmatprep.subr.mxu1 %v112_v5  ;;  %3440 = vmatpush3.msra.mxu0 %v64_v6  ;;  %v110_v13 = vld [vmem:[#allocation6 + $0x1e0] sm:$0xff]  ;;  %v109_v17 = vld [vmem:[#allocation6 + $0x1d8] sm:$0xff]  ;;  %v76_v20 = vld [vmem:[#allocation6 + $0xd0] sm:$0xff]  ;;  %v4603_v2 = vsub.s32 2, %v4589_v47 }
  0x20   :  { %3475 = vmatpush3.msra.mxu1 %v96_v7  ;;  %3441 = vmatprep.subr.mxu0 %v79_v8  ;;  %v62_v14 = vld [vmem:[#allocation6 + $0x60] sm:$0xff]  ;;  %v61_v18 = vld [vmem:[#allocation6 + $0x58] sm:$0xff]  ;;  %v108_v21 = vld [vmem:[#allocation6 + $0x1d0] sm:$0xff] }
  0x21   :  { %3476 = vmatprep.subr.mxu1 %v111_v9  ;;  %v94_v15 = vld [vmem:[#allocation6 + $0x160] sm:$0xff]  ;;  %3442 = vmatpush3.msra.mxu0 %v63_v10  ;;  %v93_v19 = vld [vmem:[#allocation6 + $0x158] sm:$0xff]  ;;  %v60_v22 = vld [vmem:[#allocation6 + $0x50] sm:$0xff] }
  0x22   :  { %3477 = vmatpush3.msra.mxu1 %v95_v11  ;;  %3443 = vmatprep.subr.mxu0 %v78_v12  ;;  %v92_v23 = vld [vmem:[#allocation6 + $0x150] sm:$0xff]  ;;  %v75_v24 = vld [vmem:[#allocation6 + $0xc8] sm:$0xff]  ;;  %v74_v28 = vld [vmem:[#allocation6 + $0xc0] sm:$0xff] }
  0x23   :  { %3478 = vmatprep.subr.mxu1 %v110_v13  ;;  %3444 = vmatpush3.msra.mxu0 %v62_v14  ;;  %v107_v25 = vld [vmem:[#allocation6 + $0x1c8] sm:$0xff]  ;;  %v106_v29 = vld [vmem:[#allocation6 + $0x1c0] sm:$0xff]  ;;  %v73_v32 = vld [vmem:[#allocation6 + $0xb8] sm:$0xff] }
  0x24   :  { %3479 = vmatpush3.msra.mxu1 %v94_v15  ;;  %3445 = vmatprep.subr.mxu0 %v77_v16  ;;  %v59_v26 = vld [vmem:[#allocation6 + $0x48] sm:$0xff]  ;;  %v58_v30 = vld [vmem:[#allocation6 + $0x40] sm:$0xff]  ;;  %v105_v33 = vld [vmem:[#allocation6 + $0x1b8] sm:$0xff] }
  0x25   :  { %3480 = vmatprep.subr.mxu1 %v109_v17  ;;  %3446 = vmatpush3.msra.mxu0 %v61_v18  ;;  %v91_v27 = vld [vmem:[#allocation6 + $0x148] sm:$0xff]  ;;  %v90_v31 = vld [vmem:[#allocation6 + $0x140] sm:$0xff]  ;;  %v57_v34 = vld [vmem:[#allocation6 + $0x38] sm:$0xff] }
  0x26   :  { %3481 = vmatpush3.msra.mxu1 %v93_v19  ;;  %3447 = vmatprep.subr.mxu0 %v76_v20  ;;  %v89_v35 = vld [vmem:[#allocation6 + $0x138] sm:$0xff]  ;;  %v72_v36 = vld [vmem:[#allocation6 + $0xb0] sm:$0xff]  ;;  %v71_v41 = vld [vmem:[#allocation6 + $0xa8] sm:$0xff] }
  0x27   :  { %3482 = vmatprep.subr.mxu1 %v108_v21  ;;  %3448 = vmatpush3.msra.mxu0 %v60_v22  ;;  %v104_v37 = vld [vmem:[#allocation6 + $0x1b0] sm:$0xff]  ;;  %v103_v42 = vld [vmem:[#allocation6 + $0x1a8] sm:$0xff]  ;;  %v70_v45 = vld [vmem:[#allocation6 + $0xa0] sm:$0xff] }
  0x28   :  { %3483 = vmatpush3.msra.mxu1 %v92_v23  ;;  %3449 = vmatprep.subr.mxu0 %v75_v24  ;;  %v56_v39 = vld [vmem:[#allocation6 + $0x30] sm:$0xff]  ;;  %v55_v43 = vld [vmem:[#allocation6 + $0x28] sm:$0xff]  ;;  %v102_v46 = vld [vmem:[#allocation6 + $0x1a0] sm:$0xff] }
  0x29   :  { %3484 = vmatprep.subr.mxu1 %v107_v25  ;;  %3450 = vmatpush3.msra.mxu0 %v59_v26  ;;  %v88_v40 = vld [vmem:[#allocation6 + $0x130] sm:$0xff]  ;;  %v87_v44 = vld [vmem:[#allocation6 + $0x128] sm:$0xff]  ;;  %v54_v48 = vld [vmem:[#allocation6 + $0x20] sm:$0xff] }
  0x2a   :  { %3485 = vmatpush3.msra.mxu1 %v91_v27  ;;  %3451 = vmatprep.subr.mxu0 %v74_v28  ;;  %v86_v49 = vld [vmem:[#allocation6 + $0x120] sm:$0xff]  ;;  %v69_v50 = vld [vmem:[#allocation6 + $0x98] sm:$0xff]  ;;  %v68_v54 = vld [vmem:[#allocation6 + $0x90] sm:$0xff] }
  0x2b   :  { %3486 = vmatprep.subr.mxu1 %v106_v29  ;;  %3452 = vmatpush3.msra.mxu0 %v58_v30  ;;  %v101_v51 = vld [vmem:[#allocation6 + $0x198] sm:$0xff]  ;;  %v100_v55 = vld [vmem:[#allocation6 + $0x190] sm:$0xff]  ;;  %v4594_v59 = vld [vmem:[#allocation3] sm:$0xff] }
  0x2c   :  { %3487 = vmatpush3.msra.mxu1 %v90_v31  ;;  %3453 = vmatprep.subr.mxu0 %v73_v32  ;;  %v53_v52 = vld [vmem:[#allocation6 + $0x18] sm:$0xff]  ;;  %v52_v57 = vld [vmem:[#allocation6 + $0x10] sm:$0xff]  ;;  %v67_v61 = vld [vmem:[#allocation6 + $0x88] sm:$0xff]  ;;  %v1027_v5 = vrot.slane %v4594_v59, %v4592_v56  ;;  %v1023_v7 = vrot.slane %v4594_v59, %v4597_v60  ;;  %v1035_v9 = vrot.slane %v4594_v59, %v4600_v63 }
  0x2d   :  { %3488 = vmatprep.subr.mxu1 %v105_v33  ;;  %3454 = vmatpush3.msra.mxu0 %v57_v34  ;;  %v85_v53 = vld [vmem:[#allocation6 + $0x118] sm:$0xff]  ;;  %v84_v58 = vld [vmem:[#allocation6 + $0x110] sm:$0xff]  ;;  %v99_v62 = vld [vmem:[#allocation6 + $0x188] sm:$0xff]  ;;  %v1031_v11 = vrot.slane %v4594_v59, %v4603_v2 }
  0x2e   :  { %3489 = vmatpush3.msra.mxu1 %v89_v35  ;;  %3455 = vmatprep.subr.mxu0 %v72_v36  ;;  %v51_v0 = vld [vmem:[#allocation6 + $0x8] sm:$0xff]  ;;  %v66_v3 = vld [vmem:[#allocation6 + $0x80] sm:$0xff]  ;;  %v145_v10 = vld [vmem:[#allocation6 + $0x2f8] sm:$0xff] }
  0x2f   :  { %3490 = vmatprep.subr.mxu1 %v104_v37  ;;  %3456 = vmatpush3.msra.mxu0 %v56_v39  ;;  %v83_v1 = vld [vmem:[#allocation6 + $0x108] sm:$0xff]  ;;  %v98_v4 = vld [vmem:[#allocation6 + $0x180] sm:$0xff]  ;;  %v177_v12 = vld [vmem:[#allocation6 + $0x3f8] sm:$0xff] }
  0x30   :  { %3491 = vmatpush3.msra.mxu1 %v88_v40  ;;  %3457 = vmatprep.subr.mxu0 %v71_v41  ;;  %v50_v6 = vld [vmem:[#allocation6] sm:$0xff]  ;;  %v129_v13 = vld [vmem:[#allocation6 + $0x278] sm:$0xff]  ;;  %v144_v15 = vld [vmem:[#allocation6 + $0x2f0] sm:$0xff] }
  0x31   :  { %3492 = vmatprep.subr.mxu1 %v103_v42  ;;  %3458 = vmatpush3.msra.mxu0 %v55_v43  ;;  %v82_v8 = vld [vmem:[#allocation6 + $0x100] sm:$0xff]  ;;  %v161_v14 = vld [vmem:[#allocation6 + $0x378] sm:$0xff]  ;;  %v176_v16 = vld [vmem:[#allocation6 + $0x3f0] sm:$0xff] }
  0x32   :  { %3493 = vmatpush3.msra.mxu1 %v87_v44  ;;  %3459 = vmatprep.subr.mxu0 %v70_v45  ;;  %v128_v17 = vld [vmem:[#allocation6 + $0x270] sm:$0xff]  ;;  %v143_v19 = vld [vmem:[#allocation6 + $0x2e8] sm:$0xff]  ;;  %v142_v23 = vld [vmem:[#allocation6 + $0x2e0] sm:$0xff] }
  0x33   :  { %3494 = vmatprep.subr.mxu1 %v102_v46  ;;  %3460 = vmatpush3.msra.mxu0 %v54_v48  ;;  %v160_v18 = vld [vmem:[#allocation6 + $0x370] sm:$0xff]  ;;  %v175_v20 = vld [vmem:[#allocation6 + $0x3e8] sm:$0xff]  ;;  %v174_v24 = vld [vmem:[#allocation6 + $0x3e0] sm:$0xff] }
  0x34   :  { %3495 = vmatpush3.msra.mxu1 %v86_v49  ;;  %3461 = vmatprep.subr.mxu0 %v69_v50  ;;  %v127_v21 = vld [vmem:[#allocation6 + $0x268] sm:$0xff]  ;;  %v126_v25 = vld [vmem:[#allocation6 + $0x260] sm:$0xff]  ;;  %v141_v27 = vld [vmem:[#allocation6 + $0x2d8] sm:$0xff] }
  0x35   :  { %3496 = vmatprep.subr.mxu1 %v101_v51  ;;  %3462 = vmatpush3.msra.mxu0 %v53_v52  ;;  %v159_v22 = vld [vmem:[#allocation6 + $0x368] sm:$0xff]  ;;  %v158_v26 = vld [vmem:[#allocation6 + $0x360] sm:$0xff]  ;;  %v173_v28 = vld [vmem:[#allocation6 + $0x3d8] sm:$0xff] }
  0x36   :  { %3497 = vmatpush3.msra.mxu1 %v85_v53  ;;  %3463 = vmatprep.subr.mxu0 %v68_v54  ;;  %v125_v29 = vld [vmem:[#allocation6 + $0x258] sm:$0xff]  ;;  %v140_v31 = vld [vmem:[#allocation6 + $0x2d0] sm:$0xff]  ;;  %v139_v35 = vld [vmem:[#allocation6 + $0x2c8] sm:$0xff] }
  0x37   :  { %3498 = vmatprep.subr.mxu1 %v100_v55  ;;  %3464 = vmatpush3.msra.mxu0 %v52_v57  ;;  %v157_v30 = vld [vmem:[#allocation6 + $0x358] sm:$0xff]  ;;  %v172_v32 = vld [vmem:[#allocation6 + $0x3d0] sm:$0xff]  ;;  %v171_v36 = vld [vmem:[#allocation6 + $0x3c8] sm:$0xff] }
  0x38   :  { %3499 = vmatpush3.msra.mxu1 %v84_v58  ;;  %3465 = vmatprep.subr.mxu0 %v67_v61  ;;  %v124_v33 = vld [vmem:[#allocation6 + $0x250] sm:$0xff]  ;;  %v123_v37 = vld [vmem:[#allocation6 + $0x248] sm:$0xff]  ;;  %v138_v39 = vld [vmem:[#allocation6 + $0x2c0] sm:$0xff] }
  0x39   :  { %3500 = vmatprep.subr.mxu1 %v99_v62  ;;  %3466 = vmatpush3.msra.mxu0 %v51_v0  ;;  %v156_v34 = vld [vmem:[#allocation6 + $0x350] sm:$0xff]  ;;  %v155_v38 = vld [vmem:[#allocation6 + $0x348] sm:$0xff]  ;;  %v170_v40 = vld [vmem:[#allocation6 + $0x3c0] sm:$0xff] }
  0x3a   :  { %3501 = vmatpush3.msra.mxu1 %v83_v1  ;;  %3467 = vmatprep.subr.mxu0 %v66_v3  ;;  %v122_v41 = vld [vmem:[#allocation6 + $0x240] sm:$0xff]  ;;  %v137_v43 = vld [vmem:[#allocation6 + $0x2b8] sm:$0xff]  ;;  %v136_v48 = vld [vmem:[#allocation6 + $0x2b0] sm:$0xff] }
  0x3b   :  { %3502 = vmatprep.subr.mxu1 %v98_v4  ;;  %3468 = vmatpush3.msra.mxu0 %v50_v6  ;;  %v154_v42 = vld [vmem:[#allocation6 + $0x340] sm:$0xff]  ;;  %v169_v44 = vld [vmem:[#allocation6 + $0x3b8] sm:$0xff]  ;;  %v168_v49 = vld [vmem:[#allocation6 + $0x3b0] sm:$0xff] }
  0x3c   :  { %1384 = vmatprep.mubr.f32.mxu0 %v1027_v5  ;;  %3503 = vmatpush3.msra.mxu1 %v82_v8  ;;  %v121_v45 = vld [vmem:[#allocation6 + $0x238] sm:$0xff]  ;;  %v120_v50 = vld [vmem:[#allocation6 + $0x230] sm:$0xff]  ;;  %v135_v52 = vld [vmem:[#allocation6 + $0x2a8] sm:$0xff] }
  0x3d   :  { %1385 = vmatmul.mubr.f32.vlgmr.msra.gmra.mxu0 %v1023_v7  ;;  %1454 = vmatprep.mubr.f32.mxu1 %v1035_v9  ;;  %v153_v46 = vld [vmem:[#allocation6 + $0x338] sm:$0xff]  ;;  %v152_v51 = vld [vmem:[#allocation6 + $0x330] sm:$0xff]  ;;  %v167_v53 = vld [vmem:[#allocation6 + $0x3a8] sm:$0xff]  ;;  %v4614_v7 = vsub.s32 5, %v4589_v47 }
  0x3e   :  { %3507 = vmatprep.subr.mxu0 %v145_v10  ;;  %3542 = vmatprep.subr.mxu1 %v177_v12  ;;  %v119_v54 = vld [vmem:[#allocation6 + $0x228] sm:$0xff]  ;;  %v134_v57 = vld [vmem:[#allocation6 + $0x2a0] sm:$0xff]  ;;  %v133_v0 = vld [vmem:[#allocation6 + $0x298] sm:$0xff]  ;;  %v4617_v10 = vsub.s32 4, %v4589_v47 }
  0x3f   :  { %1455 = vmatmul.mubr.f32.vlgmr.msra.gmra.mxu1 %v1031_v11  ;;  %3508 = vmatpush3.msra.mxu0 %v129_v13  ;;  %v151_v55 = vld [vmem:[#allocation6 + $0x328] sm:$0xff]  ;;  %v166_v58 = vld [vmem:[#allocation6 + $0x3a0] sm:$0xff]  ;;  %v165_v1 = vld [vmem:[#allocation6 + $0x398] sm:$0xff]  ;;  %v4620_v13 = vsub.s32 7, %v4589_v47 }
  0x40   :  { %3543 = vmatpush3.msra.mxu1 %v161_v14  ;;  %3509 = vmatprep.subr.mxu0 %v144_v15  ;;  %v118_v61 = vld [vmem:[#allocation6 + $0x220] sm:$0xff]  ;;  %v117_v3 = vld [vmem:[#allocation6 + $0x218] sm:$0xff]  ;;  %v132_v5 = vld [vmem:[#allocation6 + $0x290] sm:$0xff] }
  0x41   :  { %3544 = vmatprep.subr.mxu1 %v176_v16  ;;  %3510 = vmatpush3.msra.mxu0 %v128_v17  ;;  %v150_v62 = vld [vmem:[#allocation6 + $0x320] sm:$0xff]  ;;  %v149_v4 = vld [vmem:[#allocation6 + $0x318] sm:$0xff]  ;;  %v164_v6 = vld [vmem:[#allocation6 + $0x390] sm:$0xff]  ;;  %v4623_v16 = vsub.s32 6, %v4589_v47  ;;  %v1051_v47 = vrot.slane %v4594_v59, %v4620_v13 }
  0x42   :  { %3545 = vmatpush3.msra.mxu1 %v160_v18  ;;  %3511 = vmatprep.subr.mxu0 %v143_v19  ;;  %v116_v8 = vld [vmem:[#allocation6 + $0x210] sm:$0xff]  ;;  %v131_v11 = vld [vmem:[#allocation6 + $0x288] sm:$0xff]  ;;  %v130_v17 = vld [vmem:[#allocation6 + $0x280] sm:$0xff]  ;;  %v1043_v19 = vrot.slane %v4594_v59, %v4614_v7 }
  0x43   :  { %3546 = vmatprep.subr.mxu1 %v175_v20  ;;  %3512 = vmatpush3.msra.mxu0 %v127_v21  ;;  %v148_v9 = vld [vmem:[#allocation6 + $0x310] sm:$0xff]  ;;  %v163_v12 = vld [vmem:[#allocation6 + $0x388] sm:$0xff]  ;;  %v162_v18 = vld [vmem:[#allocation6 + $0x380] sm:$0xff]  ;;  %v1039_v21 = vrot.slane %v4594_v59, %v4617_v10 }
  0x44   :  { %3547 = vmatpush3.msra.mxu1 %v159_v22  ;;  %3513 = vmatprep.subr.mxu0 %v142_v23  ;;  %v115_v14 = vld [vmem:[#allocation6 + $0x208] sm:$0xff]  ;;  %v114_v20 = vld [vmem:[#allocation6 + $0x200] sm:$0xff]  ;;  %v209_v23 = vld [vmem:[#allocation6 + $0x4f8] sm:$0xff] }
  0x45   :  { %3548 = vmatprep.subr.mxu1 %v174_v24  ;;  %3514 = vmatpush3.msra.mxu0 %v126_v25  ;;  %v147_v15 = vld [vmem:[#allocation6 + $0x308] sm:$0xff]  ;;  %v146_v22 = vld [vmem:[#allocation6 + $0x300] sm:$0xff]  ;;  %v1047_v24 = vrot.slane %v4594_v59, %v4623_v16  ;;  %v241_v25 = vld [vmem:[#allocation6 + $0x5f8] sm:$0xff] }
  0x46   :  { %3549 = vmatpush3.msra.mxu1 %v158_v26  ;;  %3515 = vmatprep.subr.mxu0 %v141_v27  ;;  %v193_v26 = vld [vmem:[#allocation6 + $0x478] sm:$0xff]  ;;  %v191_v59 = vld [vmem:[#allocation6 + $0x468] sm:$0xff] }
  0x47   :  { %3550 = vmatprep.subr.mxu1 %v173_v28  ;;  %3516 = vmatpush3.msra.mxu0 %v125_v29  ;;  %v225_v27 = vld [vmem:[#allocation6 + $0x578] sm:$0xff]  ;;  %v208_v28 = vld [vmem:[#allocation6 + $0x4f0] sm:$0xff] }
  0x48   :  { %3551 = vmatpush3.msra.mxu1 %v157_v30  ;;  %3517 = vmatprep.subr.mxu0 %v140_v31  ;;  %v240_v29 = vld [vmem:[#allocation6 + $0x5f0] sm:$0xff] }
  0x49   :  { %3552 = vmatprep.subr.mxu1 %v172_v32  ;;  %3518 = vmatpush3.msra.mxu0 %v124_v33  ;;  %v192_v30 = vld [vmem:[#allocation6 + $0x470] sm:$0xff]  ;;  %v207_v32 = vld [vmem:[#allocation6 + $0x4e8] sm:$0xff] }
  0x4a   :  { %3553 = vmatpush3.msra.mxu1 %v156_v34  ;;  %3519 = vmatprep.subr.mxu0 %v139_v35  ;;  %v224_v31 = vld [vmem:[#allocation6 + $0x570] sm:$0xff]  ;;  %v239_v33 = vld [vmem:[#allocation6 + $0x5e8] sm:$0xff]  ;;  %v206_v35 = vld [vmem:[#allocation6 + $0x4e0] sm:$0xff] }
  0x4b   :  { %3554 = vmatprep.subr.mxu1 %v171_v36  ;;  %3520 = vmatpush3.msra.mxu0 %v123_v37  ;;  %v223_v34 = vld [vmem:[#allocation6 + $0x568] sm:$0xff]  ;;  %v238_v36 = vld [vmem:[#allocation6 + $0x5e0] sm:$0xff] }
  0x4c   :  { %3555 = vmatpush3.msra.mxu1 %v155_v38  ;;  %3521 = vmatprep.subr.mxu0 %v138_v39  ;;  %v190_v37 = vld [vmem:[#allocation6 + $0x460] sm:$0xff]  ;;  %v205_v39 = vld [vmem:[#allocation6 + $0x4d8] sm:$0xff] }
  0x4d   :  { %3556 = vmatprep.subr.mxu1 %v170_v40  ;;  %3522 = vmatpush3.msra.mxu0 %v122_v41  ;;  %v222_v38 = vld [vmem:[#allocation6 + $0x560] sm:$0xff]  ;;  %v237_v40 = vld [vmem:[#allocation6 + $0x5d8] sm:$0xff] }
  0x4e   :  { %3557 = vmatpush3.msra.mxu1 %v154_v42  ;;  %3523 = vmatprep.subr.mxu0 %v137_v43  ;;  %v189_v41 = vld [vmem:[#allocation6 + $0x458] sm:$0xff]  ;;  %v204_v43 = vld [vmem:[#allocation6 + $0x4d0] sm:$0xff] }
  0x4f   :  { %3558 = vmatprep.subr.mxu1 %v169_v44  ;;  %3524 = vmatpush3.msra.mxu0 %v121_v45  ;;  %v221_v42 = vld [vmem:[#allocation6 + $0x558] sm:$0xff]  ;;  %v236_v44 = vld [vmem:[#allocation6 + $0x5d0] sm:$0xff] }
  0x50   :  { %3559 = vmatpush3.msra.mxu1 %v153_v46  ;;  %3525 = vmatprep.subr.mxu0 %v136_v48  ;;  %v188_v45 = vld [vmem:[#allocation6 + $0x450] sm:$0xff]  ;;  %v203_v48 = vld [vmem:[#allocation6 + $0x4c8] sm:$0xff] }
  0x51   :  { %3560 = vmatprep.subr.mxu1 %v168_v49  ;;  %3526 = vmatpush3.msra.mxu0 %v120_v50  ;;  %v220_v46 = vld [vmem:[#allocation6 + $0x550] sm:$0xff]  ;;  %v235_v49 = vld [vmem:[#allocation6 + $0x5c8] sm:$0xff] }
  0x52   :  { %3561 = vmatpush3.msra.mxu1 %v152_v51  ;;  %3527 = vmatprep.subr.mxu0 %v135_v52  ;;  %v187_v50 = vld [vmem:[#allocation6 + $0x448] sm:$0xff]  ;;  %v202_v52 = vld [vmem:[#allocation6 + $0x4c0] sm:$0xff] }
  0x53   :  { %3562 = vmatprep.subr.mxu1 %v167_v53  ;;  %3528 = vmatpush3.msra.mxu0 %v119_v54  ;;  %v219_v51 = vld [vmem:[#allocation6 + $0x548] sm:$0xff]  ;;  %v234_v53 = vld [vmem:[#allocation6 + $0x5c0] sm:$0xff] }
  0x54   :  { %3563 = vmatpush3.msra.mxu1 %v151_v55  ;;  %3529 = vmatprep.subr.mxu0 %v134_v57  ;;  %v186_v54 = vld [vmem:[#allocation6 + $0x440] sm:$0xff]  ;;  %v201_v57 = vld [vmem:[#allocation6 + $0x4b8] sm:$0xff] }
  0x55   :  { %3564 = vmatprep.subr.mxu1 %v166_v58  ;;  %3530 = vmatpush3.msra.mxu0 %v118_v61  ;;  %v218_v55 = vld [vmem:[#allocation6 + $0x540] sm:$0xff]  ;;  %v233_v58 = vld [vmem:[#allocation6 + $0x5b8] sm:$0xff] }
  0x56   :  { %3565 = vmatpush3.msra.mxu1 %v150_v62  ;;  %3531 = vmatprep.subr.mxu0 %v133_v0  ;;  %v185_v61 = vld [vmem:[#allocation6 + $0x438] sm:$0xff]  ;;  %v200_v0 = vld [vmem:[#allocation6 + $0x4b0] sm:$0xff] }
  0x57   :  { %3566 = vmatprep.subr.mxu1 %v165_v1  ;;  %3532 = vmatpush3.msra.mxu0 %v117_v3  ;;  %v217_v62 = vld [vmem:[#allocation6 + $0x538] sm:$0xff]  ;;  %v232_v1 = vld [vmem:[#allocation6 + $0x5b0] sm:$0xff] }
  0x58   :  { %3567 = vmatpush3.msra.mxu1 %v149_v4  ;;  %3533 = vmatprep.subr.mxu0 %v132_v5  ;;  %v184_v3 = vld [vmem:[#allocation6 + $0x430] sm:$0xff]  ;;  %v199_v5 = vld [vmem:[#allocation6 + $0x4a8] sm:$0xff] }
  0x59   :  { %3568 = vmatprep.subr.mxu1 %v164_v6  ;;  %3534 = vmatpush3.msra.mxu0 %v116_v8  ;;  %v216_v4 = vld [vmem:[#allocation6 + $0x530] sm:$0xff]  ;;  %v231_v6 = vld [vmem:[#allocation6 + $0x5a8] sm:$0xff] }
  0x5a   :  { %3569 = vmatpush3.msra.mxu1 %v148_v9  ;;  %3535 = vmatprep.subr.mxu0 %v131_v11  ;;  %v183_v8 = vld [vmem:[#allocation6 + $0x428] sm:$0xff]  ;;  %v198_v11 = vld [vmem:[#allocation6 + $0x4a0] sm:$0xff] }
  0x5b   :  { %3570 = vmatprep.subr.mxu1 %v163_v12  ;;  %3536 = vmatpush3.msra.mxu0 %v115_v14  ;;  %v215_v9 = vld [vmem:[#allocation6 + $0x528] sm:$0xff]  ;;  %v230_v12 = vld [vmem:[#allocation6 + $0x5a0] sm:$0xff] }
  0x5c   :  { %3571 = vmatpush3.msra.mxu1 %v147_v15  ;;  %3537 = vmatprep.subr.mxu0 %v130_v17  ;;  %v182_v14 = vld [vmem:[#allocation6 + $0x420] sm:$0xff]  ;;  %v197_v17 = vld [vmem:[#allocation6 + $0x498] sm:$0xff] }
  0x5d   :  { %3572 = vmatprep.subr.mxu1 %v162_v18  ;;  %3538 = vmatpush3.msra.mxu0 %v114_v20  ;;  %v214_v15 = vld [vmem:[#allocation6 + $0x520] sm:$0xff]  ;;  %v229_v18 = vld [vmem:[#allocation6 + $0x598] sm:$0xff] }
  0x5e   :  { %1524 = vmatprep.mubr.f32.mxu0 %v1043_v19  ;;  %3573 = vmatpush3.msra.mxu1 %v146_v22  ;;  %v181_v19 = vld [vmem:[#allocation6 + $0x418] sm:$0xff]  ;;  %v228_v22 = vld [vmem:[#allocation6 + $0x590] sm:$0xff] }
  0x5f   :  { %1525 = vmatmul.mubr.f32.vlgmr.msra.gmra.mxu0 %v1039_v21  ;;  %1594 = vmatprep.mubr.f32.mxu1 %v1051_v47  ;;  %v213_v20 = vld [vmem:[#allocation6 + $0x518] sm:$0xff]  ;;  %v196_v21 = vld [vmem:[#allocation6 + $0x490] sm:$0xff] }
  0x60   :  { %3577 = vmatprep.subr.mxu0 %v209_v23  ;;  %3612 = vmatprep.subr.mxu1 %v241_v25  ;;  %v180_v47 = vld [vmem:[#allocation6 + $0x410] sm:$0xff]  ;;  %v195_v25 = vld [vmem:[#allocation6 + $0x488] sm:$0xff] }
  0x61   :  { %1595 = vmatmul.mubr.f32.vlgmr.msra.gmra.mxu1 %v1047_v24  ;;  %3578 = vmatpush3.msra.mxu0 %v193_v26  ;;  %v212_v23 = vld [vmem:[#allocation6 + $0x510] sm:$0xff]  ;;  %v227_v26 = vld [vmem:[#allocation6 + $0x588] sm:$0xff] }
  0x62   :  { %3613 = vmatpush3.msra.mxu1 %v225_v27  ;;  %3579 = vmatprep.subr.mxu0 %v208_v28  ;;  %v4633_v24 = vld [vmem:[#allocation3 + $0x8] sm:$0xff] }
  0x63   :  { %3614 = vmatprep.subr.mxu1 %v240_v29  ;;  %3580 = vmatpush3.msra.mxu0 %v192_v30  ;;  %v179_v27 = vld [vmem:[#allocation6 + $0x408] sm:$0xff]  ;;  %v194_v29 = vld [vmem:[#allocation6 + $0x480] sm:$0xff] }
  0x64   :  { %3615 = vmatpush3.msra.mxu1 %v224_v31  ;;  %3581 = vmatprep.subr.mxu0 %v207_v32  ;;  %v211_v28 = vld [vmem:[#allocation6 + $0x508] sm:$0xff]  ;;  %v226_v30 = vld [vmem:[#allocation6 + $0x580] sm:$0xff]  ;;  %v1059_v31 = vrot.slane %v4633_v24, %v4592_v56 }
  0x65   :  { %3616 = vmatprep.subr.mxu1 %v239_v33  ;;  %3582 = vmatpush3.msra.mxu0 %v191_v59  ;;  %v178_v32 = vld [vmem:[#allocation6 + $0x400] sm:$0xff]  ;;  %v1055_v33 = vrot.slane %v4633_v24, %v4597_v60 }
  0x66   :  { %3617 = vmatpush3.msra.mxu1 %v223_v34  ;;  %3583 = vmatprep.subr.mxu0 %v206_v35  ;;  %v210_v59 = vld [vmem:[#allocation6 + $0x500] sm:$0xff]  ;;  %v1067_v34 = vrot.slane %v4633_v24, %v4600_v63  ;;  %v273_v35 = vld [vmem:[#allocation6 + $0x6f8] sm:$0xff] }
  0x67   :  { %3618 = vmatprep.subr.mxu1 %v238_v36  ;;  %3584 = vmatpush3.msra.mxu0 %v190_v37  ;;  %v1063_v36 = vrot.slane %v4633_v24, %v4603_v2  ;;  %v305_v37 = vld [vmem:[#allocation6 + $0x7f8] sm:$0xff] }
  0x68   :  { %3619 = vmatpush3.msra.mxu1 %v222_v38  ;;  %3585 = vmatprep.subr.mxu0 %v205_v39  ;;  %v257_v38 = vld [vmem:[#allocation6 + $0x678] sm:$0xff] }
  0x69   :  { %3620 = vmatprep.subr.mxu1 %v237_v40  ;;  %3586 = vmatpush3.msra.mxu0 %v189_v41  ;;  %v289_v39 = vld [vmem:[#allocation6 + $0x778] sm:$0xff]  ;;  %v272_v40 = vld [vmem:[#allocation6 + $0x6f0] sm:$0xff] }
  0x6a   :  { %3621 = vmatpush3.msra.mxu1 %v221_v42  ;;  %3587 = vmatprep.subr.mxu0 %v204_v43  ;;  %v304_v41 = vld [vmem:[#allocation6 + $0x7f0] sm:$0xff] }
  0x6b   :  { %3622 = vmatprep.subr.mxu1 %v236_v44  ;;  %3588 = vmatpush3.msra.mxu0 %v188_v45  ;;  %v256_v42 = vld [vmem:[#allocation6 + $0x670] sm:$0xff]  ;;  %v271_v44 = vld [vmem:[#allocation6 + $0x6e8] sm:$0xff] }
  0x6c   :  { %3623 = vmatpush3.msra.mxu1 %v220_v46  ;;  %3589 = vmatprep.subr.mxu0 %v203_v48  ;;  %v288_v43 = vld [vmem:[#allocation6 + $0x770] sm:$0xff]  ;;  %v303_v45 = vld [vmem:[#allocation6 + $0x7e8] sm:$0xff] }
  0x6d   :  { %3624 = vmatprep.subr.mxu1 %v235_v49  ;;  %3590 = vmatpush3.msra.mxu0 %v187_v50  ;;  %v255_v46 = vld [vmem:[#allocation6 + $0x668] sm:$0xff]  ;;  %v270_v49 = vld [vmem:[#allocation6 + $0x6e0] sm:$0xff] }
  0x6e   :  { %3625 = vmatpush3.msra.mxu1 %v219_v51  ;;  %3591 = vmatprep.subr.mxu0 %v202_v52  ;;  %v287_v48 = vld [vmem:[#allocation6 + $0x768] sm:$0xff]  ;;  %v302_v50 = vld [vmem:[#allocation6 + $0x7e0] sm:$0xff] }
  0x6f   :  { %3626 = vmatprep.subr.mxu1 %v234_v53  ;;  %3592 = vmatpush3.msra.mxu0 %v186_v54  ;;  %v254_v51 = vld [vmem:[#allocation6 + $0x660] sm:$0xff]  ;;  %v269_v53 = vld [vmem:[#allocation6 + $0x6d8] sm:$0xff] }
  0x70   :  { %3627 = vmatpush3.msra.mxu1 %v218_v55  ;;  %3593 = vmatprep.subr.mxu0 %v201_v57  ;;  %v286_v52 = vld [vmem:[#allocation6 + $0x760] sm:$0xff]  ;;  %v301_v54 = vld [vmem:[#allocation6 + $0x7d8] sm:$0xff] }
  0x71   :  { %3628 = vmatprep.subr.mxu1 %v233_v58  ;;  %3594 = vmatpush3.msra.mxu0 %v185_v61  ;;  %v253_v55 = vld [vmem:[#allocation6 + $0x658] sm:$0xff]  ;;  %v268_v58 = vld [vmem:[#allocation6 + $0x6d0] sm:$0xff] }
  0x72   :  { %3629 = vmatpush3.msra.mxu1 %v217_v62  ;;  %3595 = vmatprep.subr.mxu0 %v200_v0  ;;  %v285_v57 = vld [vmem:[#allocation6 + $0x758] sm:$0xff]  ;;  %v300_v61 = vld [vmem:[#allocation6 + $0x7d0] sm:$0xff] }
  0x73   :  { %3630 = vmatprep.subr.mxu1 %v232_v1  ;;  %3596 = vmatpush3.msra.mxu0 %v184_v3  ;;  %v252_v62 = vld [vmem:[#allocation6 + $0x650] sm:$0xff]  ;;  %v267_v1 = vld [vmem:[#allocation6 + $0x6c8] sm:$0xff] }
  0x74   :  { %3631 = vmatpush3.msra.mxu1 %v216_v4  ;;  %3597 = vmatprep.subr.mxu0 %v199_v5  ;;  %v284_v0 = vld [vmem:[#allocation6 + $0x750] sm:$0xff]  ;;  %v299_v3 = vld [vmem:[#allocation6 + $0x7c8] sm:$0xff] }
  0x75   :  { %3632 = vmatprep.subr.mxu1 %v231_v6  ;;  %3598 = vmatpush3.msra.mxu0 %v183_v8  ;;  %v251_v4 = vld [vmem:[#allocation6 + $0x648] sm:$0xff]  ;;  %v266_v6 = vld [vmem:[#allocation6 + $0x6c0] sm:$0xff] }
  0x76   :  { %3633 = vmatpush3.msra.mxu1 %v215_v9  ;;  %3599 = vmatprep.subr.mxu0 %v198_v11  ;;  %v283_v5 = vld [vmem:[#allocation6 + $0x748] sm:$0xff]  ;;  %v298_v8 = vld [vmem:[#allocation6 + $0x7c0] sm:$0xff] }
  0x77   :  { %3634 = vmatprep.subr.mxu1 %v230_v12  ;;  %3600 = vmatpush3.msra.mxu0 %v182_v14  ;;  %v250_v9 = vld [vmem:[#allocation6 + $0x640] sm:$0xff]  ;;  %v265_v12 = vld [vmem:[#allocation6 + $0x6b8] sm:$0xff] }
  0x78   :  { %3635 = vmatpush3.msra.mxu1 %v214_v15  ;;  %3601 = vmatprep.subr.mxu0 %v197_v17  ;;  %v282_v11 = vld [vmem:[#allocation6 + $0x740] sm:$0xff]  ;;  %v297_v14 = vld [vmem:[#allocation6 + $0x7b8] sm:$0xff] }
  0x79   :  { %3636 = vmatprep.subr.mxu1 %v229_v18  ;;  %3602 = vmatpush3.msra.mxu0 %v181_v19  ;;  %v249_v15 = vld [vmem:[#allocation6 + $0x638] sm:$0xff]  ;;  %v264_v18 = vld [vmem:[#allocation6 + $0x6b0] sm:$0xff] }
  0x7a   :  { %3637 = vmatpush3.msra.mxu1 %v213_v20  ;;  %3603 = vmatprep.subr.mxu0 %v196_v21  ;;  %v281_v17 = vld [vmem:[#allocation6 + $0x738] sm:$0xff]  ;;  %v296_v19 = vld [vmem:[#allocation6 + $0x7b0] sm:$0xff] }
  0x7b   :  { %3638 = vmatprep.subr.mxu1 %v228_v22  ;;  %3604 = vmatpush3.msra.mxu0 %v180_v47  ;;  %v248_v20 = vld [vmem:[#allocation6 + $0x630] sm:$0xff]  ;;  %v263_v22 = vld [vmem:[#allocation6 + $0x6a8] sm:$0xff] }
  0x7c   :  { %3639 = vmatpush3.msra.mxu1 %v212_v23  ;;  %3605 = vmatprep.subr.mxu0 %v195_v25  ;;  %v280_v21 = vld [vmem:[#allocation6 + $0x730] sm:$0xff]  ;;  %v295_v47 = vld [vmem:[#allocation6 + $0x7a8] sm:$0xff] }
  0x7d   :  { %3640 = vmatprep.subr.mxu1 %v227_v26  ;;  %3606 = vmatpush3.msra.mxu0 %v179_v27  ;;  %v247_v23 = vld [vmem:[#allocation6 + $0x628] sm:$0xff]  ;;  %v262_v26 = vld [vmem:[#allocation6 + $0x6a0] sm:$0xff] }
  0x7e   :  { %3641 = vmatpush3.msra.mxu1 %v211_v28  ;;  %3607 = vmatprep.subr.mxu0 %v194_v29  ;;  %v279_v25 = vld [vmem:[#allocation6 + $0x728] sm:$0xff]  ;;  %v294_v27 = vld [vmem:[#allocation6 + $0x7a0] sm:$0xff] }
  0x7f   :  { %3642 = vmatprep.subr.mxu1 %v226_v30  ;;  %3608 = vmatpush3.msra.mxu0 %v178_v32  ;;  %v246_v28 = vld [vmem:[#allocation6 + $0x620] sm:$0xff]  ;;  %v261_v30 = vld [vmem:[#allocation6 + $0x698] sm:$0xff] }
  0x80   :  { %1664 = vmatprep.mubr.f32.mxu0 %v1059_v31  ;;  %3643 = vmatpush3.msra.mxu1 %v210_v59  ;;  %v278_v29 = vld [vmem:[#allocation6 + $0x720] sm:$0xff]  ;;  %v293_v31 = vld [vmem:[#allocation6 + $0x798] sm:$0xff]  ;;  %v260_v59 = vld [vmem:[#allocation6 + $0x690] sm:$0xff] }
  0x81   :  { %1665 = vmatmul.mubr.f32.vlgmr.msra.gmra.mxu0 %v1055_v33  ;;  %1734 = vmatprep.mubr.f32.mxu1 %v1067_v34  ;;  %v245_v32 = vld [vmem:[#allocation6 + $0x618] sm:$0xff]  ;;  %v292_v34 = vld [vmem:[#allocation6 + $0x790] sm:$0xff] }
  0x82   :  { %3647 = vmatprep.subr.mxu0 %v273_v35  ;;  %3682 = vmatprep.subr.mxu1 %v305_v37  ;;  %v277_v33 = vld [vmem:[#allocation6 + $0x718] sm:$0xff]  ;;  %v244_v35 = vld [vmem:[#allocation6 + $0x610] sm:$0xff]  ;;  %v259_v37 = vld [vmem:[#allocation6 + $0x688] sm:$0xff] }
  0x83   :  { %1735 = vmatmul.mubr.f32.vlgmr.msra.gmra.mxu1 %v1063_v36  ;;  %3648 = vmatpush3.msra.mxu0 %v257_v38  ;;  %v276_v36 = vld [vmem:[#allocation6 + $0x710] sm:$0xff]  ;;  %v291_v38 = vld [vmem:[#allocation6 + $0x788] sm:$0xff] }
  0x84   :  { %3683 = vmatpush3.msra.mxu1 %v289_v39  ;;  %3649 = vmatprep.subr.mxu0 %v272_v40  ;;  %v243_v39 = vld [vmem:[#allocation6 + $0x608] sm:$0xff] }
  0x85   :  { %3684 = vmatprep.subr.mxu1 %v304_v41  ;;  %3650 = vmatpush3.msra.mxu0 %v256_v42  ;;  %v275_v40 = vld [vmem:[#allocation6 + $0x708] sm:$0xff]  ;;  %v258_v41 = vld [vmem:[#allocation6 + $0x680] sm:$0xff] }
  0x86   :  { %3685 = vmatpush3.msra.mxu1 %v288_v43  ;;  %3651 = vmatprep.subr.mxu0 %v271_v44  ;;  %v290_v42 = vld [vmem:[#allocation6 + $0x780] sm:$0xff]  ;;  %v1075_v43 = vrot.slane %v4633_v24, %v4614_v7 }
  0x87   :  { %3686 = vmatprep.subr.mxu1 %v303_v45  ;;  %3652 = vmatpush3.msra.mxu0 %v255_v46  ;;  %v242_v44 = vld [vmem:[#allocation6 + $0x600] sm:$0xff]  ;;  %v1071_v45 = vrot.slane %v4633_v24, %v4617_v10 }
  0x88   :  { %3687 = vmatpush3.msra.mxu1 %v287_v48  ;;  %3653 = vmatprep.subr.mxu0 %v270_v49  ;;  %v274_v46 = vld [vmem:[#allocation6 + $0x700] sm:$0xff]  ;;  %v1083_v48 = vrot.slane %v4633_v24, %v4620_v13  ;;  %v337_v49 = vld [vmem:[#allocation6 + $0x8f8] sm:$0xff] }
  0x89   :  { %3688 = vmatprep.subr.mxu1 %v302_v50  ;;  %3654 = vmatpush3.msra.mxu0 %v254_v51  ;;  %v1079_v50 = vrot.slane %v4633_v24, %v4623_v16  ;;  %v369_v51 = vld [vmem:[#allocation6 + $0x9f8] sm:$0xff]  ;;  %v319_v24 = vld [vmem:[#allocation6 + $0x868] sm:$0xff] }
  0x8a   :  { %3689 = vmatpush3.msra.mxu1 %v286_v52  ;;  %3655 = vmatprep.subr.mxu0 %v269_v53  ;;  %v321_v52 = vld [vmem:[#allocation6 + $0x878] sm:$0xff] }
  0x8b   :  { %3690 = vmatprep.subr.mxu1 %v301_v54  ;;  %3656 = vmatpush3.msra.mxu0 %v253_v55  ;;  %v353_v53 = vld [vmem:[#allocation6 + $0x978] sm:$0xff]  ;;  %v336_v54 = vld [vmem:[#allocation6 + $0x8f0] sm:$0xff] }
  0x8c   :  { %3691 = vmatpush3.msra.mxu1 %v285_v57  ;;  %3657 = vmatprep.subr.mxu0 %v268_v58  ;;  %v368_v55 = vld [vmem:[#allocation6 + $0x9f0] sm:$0xff] }
  0x8d   :  { %3692 = vmatprep.subr.mxu1 %v300_v61  ;;  %3658 = vmatpush3.msra.mxu0 %v252_v62  ;;  %v320_v57 = vld [vmem:[#allocation6 + $0x870] sm:$0xff]  ;;  %v335_v61 = vld [vmem:[#allocation6 + $0x8e8] sm:$0xff] }
  0x8e   :  { %3693 = vmatpush3.msra.mxu1 %v284_v0  ;;  %3659 = vmatprep.subr.mxu0 %v267_v1  ;;  %v352_v58 = vld [vmem:[#allocation6 + $0x970] sm:$0xff]  ;;  %v367_v62 = vld [vmem:[#allocation6 + $0x9e8] sm:$0xff]  ;;  %v334_v1 = vld [vmem:[#allocation6 + $0x8e0] sm:$0xff] }
  0x8f   :  { %3694 = vmatprep.subr.mxu1 %v299_v3  ;;  %3660 = vmatpush3.msra.mxu0 %v251_v4  ;;  %v351_v0 = vld [vmem:[#allocation6 + $0x968] sm:$0xff]  ;;  %v366_v3 = vld [vmem:[#allocation6 + $0x9e0] sm:$0xff] }
  0x90   :  { %3695 = vmatpush3.msra.mxu1 %v283_v5  ;;  %3661 = vmatprep.subr.mxu0 %v266_v6  ;;  %v318_v4 = vld [vmem:[#allocation6 + $0x860] sm:$0xff]  ;;  %v333_v6 = vld [vmem:[#allocation6 + $0x8d8] sm:$0xff] }
  0x91   :  { %3696 = vmatprep.subr.mxu1 %v298_v8  ;;  %3662 = vmatpush3.msra.mxu0 %v250_v9  ;;  %v350_v5 = vld [vmem:[#allocation6 + $0x960] sm:$0xff]  ;;  %v365_v8 = vld [vmem:[#allocation6 + $0x9d8] sm:$0xff] }
  0x92   :  { %3697 = vmatpush3.msra.mxu1 %v282_v11  ;;  %3663 = vmatprep.subr.mxu0 %v265_v12  ;;  %v317_v9 = vld [vmem:[#allocation6 + $0x858] sm:$0xff]  ;;  %v332_v12 = vld [vmem:[#allocation6 + $0x8d0] sm:$0xff] }
  0x93   :  { %3698 = vmatprep.subr.mxu1 %v297_v14  ;;  %3664 = vmatpush3.msra.mxu0 %v249_v15  ;;  %v349_v11 = vld [vmem:[#allocation6 + $0x958] sm:$0xff]  ;;  %v364_v14 = vld [vmem:[#allocation6 + $0x9d0] sm:$0xff] }
  0x94   :  { %3699 = vmatpush3.msra.mxu1 %v281_v17  ;;  %3665 = vmatprep.subr.mxu0 %v264_v18  ;;  %v316_v15 = vld [vmem:[#allocation6 + $0x850] sm:$0xff]  ;;  %v331_v18 = vld [vmem:[#allocation6 + $0x8c8] sm:$0xff] }
  0x95   :  { %3700 = vmatprep.subr.mxu1 %v296_v19  ;;  %3666 = vmatpush3.msra.mxu0 %v248_v20  ;;  %v348_v17 = vld [vmem:[#allocation6 + $0x950] sm:$0xff]  ;;  %v363_v19 = vld [vmem:[#allocation6 + $0x9c8] sm:$0xff] }
  0x96   :  { %3701 = vmatpush3.msra.mxu1 %v280_v21  ;;  %3667 = vmatprep.subr.mxu0 %v263_v22  ;;  %v315_v20 = vld [vmem:[#allocation6 + $0x848] sm:$0xff]  ;;  %v330_v22 = vld [vmem:[#allocation6 + $0x8c0] sm:$0xff] }
  0x97   :  { %3702 = vmatprep.subr.mxu1 %v295_v47  ;;  %3668 = vmatpush3.msra.mxu0 %v247_v23  ;;  %v347_v21 = vld [vmem:[#allocation6 + $0x948] sm:$0xff]  ;;  %v362_v47 = vld [vmem:[#allocation6 + $0x9c0] sm:$0xff] }
  0x98   :  { %3703 = vmatpush3.msra.mxu1 %v279_v25  ;;  %3669 = vmatprep.subr.mxu0 %v262_v26  ;;  %v314_v23 = vld [vmem:[#allocation6 + $0x840] sm:$0xff]  ;;  %v329_v26 = vld [vmem:[#allocation6 + $0x8b8] sm:$0xff] }
  0x99   :  { %3704 = vmatprep.subr.mxu1 %v294_v27  ;;  %3670 = vmatpush3.msra.mxu0 %v246_v28  ;;  %v346_v25 = vld [vmem:[#allocation6 + $0x940] sm:$0xff]  ;;  %v361_v27 = vld [vmem:[#allocation6 + $0x9b8] sm:$0xff] }
  0x9a   :  { %3705 = vmatpush3.msra.mxu1 %v278_v29  ;;  %3671 = vmatprep.subr.mxu0 %v261_v30  ;;  %v313_v28 = vld [vmem:[#allocation6 + $0x838] sm:$0xff]  ;;  %v328_v30 = vld [vmem:[#allocation6 + $0x8b0] sm:$0xff] }
  0x9b   :  { %3706 = vmatprep.subr.mxu1 %v293_v31  ;;  %3672 = vmatpush3.msra.mxu0 %v245_v32  ;;  %v345_v29 = vld [vmem:[#allocation6 + $0x938] sm:$0xff]  ;;  %v360_v31 = vld [vmem:[#allocation6 + $0x9b0] sm:$0xff] }
  0x9c   :  { %3707 = vmatpush3.msra.mxu1 %v277_v33  ;;  %3673 = vmatprep.subr.mxu0 %v260_v59  ;;  %v312_v32 = vld [vmem:[#allocation6 + $0x830] sm:$0xff]  ;;  %v327_v59 = vld [vmem:[#allocation6 + $0x8a8] sm:$0xff] }
  0x9d   :  { %3708 = vmatprep.subr.mxu1 %v292_v34  ;;  %3674 = vmatpush3.msra.mxu0 %v244_v35  ;;  %v344_v33 = vld [vmem:[#allocation6 + $0x930] sm:$0xff]  ;;  %v359_v34 = vld [vmem:[#allocation6 + $0x9a8] sm:$0xff] }
  0x9e   :  { %3709 = vmatpush3.msra.mxu1 %v276_v36  ;;  %3675 = vmatprep.subr.mxu0 %v259_v37  ;;  %v311_v35 = vld [vmem:[#allocation6 + $0x828] sm:$0xff]  ;;  %v326_v37 = vld [vmem:[#allocation6 + $0x8a0] sm:$0xff] }
  0x9f   :  { %3710 = vmatprep.subr.mxu1 %v291_v38  ;;  %3676 = vmatpush3.msra.mxu0 %v243_v39  ;;  %v343_v36 = vld [vmem:[#allocation6 + $0x928] sm:$0xff]  ;;  %v358_v38 = vld [vmem:[#allocation6 + $0x9a0] sm:$0xff] }
  0xa0   :  { %3711 = vmatpush3.msra.mxu1 %v275_v40  ;;  %3677 = vmatprep.subr.mxu0 %v258_v41  ;;  %v310_v39 = vld [vmem:[#allocation6 + $0x820] sm:$0xff]  ;;  %v325_v41 = vld [vmem:[#allocation6 + $0x898] sm:$0xff] }
  0xa1   :  { %3712 = vmatprep.subr.mxu1 %v290_v42  ;;  %3678 = vmatpush3.msra.mxu0 %v242_v44  ;;  %v342_v40 = vld [vmem:[#allocation6 + $0x920] sm:$0xff]  ;;  %v357_v42 = vld [vmem:[#allocation6 + $0x998] sm:$0xff] }
  0xa2   :  { %1804 = vmatprep.mubr.f32.mxu0 %v1075_v43  ;;  %3713 = vmatpush3.msra.mxu1 %v274_v46  ;;  %v309_v43 = vld [vmem:[#allocation6 + $0x818] sm:$0xff]  ;;  %v356_v46 = vld [vmem:[#allocation6 + $0x990] sm:$0xff] }
  0xa3   :  { %1805 = vmatmul.mubr.f32.vlgmr.msra.gmra.mxu0 %v1071_v45  ;;  %1874 = vmatprep.mubr.f32.mxu1 %v1083_v48  ;;  %v341_v44 = vld [vmem:[#allocation6 + $0x918] sm:$0xff]  ;;  %v324_v45 = vld [vmem:[#allocation6 + $0x890] sm:$0xff] }
  0xa4   :  { %3717 = vmatprep.subr.mxu0 %v337_v49  ;;  %3752 = vmatprep.subr.mxu1 %v369_v51  ;;  %v308_v48 = vld [vmem:[#allocation6 + $0x810] sm:$0xff]  ;;  %v323_v51 = vld [vmem:[#allocation6 + $0x888] sm:$0xff] }
  0xa5   :  { %1875 = vmatmul.mubr.f32.vlgmr.msra.gmra.mxu1 %v1079_v50  ;;  %3718 = vmatpush3.msra.mxu0 %v321_v52  ;;  %v340_v49 = vld [vmem:[#allocation6 + $0x910] sm:$0xff]  ;;  %v355_v52 = vld [vmem:[#allocation6 + $0x988] sm:$0xff] }
  0xa6   :  { %3753 = vmatpush3.msra.mxu1 %v353_v53  ;;  %3719 = vmatprep.subr.mxu0 %v336_v54  ;;  %v4651_v50 = vld [vmem:[#allocation3 + $0x10] sm:$0xff]  ;;  %v307_v53 = vld [vmem:[#allocation6 + $0x808] sm:$0xff] }
  0xa7   :  { %3754 = vmatprep.subr.mxu1 %v368_v55  ;;  %3720 = vmatpush3.msra.mxu0 %v320_v57  ;;  %v339_v54 = vld [vmem:[#allocation6 + $0x908] sm:$0xff]  ;;  %v322_v55 = vld [vmem:[#allocation6 + $0x880] sm:$0xff] }
  0xa8   :  { %3755 = vmatpush3.msra.mxu1 %v352_v58  ;;  %3721 = vmatprep.subr.mxu0 %v335_v61  ;;  %v354_v57 = vld [vmem:[#allocation6 + $0x980] sm:$0xff]  ;;  %v1091_v58 = vrot.slane %v4651_v50, %v4592_v56 }
  0xa9   :  { %3756 = vmatprep.subr.mxu1 %v367_v62  ;;  %3722 = vmatpush3.msra.mxu0 %v319_v24  ;;  %v306_v61 = vld [vmem:[#allocation6 + $0x800] sm:$0xff]  ;;  %v1087_v62 = vrot.slane %v4651_v50, %v4597_v60 }
  0xaa   :  { %3757 = vmatpush3.msra.mxu1 %v351_v0  ;;  %3723 = vmatprep.subr.mxu0 %v334_v1  ;;  %v338_v24 = vld [vmem:[#allocation6 + $0x900] sm:$0xff]  ;;  %v1099_v0 = vrot.slane %v4651_v50, %v4600_v63  ;;  %v401_v1 = vld [vmem:[#allocation6 + $0xaf8] sm:$0xff] }
  0xab   :  { %3758 = vmatprep.subr.mxu1 %v366_v3  ;;  %3724 = vmatpush3.msra.mxu0 %v318_v4  ;;  %v1095_v3 = vrot.slane %v4651_v50, %v4603_v2  ;;  %v433_v4 = vld [vmem:[#allocation6 + $0xbf8] sm:$0xff] }
  0xac   :  { %3759 = vmatpush3.msra.mxu1 %v350_v5  ;;  %3725 = vmatprep.subr.mxu0 %v333_v6  ;;  %v385_v5 = vld [vmem:[#allocation6 + $0xa78] sm:$0xff] }
  0xad   :  { %3760 = vmatprep.subr.mxu1 %v365_v8  ;;  %3726 = vmatpush3.msra.mxu0 %v317_v9  ;;  %v417_v6 = vld [vmem:[#allocation6 + $0xb78] sm:$0xff]  ;;  %v400_v8 = vld [vmem:[#allocation6 + $0xaf0] sm:$0xff] }
  0xae   :  { %3761 = vmatpush3.msra.mxu1 %v349_v11  ;;  %3727 = vmatprep.subr.mxu0 %v332_v12  ;;  %v432_v9 = vld [vmem:[#allocation6 + $0xbf0] sm:$0xff] }
  0xaf   :  { %3762 = vmatprep.subr.mxu1 %v364_v14  ;;  %3728 = vmatpush3.msra.mxu0 %v316_v15  ;;  %v384_v11 = vld [vmem:[#allocation6 + $0xa70] sm:$0xff]  ;;  %v399_v14 = vld [vmem:[#allocation6 + $0xae8] sm:$0xff] }
  0xb0   :  { %3763 = vmatpush3.msra.mxu1 %v348_v17  ;;  %3729 = vmatprep.subr.mxu0 %v331_v18  ;;  %v416_v12 = vld [vmem:[#allocation6 + $0xb70] sm:$0xff]  ;;  %v431_v15 = vld [vmem:[#allocation6 + $0xbe8] sm:$0xff] }
  0xb1   :  { %3764 = vmatprep.subr.mxu1 %v363_v19  ;;  %3730 = vmatpush3.msra.mxu0 %v315_v20  ;;  %v383_v17 = vld [vmem:[#allocation6 + $0xa68] sm:$0xff]  ;;  %v398_v19 = vld [vmem:[#allocation6 + $0xae0] sm:$0xff] }
  0xb2   :  { %3765 = vmatpush3.msra.mxu1 %v347_v21  ;;  %3731 = vmatprep.subr.mxu0 %v330_v22  ;;  %v415_v18 = vld [vmem:[#allocation6 + $0xb68] sm:$0xff]  ;;  %v430_v20 = vld [vmem:[#allocation6 + $0xbe0] sm:$0xff] }
  0xb3   :  { %3766 = vmatprep.subr.mxu1 %v362_v47  ;;  %3732 = vmatpush3.msra.mxu0 %v314_v23  ;;  %v382_v21 = vld [vmem:[#allocation6 + $0xa60] sm:$0xff]  ;;  %v397_v47 = vld [vmem:[#allocation6 + $0xad8] sm:$0xff] }
  0xb4   :  { %3767 = vmatpush3.msra.mxu1 %v346_v25  ;;  %3733 = vmatprep.subr.mxu0 %v329_v26  ;;  %v414_v22 = vld [vmem:[#allocation6 + $0xb60] sm:$0xff]  ;;  %v429_v23 = vld [vmem:[#allocation6 + $0xbd8] sm:$0xff] }
  0xb5   :  { %3768 = vmatprep.subr.mxu1 %v361_v27  ;;  %3734 = vmatpush3.msra.mxu0 %v313_v28  ;;  %v381_v25 = vld [vmem:[#allocation6 + $0xa58] sm:$0xff]  ;;  %v396_v27 = vld [vmem:[#allocation6 + $0xad0] sm:$0xff] }
  0xb6   :  { %3769 = vmatpush3.msra.mxu1 %v345_v29  ;;  %3735 = vmatprep.subr.mxu0 %v328_v30  ;;  %v413_v26 = vld [vmem:[#allocation6 + $0xb58] sm:$0xff]  ;;  %v428_v28 = vld [vmem:[#allocation6 + $0xbd0] sm:$0xff] }
  0xb7   :  { %3770 = vmatprep.subr.mxu1 %v360_v31  ;;  %3736 = vmatpush3.msra.mxu0 %v312_v32  ;;  %v380_v29 = vld [vmem:[#allocation6 + $0xa50] sm:$0xff]  ;;  %v395_v31 = vld [vmem:[#allocation6 + $0xac8] sm:$0xff] }
  0xb8   :  { %3771 = vmatpush3.msra.mxu1 %v344_v33  ;;  %3737 = vmatprep.subr.mxu0 %v327_v59  ;;  %v412_v30 = vld [vmem:[#allocation6 + $0xb50] sm:$0xff]  ;;  %v427_v32 = vld [vmem:[#allocation6 + $0xbc8] sm:$0xff] }
  0xb9   :  { %3772 = vmatprep.subr.mxu1 %v359_v34  ;;  %3738 = vmatpush3.msra.mxu0 %v311_v35  ;;  %v379_v33 = vld [vmem:[#allocation6 + $0xa48] sm:$0xff]  ;;  %v394_v34 = vld [vmem:[#allocation6 + $0xac0] sm:$0xff] }
  0xba   :  { %3773 = vmatpush3.msra.mxu1 %v343_v36  ;;  %3739 = vmatprep.subr.mxu0 %v326_v37  ;;  %v411_v59 = vld [vmem:[#allocation6 + $0xb48] sm:$0xff]  ;;  %v426_v35 = vld [vmem:[#allocation6 + $0xbc0] sm:$0xff] }
  0xbb   :  { %3774 = vmatprep.subr.mxu1 %v358_v38  ;;  %3740 = vmatpush3.msra.mxu0 %v310_v39  ;;  %v378_v36 = vld [vmem:[#allocation6 + $0xa40] sm:$0xff]  ;;  %v393_v38 = vld [vmem:[#allocation6 + $0xab8] sm:$0xff] }
  0xbc   :  { %3775 = vmatpush3.msra.mxu1 %v342_v40  ;;  %3741 = vmatprep.subr.mxu0 %v325_v41  ;;  %v410_v37 = vld [vmem:[#allocation6 + $0xb40] sm:$0xff]  ;;  %v425_v39 = vld [vmem:[#allocation6 + $0xbb8] sm:$0xff] }
  0xbd   :  { %3776 = vmatprep.subr.mxu1 %v357_v42  ;;  %3742 = vmatpush3.msra.mxu0 %v309_v43  ;;  %v377_v40 = vld [vmem:[#allocation6 + $0xa38] sm:$0xff]  ;;  %v392_v42 = vld [vmem:[#allocation6 + $0xab0] sm:$0xff] }
  0xbe   :  { %3777 = vmatpush3.msra.mxu1 %v341_v44  ;;  %3743 = vmatprep.subr.mxu0 %v324_v45  ;;  %v409_v41 = vld [vmem:[#allocation6 + $0xb38] sm:$0xff]  ;;  %v424_v43 = vld [vmem:[#allocation6 + $0xbb0] sm:$0xff] }
  0xbf   :  { %3778 = vmatprep.subr.mxu1 %v356_v46  ;;  %3744 = vmatpush3.msra.mxu0 %v308_v48  ;;  %v376_v44 = vld [vmem:[#allocation6 + $0xa30] sm:$0xff]  ;;  %v391_v46 = vld [vmem:[#allocation6 + $0xaa8] sm:$0xff] }
  0xc0   :  { %3779 = vmatpush3.msra.mxu1 %v340_v49  ;;  %3745 = vmatprep.subr.mxu0 %v323_v51  ;;  %v408_v45 = vld [vmem:[#allocation6 + $0xb30] sm:$0xff]  ;;  %v423_v48 = vld [vmem:[#allocation6 + $0xba8] sm:$0xff] }
  0xc1   :  { %3780 = vmatprep.subr.mxu1 %v355_v52  ;;  %3746 = vmatpush3.msra.mxu0 %v307_v53  ;;  %v375_v49 = vld [vmem:[#allocation6 + $0xa28] sm:$0xff]  ;;  %v390_v52 = vld [vmem:[#allocation6 + $0xaa0] sm:$0xff] }
  0xc2   :  { %3781 = vmatpush3.msra.mxu1 %v339_v54  ;;  %3747 = vmatprep.subr.mxu0 %v322_v55  ;;  %v407_v51 = vld [vmem:[#allocation6 + $0xb28] sm:$0xff]  ;;  %v422_v53 = vld [vmem:[#allocation6 + $0xba0] sm:$0xff] }
  0xc3   :  { %3782 = vmatprep.subr.mxu1 %v354_v57  ;;  %3748 = vmatpush3.msra.mxu0 %v306_v61  ;;  %v374_v54 = vld [vmem:[#allocation6 + $0xa20] sm:$0xff]  ;;  %v389_v57 = vld [vmem:[#allocation6 + $0xa98] sm:$0xff] }
  0xc4   :  { %1944 = vmatprep.mubr.f32.mxu0 %v1091_v58  ;;  %3783 = vmatpush3.msra.mxu1 %v338_v24  ;;  %v406_v55 = vld [vmem:[#allocation6 + $0xb20] sm:$0xff]  ;;  %v421_v58 = vld [vmem:[#allocation6 + $0xb98] sm:$0xff]  ;;  %v388_v24 = vld [vmem:[#allocation6 + $0xa90] sm:$0xff] }
  0xc5   :  { %1945 = vmatmul.mubr.f32.vlgmr.msra.gmra.mxu0 %v1087_v62  ;;  %2014 = vmatprep.mubr.f32.mxu1 %v1099_v0  ;;  %v373_v61 = vld [vmem:[#allocation6 + $0xa18] sm:$0xff]  ;;  %v420_v0 = vld [vmem:[#allocation6 + $0xb90] sm:$0xff] }
  0xc6   :  { %3787 = vmatprep.subr.mxu0 %v401_v1  ;;  %3822 = vmatprep.subr.mxu1 %v433_v4  ;;  %v405_v62 = vld [vmem:[#allocation6 + $0xb18] sm:$0xff]  ;;  %v372_v1 = vld [vmem:[#allocation6 + $0xa10] sm:$0xff]  ;;  %v387_v4 = vld [vmem:[#allocation6 + $0xa88] sm:$0xff] }
  0xc7   :  { %2015 = vmatmul.mubr.f32.vlgmr.msra.gmra.mxu1 %v1095_v3  ;;  %3788 = vmatpush3.msra.mxu0 %v385_v5  ;;  %v404_v3 = vld [vmem:[#allocation6 + $0xb10] sm:$0xff]  ;;  %v419_v5 = vld [vmem:[#allocation6 + $0xb88] sm:$0xff] }
  0xc8   :  { %3823 = vmatpush3.msra.mxu1 %v417_v6  ;;  %3789 = vmatprep.subr.mxu0 %v400_v8  ;;  %v371_v6 = vld [vmem:[#allocation6 + $0xa08] sm:$0xff] }
  0xc9   :  { %3824 = vmatprep.subr.mxu1 %v432_v9  ;;  %3790 = vmatpush3.msra.mxu0 %v384_v11  ;;  %v403_v8 = vld [vmem:[#allocation6 + $0xb08] sm:$0xff]  ;;  %v386_v9 = vld [vmem:[#allocation6 + $0xa80] sm:$0xff] }
  0xca   :  { %3825 = vmatpush3.msra.mxu1 %v416_v12  ;;  %3791 = vmatprep.subr.mxu0 %v399_v14  ;;  %v418_v11 = vld [vmem:[#allocation6 + $0xb80] sm:$0xff]  ;;  %v1107_v12 = vrot.slane %v4651_v50, %v4614_v7 }
  0xcb   :  { %3826 = vmatprep.subr.mxu1 %v431_v15  ;;  %3792 = vmatpush3.msra.mxu0 %v383_v17  ;;  %v370_v14 = vld [vmem:[#allocation6 + $0xa00] sm:$0xff]  ;;  %v1103_v15 = vrot.slane %v4651_v50, %v4617_v10 }
  0xcc   :  { %3827 = vmatpush3.msra.mxu1 %v415_v18  ;;  %3793 = vmatprep.subr.mxu0 %v398_v19  ;;  %v402_v17 = vld [vmem:[#allocation6 + $0xb00] sm:$0xff]  ;;  %v1115_v18 = vrot.slane %v4651_v50, %v4620_v13  ;;  %v465_v19 = vld [vmem:[#allocation6 + $0xcf8] sm:$0xff] }
  0xcd   :  { %3828 = vmatprep.subr.mxu1 %v430_v20  ;;  %3794 = vmatpush3.msra.mxu0 %v382_v21  ;;  %v1111_v20 = vrot.slane %v4651_v50, %v4623_v16  ;;  %v497_v21 = vld [vmem:[#allocation6 + $0xdf8] sm:$0xff]  ;;  %v447_v50 = vld [vmem:[#allocation6 + $0xc68] sm:$0xff] }
  0xce   :  { %3829 = vmatpush3.msra.mxu1 %v414_v22  ;;  %3795 = vmatprep.subr.mxu0 %v397_v47  ;;  %v449_v22 = vld [vmem:[#allocation6 + $0xc78] sm:$0xff] }
  0xcf   :  { %3830 = vmatprep.subr.mxu1 %v429_v23  ;;  %3796 = vmatpush3.msra.mxu0 %v381_v25  ;;  %v481_v47 = vld [vmem:[#allocation6 + $0xd78] sm:$0xff]  ;;  %v464_v23 = vld [vmem:[#allocation6 + $0xcf0] sm:$0xff] }
  0xd0   :  { %3831 = vmatpush3.msra.mxu1 %v413_v26  ;;  %3797 = vmatprep.subr.mxu0 %v396_v27  ;;  %v496_v25 = vld [vmem:[#allocation6 + $0xdf0] sm:$0xff] }
  0xd1   :  { %3832 = vmatprep.subr.mxu1 %v428_v28  ;;  %3798 = vmatpush3.msra.mxu0 %v380_v29  ;;  %v448_v26 = vld [vmem:[#allocation6 + $0xc70] sm:$0xff]  ;;  %v463_v28 = vld [vmem:[#allocation6 + $0xce8] sm:$0xff] }
  0xd2   :  { %3833 = vmatpush3.msra.mxu1 %v412_v30  ;;  %3799 = vmatprep.subr.mxu0 %v395_v31  ;;  %v480_v27 = vld [vmem:[#allocation6 + $0xd70] sm:$0xff]  ;;  %v495_v29 = vld [vmem:[#allocation6 + $0xde8] sm:$0xff]  ;;  %v462_v31 = vld [vmem:[#allocation6 + $0xce0] sm:$0xff] }
  0xd3   :  { %3834 = vmatprep.subr.mxu1 %v427_v32  ;;  %3800 = vmatpush3.msra.mxu0 %v379_v33  ;;  %v479_v30 = vld [vmem:[#allocation6 + $0xd68] sm:$0xff]  ;;  %v494_v32 = vld [vmem:[#allocation6 + $0xde0] sm:$0xff] }
  0xd4   :  { %3835 = vmatpush3.msra.mxu1 %v411_v59  ;;  %3801 = vmatprep.subr.mxu0 %v394_v34  ;;  %v446_v33 = vld [vmem:[#allocation6 + $0xc60] sm:$0xff]  ;;  %v461_v34 = vld [vmem:[#allocation6 + $0xcd8] sm:$0xff] }
  0xd5   :  { %3836 = vmatprep.subr.mxu1 %v426_v35  ;;  %3802 = vmatpush3.msra.mxu0 %v378_v36  ;;  %v478_v59 = vld [vmem:[#allocation6 + $0xd60] sm:$0xff]  ;;  %v493_v35 = vld [vmem:[#allocation6 + $0xdd8] sm:$0xff] }
  0xd6   :  { %3837 = vmatpush3.msra.mxu1 %v410_v37  ;;  %3803 = vmatprep.subr.mxu0 %v393_v38  ;;  %v445_v36 = vld [vmem:[#allocation6 + $0xc58] sm:$0xff]  ;;  %v460_v38 = vld [vmem:[#allocation6 + $0xcd0] sm:$0xff] }
  0xd7   :  { %3838 = vmatprep.subr.mxu1 %v425_v39  ;;  %3804 = vmatpush3.msra.mxu0 %v377_v40  ;;  %v477_v37 = vld [vmem:[#allocation6 + $0xd58] sm:$0xff]  ;;  %v492_v39 = vld [vmem:[#allocation6 + $0xdd0] sm:$0xff] }
  0xd8   :  { %3839 = vmatpush3.msra.mxu1 %v409_v41  ;;  %3805 = vmatprep.subr.mxu0 %v392_v42  ;;  %v444_v40 = vld [vmem:[#allocation6 + $0xc50] sm:$0xff]  ;;  %v459_v42 = vld [vmem:[#allocation6 + $0xcc8] sm:$0xff] }
  0xd9   :  { %3840 = vmatprep.subr.mxu1 %v424_v43  ;;  %3806 = vmatpush3.msra.mxu0 %v376_v44  ;;  %v476_v41 = vld [vmem:[#allocation6 + $0xd50] sm:$0xff]  ;;  %v491_v43 = vld [vmem:[#allocation6 + $0xdc8] sm:$0xff] }
  0xda   :  { %3841 = vmatpush3.msra.mxu1 %v408_v45  ;;  %3807 = vmatprep.subr.mxu0 %v391_v46  ;;  %v443_v44 = vld [vmem:[#allocation6 + $0xc48] sm:$0xff]  ;;  %v458_v46 = vld [vmem:[#allocation6 + $0xcc0] sm:$0xff] }
  0xdb   :  { %3842 = vmatprep.subr.mxu1 %v423_v48  ;;  %3808 = vmatpush3.msra.mxu0 %v375_v49  ;;  %v475_v45 = vld [vmem:[#allocation6 + $0xd48] sm:$0xff]  ;;  %v490_v48 = vld [vmem:[#allocation6 + $0xdc0] sm:$0xff] }
  0xdc   :  { %3843 = vmatpush3.msra.mxu1 %v407_v51  ;;  %3809 = vmatprep.subr.mxu0 %v390_v52  ;;  %v442_v49 = vld [vmem:[#allocation6 + $0xc40] sm:$0xff]  ;;  %v457_v52 = vld [vmem:[#allocation6 + $0xcb8] sm:$0xff] }
  0xdd   :  { %3844 = vmatprep.subr.mxu1 %v422_v53  ;;  %3810 = vmatpush3.msra.mxu0 %v374_v54  ;;  %v474_v51 = vld [vmem:[#allocation6 + $0xd40] sm:$0xff]  ;;  %v489_v53 = vld [vmem:[#allocation6 + $0xdb8] sm:$0xff] }
  0xde   :  { %3845 = vmatpush3.msra.mxu1 %v406_v55  ;;  %3811 = vmatprep.subr.mxu0 %v389_v57  ;;  %v441_v54 = vld [vmem:[#allocation6 + $0xc38] sm:$0xff]  ;;  %v456_v57 = vld [vmem:[#allocation6 + $0xcb0] sm:$0xff] }
  0xdf   :  { %3846 = vmatprep.subr.mxu1 %v421_v58  ;;  %3812 = vmatpush3.msra.mxu0 %v373_v61  ;;  %v473_v55 = vld [vmem:[#allocation6 + $0xd38] sm:$0xff]  ;;  %v488_v58 = vld [vmem:[#allocation6 + $0xdb0] sm:$0xff] }
  0xe0   :  { %3847 = vmatpush3.msra.mxu1 %v405_v62  ;;  %3813 = vmatprep.subr.mxu0 %v388_v24  ;;  %v440_v61 = vld [vmem:[#allocation6 + $0xc30] sm:$0xff]  ;;  %v455_v24 = vld [vmem:[#allocation6 + $0xca8] sm:$0xff] }
  0xe1   :  { %3848 = vmatprep.subr.mxu1 %v420_v0  ;;  %3814 = vmatpush3.msra.mxu0 %v372_v1  ;;  %v472_v62 = vld [vmem:[#allocation6 + $0xd30] sm:$0xff]  ;;  %v487_v0 = vld [vmem:[#allocation6 + $0xda8] sm:$0xff] }
  0xe2   :  { %3849 = vmatpush3.msra.mxu1 %v404_v3  ;;  %3815 = vmatprep.subr.mxu0 %v387_v4  ;;  %v439_v1 = vld [vmem:[#allocation6 + $0xc28] sm:$0xff]  ;;  %v454_v4 = vld [vmem:[#allocation6 + $0xca0] sm:$0xff] }
  0xe3   :  { %3850 = vmatprep.subr.mxu1 %v419_v5  ;;  %3816 = vmatpush3.msra.mxu0 %v371_v6  ;;  %v471_v3 = vld [vmem:[#allocation6 + $0xd28] sm:$0xff]  ;;  %v486_v5 = vld [vmem:[#allocation6 + $0xda0] sm:$0xff] }
  0xe4   :  { %3851 = vmatpush3.msra.mxu1 %v403_v8  ;;  %3817 = vmatprep.subr.mxu0 %v386_v9  ;;  %v438_v6 = vld [vmem:[#allocation6 + $0xc20] sm:$0xff]  ;;  %v453_v9 = vld [vmem:[#allocation6 + $0xc98] sm:$0xff] }
  0xe5   :  { %3852 = vmatprep.subr.mxu1 %v418_v11  ;;  %3818 = vmatpush3.msra.mxu0 %v370_v14  ;;  %v470_v8 = vld [vmem:[#allocation6 + $0xd20] sm:$0xff]  ;;  %v485_v11 = vld [vmem:[#allocation6 + $0xd98] sm:$0xff] }
  0xe6   :  { %2084 = vmatprep.mubr.f32.mxu0 %v1107_v12  ;;  %3853 = vmatpush3.msra.mxu1 %v402_v17  ;;  %v437_v12 = vld [vmem:[#allocation6 + $0xc18] sm:$0xff]  ;;  %v484_v17 = vld [vmem:[#allocation6 + $0xd90] sm:$0xff] }
  0xe7   :  { %2085 = vmatmul.mubr.f32.vlgmr.msra.gmra.mxu0 %v1103_v15  ;;  %2154 = vmatprep.mubr.f32.mxu1 %v1115_v18  ;;  %v469_v14 = vld [vmem:[#allocation6 + $0xd18] sm:$0xff]  ;;  %v452_v15 = vld [vmem:[#allocation6 + $0xc90] sm:$0xff] }
  0xe8   :  { %3857 = vmatprep.subr.mxu0 %v465_v19  ;;  %3892 = vmatprep.subr.mxu1 %v497_v21  ;;  %v436_v18 = vld [vmem:[#allocation6 + $0xc10] sm:$0xff]  ;;  %v451_v21 = vld [vmem:[#allocation6 + $0xc88] sm:$0xff] }
  0xe9   :  { %2155 = vmatmul.mubr.f32.vlgmr.msra.gmra.mxu1 %v1111_v20  ;;  %3858 = vmatpush3.msra.mxu0 %v449_v22  ;;  %v468_v19 = vld [vmem:[#allocation6 + $0xd10] sm:$0xff]  ;;  %v4669_v20 = vld [vmem:[#allocation3 + $0x18] sm:$0xff]  ;;  %v483_v22 = vld [vmem:[#allocation6 + $0xd88] sm:$0xff] }
  0xea   :  { %3893 = vmatpush3.msra.mxu1 %v481_v47  ;;  %3859 = vmatprep.subr.mxu0 %v464_v23  ;;  %v435_v47 = vld [vmem:[#allocation6 + $0xc08] sm:$0xff] }
  0xeb   :  { %3894 = vmatprep.subr.mxu1 %v496_v25  ;;  %3860 = vmatpush3.msra.mxu0 %v448_v26  ;;  %v467_v23 = vld [vmem:[#allocation6 + $0xd08] sm:$0xff]  ;;  %v450_v25 = vld [vmem:[#allocation6 + $0xc80] sm:$0xff] }
  0xec   :  { %3895 = vmatpush3.msra.mxu1 %v480_v27  ;;  %3861 = vmatprep.subr.mxu0 %v463_v28  ;;  %v482_v26 = vld [vmem:[#allocation6 + $0xd80] sm:$0xff]  ;;  %v1123_v27 = vrot.slane %v4669_v20, %v4592_v56 }
  0xed   :  { %3896 = vmatprep.subr.mxu1 %v495_v29  ;;  %3862 = vmatpush3.msra.mxu0 %v447_v50  ;;  %v434_v28 = vld [vmem:[#allocation6 + $0xc00] sm:$0xff]  ;;  %v1119_v29 = vrot.slane %v4669_v20, %v4597_v60 }
  0xee   :  { %3897 = vmatpush3.msra.mxu1 %v479_v30  ;;  %3863 = vmatprep.subr.mxu0 %v462_v31  ;;  %v466_v50 = vld [vmem:[#allocation6 + $0xd00] sm:$0xff]  ;;  %v1131_v30 = vrot.slane %v4669_v20, %v4600_v63  ;;  %v529_v31 = vld [vmem:[#allocation6 + $0xef8] sm:$0xff] }
  0xef   :  { %3898 = vmatprep.subr.mxu1 %v494_v32  ;;  %3864 = vmatpush3.msra.mxu0 %v446_v33  ;;  %v1127_v32 = vrot.slane %v4669_v20, %v4603_v2  ;;  %v561_v33 = vld [vmem:[#allocation6 + $0xff8] sm:$0xff] }
  0xf0   :  { %3899 = vmatpush3.msra.mxu1 %v478_v59  ;;  %3865 = vmatprep.subr.mxu0 %v461_v34  ;;  %v513_v59 = vld [vmem:[#allocation6 + $0xe78] sm:$0xff] }
  0xf1   :  { %3900 = vmatprep.subr.mxu1 %v493_v35  ;;  %3866 = vmatpush3.msra.mxu0 %v445_v36  ;;  %v545_v34 = vld [vmem:[#allocation6 + $0xf78] sm:$0xff]  ;;  %v528_v35 = vld [vmem:[#allocation6 + $0xef0] sm:$0xff] }
  0xf2   :  { %3901 = vmatpush3.msra.mxu1 %v477_v37  ;;  %3867 = vmatprep.subr.mxu0 %v460_v38  ;;  %v560_v36 = vld [vmem:[#allocation6 + $0xff0] sm:$0xff] }
  0xf3   :  { %3902 = vmatprep.subr.mxu1 %v492_v39  ;;  %3868 = vmatpush3.msra.mxu0 %v444_v40  ;;  %v512_v37 = vld [vmem:[#allocation6 + $0xe70] sm:$0xff]  ;;  %v527_v39 = vld [vmem:[#allocation6 + $0xee8] sm:$0xff] }
  0xf4   :  { %3903 = vmatpush3.msra.mxu1 %v476_v41  ;;  %3869 = vmatprep.subr.mxu0 %v459_v42  ;;  %v544_v38 = vld [vmem:[#allocation6 + $0xf70] sm:$0xff]  ;;  %v559_v40 = vld [vmem:[#allocation6 + $0xfe8] sm:$0xff] }
  0xf5   :  { %3904 = vmatprep.subr.mxu1 %v491_v43  ;;  %3870 = vmatpush3.msra.mxu0 %v443_v44  ;;  %v511_v41 = vld [vmem:[#allocation6 + $0xe68] sm:$0xff]  ;;  %v526_v43 = vld [vmem:[#allocation6 + $0xee0] sm:$0xff] }
  0xf6   :  { %3905 = vmatpush3.msra.mxu1 %v475_v45  ;;  %3871 = vmatprep.subr.mxu0 %v458_v46  ;;  %v543_v42 = vld [vmem:[#allocation6 + $0xf68] sm:$0xff]  ;;  %v558_v44 = vld [vmem:[#allocation6 + $0xfe0] sm:$0xff] }
  0xf7   :  { %3906 = vmatprep.subr.mxu1 %v490_v48  ;;  %3872 = vmatpush3.msra.mxu0 %v442_v49  ;;  %v510_v45 = vld [vmem:[#allocation6 + $0xe60] sm:$0xff]  ;;  %v525_v48 = vld [vmem:[#allocation6 + $0xed8] sm:$0xff] }
  0xf8   :  { %3907 = vmatpush3.msra.mxu1 %v474_v51  ;;  %3873 = vmatprep.subr.mxu0 %v457_v52  ;;  %v542_v46 = vld [vmem:[#allocation6 + $0xf60] sm:$0xff]  ;;  %v557_v49 = vld [vmem:[#allocation6 + $0xfd8] sm:$0xff] }
  0xf9   :  { %3908 = vmatprep.subr.mxu1 %v489_v53  ;;  %3874 = vmatpush3.msra.mxu0 %v441_v54  ;;  %v509_v51 = vld [vmem:[#allocation6 + $0xe58] sm:$0xff]  ;;  %v524_v53 = vld [vmem:[#allocation6 + $0xed0] sm:$0xff] }
  0xfa   :  { %3909 = vmatpush3.msra.mxu1 %v473_v55  ;;  %3875 = vmatprep.subr.mxu0 %v456_v57  ;;  %v541_v52 = vld [vmem:[#allocation6 + $0xf58] sm:$0xff]  ;;  %v556_v54 = vld [vmem:[#allocation6 + $0xfd0] sm:$0xff] }
  0xfb   :  { %3910 = vmatprep.subr.mxu1 %v488_v58  ;;  %3876 = vmatpush3.msra.mxu0 %v440_v61  ;;  %v508_v55 = vld [vmem:[#allocation6 + $0xe50] sm:$0xff]  ;;  %v523_v58 = vld [vmem:[#allocation6 + $0xec8] sm:$0xff] }
  0xfc   :  { %3911 = vmatpush3.msra.mxu1 %v472_v62  ;;  %3877 = vmatprep.subr.mxu0 %v455_v24  ;;  %v540_v57 = vld [vmem:[#allocation6 + $0xf50] sm:$0xff]  ;;  %v555_v61 = vld [vmem:[#allocation6 + $0xfc8] sm:$0xff] }
  0xfd   :  { %3912 = vmatprep.subr.mxu1 %v487_v0  ;;  %3878 = vmatpush3.msra.mxu0 %v439_v1  ;;  %v507_v62 = vld [vmem:[#allocation6 + $0xe48] sm:$0xff]  ;;  %v522_v0 = vld [vmem:[#allocation6 + $0xec0] sm:$0xff] }
  0xfe   :  { %3913 = vmatpush3.msra.mxu1 %v471_v3  ;;  %3879 = vmatprep.subr.mxu0 %v454_v4  ;;  %v539_v24 = vld [vmem:[#allocation6 + $0xf48] sm:$0xff]  ;;  %v554_v1 = vld [vmem:[#allocation6 + $0xfc0] sm:$0xff] }
  0xff   :  { %3914 = vmatprep.subr.mxu1 %v486_v5  ;;  %3880 = vmatpush3.msra.mxu0 %v438_v6  ;;  %v506_v3 = vld [vmem:[#allocation6 + $0xe40] sm:$0xff]  ;;  %v521_v5 = vld [vmem:[#allocation6 + $0xeb8] sm:$0xff] }
 0x100   :  { %3915 = vmatpush3.msra.mxu1 %v470_v8  ;;  %3881 = vmatprep.subr.mxu0 %v453_v9  ;;  %v538_v4 = vld [vmem:[#allocation6 + $0xf40] sm:$0xff]  ;;  %v553_v6 = vld [vmem:[#allocation6 + $0xfb8] sm:$0xff] }
 0x101   :  { %3916 = vmatprep.subr.mxu1 %v485_v11  ;;  %3882 = vmatpush3.msra.mxu0 %v437_v12  ;;  %v505_v8 = vld [vmem:[#allocation6 + $0xe38] sm:$0xff]  ;;  %v520_v11 = vld [vmem:[#allocation6 + $0xeb0] sm:$0xff] }
 0x102   :  { %3917 = vmatpush3.msra.mxu1 %v469_v14  ;;  %3883 = vmatprep.subr.mxu0 %v452_v15  ;;  %v537_v9 = vld [vmem:[#allocation6 + $0xf38] sm:$0xff]  ;;  %v552_v12 = vld [vmem:[#allocation6 + $0xfb0] sm:$0xff] }
 0x103   :  { %3918 = vmatprep.subr.mxu1 %v484_v17  ;;  %3884 = vmatpush3.msra.mxu0 %v436_v18  ;;  %v504_v14 = vld [vmem:[#allocation6 + $0xe30] sm:$0xff]  ;;  %v519_v17 = vld [vmem:[#allocation6 + $0xea8] sm:$0xff] }
 0x104   :  { %3919 = vmatpush3.msra.mxu1 %v468_v19  ;;  %3885 = vmatprep.subr.mxu0 %v451_v21  ;;  %v536_v15 = vld [vmem:[#allocation6 + $0xf30] sm:$0xff]  ;;  %v551_v18 = vld [vmem:[#allocation6 + $0xfa8] sm:$0xff] }
 0x105   :  { %3920 = vmatprep.subr.mxu1 %v483_v22  ;;  %3886 = vmatpush3.msra.mxu0 %v435_v47  ;;  %v503_v19 = vld [vmem:[#allocation6 + $0xe28] sm:$0xff]  ;;  %v518_v22 = vld [vmem:[#allocation6 + $0xea0] sm:$0xff] }
 0x106   :  { %3921 = vmatpush3.msra.mxu1 %v467_v23  ;;  %3887 = vmatprep.subr.mxu0 %v450_v25  ;;  %v535_v21 = vld [vmem:[#allocation6 + $0xf28] sm:$0xff]  ;;  %v550_v47 = vld [vmem:[#allocation6 + $0xfa0] sm:$0xff] }
 0x107   :  { %3922 = vmatprep.subr.mxu1 %v482_v26  ;;  %3888 = vmatpush3.msra.mxu0 %v434_v28  ;;  %v502_v23 = vld [vmem:[#allocation6 + $0xe20] sm:$0xff]  ;;  %v517_v26 = vld [vmem:[#allocation6 + $0xe98] sm:$0xff] }
 0x108   :  { %2224 = vmatprep.mubr.f32.mxu0 %v1123_v27  ;;  %3923 = vmatpush3.msra.mxu1 %v466_v50  ;;  %v534_v25 = vld [vmem:[#allocation6 + $0xf20] sm:$0xff]  ;;  %v549_v27 = vld [vmem:[#allocation6 + $0xf98] sm:$0xff]  ;;  %v516_v50 = vld [vmem:[#allocation6 + $0xe90] sm:$0xff] }
 0x109   :  { %2225 = vmatmul.mubr.f32.vlgmr.msra.gmra.mxu0 %v1119_v29  ;;  %2294 = vmatprep.mubr.f32.mxu1 %v1131_v30  ;;  %v501_v28 = vld [vmem:[#allocation6 + $0xe18] sm:$0xff]  ;;  %v548_v30 = vld [vmem:[#allocation6 + $0xf90] sm:$0xff] }
 0x10a   :  { %3927 = vmatprep.subr.mxu0 %v529_v31  ;;  %3962 = vmatprep.subr.mxu1 %v561_v33  ;;  %v533_v29 = vld [vmem:[#allocation6 + $0xf18] sm:$0xff]  ;;  %v500_v31 = vld [vmem:[#allocation6 + $0xe10] sm:$0xff]  ;;  %v515_v33 = vld [vmem:[#allocation6 + $0xe88] sm:$0xff] }
 0x10b   :  { %2295 = vmatmul.mubr.f32.vlgmr.msra.gmra.mxu1 %v1127_v32  ;;  %3928 = vmatpush3.msra.mxu0 %v513_v59  ;;  %v532_v32 = vld [vmem:[#allocation6 + $0xf10] sm:$0xff]  ;;  %v547_v59 = vld [vmem:[#allocation6 + $0xf88] sm:$0xff] }
 0x10c   :  { %3963 = vmatpush3.msra.mxu1 %v545_v34  ;;  %3929 = vmatprep.subr.mxu0 %v528_v35  ;;  %v499_v34 = vld [vmem:[#allocation6 + $0xe08] sm:$0xff] }
 0x10d   :  { %3964 = vmatprep.subr.mxu1 %v560_v36  ;;  %3930 = vmatpush3.msra.mxu0 %v512_v37  ;;  %v531_v35 = vld [vmem:[#allocation6 + $0xf08] sm:$0xff]  ;;  %v514_v36 = vld [vmem:[#allocation6 + $0xe80] sm:$0xff] }
 0x10e   :  { %3965 = vmatpush3.msra.mxu1 %v544_v38  ;;  %3931 = vmatprep.subr.mxu0 %v527_v39  ;;  %v546_v37 = vld [vmem:[#allocation6 + $0xf80] sm:$0xff]  ;;  %v1139_v38 = vrot.slane %v4669_v20, %v4614_v7 }
 0x10f   :  { %3966 = vmatprep.subr.mxu1 %v559_v40  ;;  %3932 = vmatpush3.msra.mxu0 %v511_v41  ;;  %v498_v39 = vld [vmem:[#allocation6 + $0xe00] sm:$0xff]  ;;  %v1135_v40 = vrot.slane %v4669_v20, %v4617_v10 }
 0x110   :  { %3967 = vmatpush3.msra.mxu1 %v543_v42  ;;  %3933 = vmatprep.subr.mxu0 %v526_v43  ;;  %v530_v41 = vld [vmem:[#allocation6 + $0xf00] sm:$0xff]  ;;  %v1147_v42 = vrot.slane %v4669_v20, %v4620_v13  ;;  %v593_v43 = vld [vmem:[#allocation6 + $0x10f8] sm:$0xff] }
 0x111   :  { %3968 = vmatprep.subr.mxu1 %v558_v44  ;;  %3934 = vmatpush3.msra.mxu0 %v510_v45  ;;  %v1143_v44 = vrot.slane %v4669_v20, %v4623_v16  ;;  %v625_v45 = vld [vmem:[#allocation6 + $0x11f8] sm:$0xff]  ;;  %v575_v20 = vld [vmem:[#allocation6 + $0x1068] sm:$0xff] }
 0x112   :  { %3969 = vmatpush3.msra.mxu1 %v542_v46  ;;  %3935 = vmatprep.subr.mxu0 %v525_v48  ;;  %v577_v46 = vld [vmem:[#allocation6 + $0x1078] sm:$0xff] }
 0x113   :  { %3970 = vmatprep.subr.mxu1 %v557_v49  ;;  %3936 = vmatpush3.msra.mxu0 %v509_v51  ;;  %v609_v48 = vld [vmem:[#allocation6 + $0x1178] sm:$0xff]  ;;  %v592_v49 = vld [vmem:[#allocation6 + $0x10f0] sm:$0xff] }
 0x114   :  { %3971 = vmatpush3.msra.mxu1 %v541_v52  ;;  %3937 = vmatprep.subr.mxu0 %v524_v53  ;;  %v624_v51 = vld [vmem:[#allocation6 + $0x11f0] sm:$0xff] }
 0x115   :  { %3972 = vmatprep.subr.mxu1 %v556_v54  ;;  %3938 = vmatpush3.msra.mxu0 %v508_v55  ;;  %v576_v52 = vld [vmem:[#allocation6 + $0x1070] sm:$0xff]  ;;  %v591_v54 = vld [vmem:[#allocation6 + $0x10e8] sm:$0xff] }
 0x116   :  { %3973 = vmatpush3.msra.mxu1 %v540_v57  ;;  %3939 = vmatprep.subr.mxu0 %v523_v58  ;;  %v608_v53 = vld [vmem:[#allocation6 + $0x1170] sm:$0xff]  ;;  %v623_v55 = vld [vmem:[#allocation6 + $0x11e8] sm:$0xff]  ;;  %v590_v58 = vld [vmem:[#allocation6 + $0x10e0] sm:$0xff] }
 0x117   :  { %3974 = vmatprep.subr.mxu1 %v555_v61  ;;  %3940 = vmatpush3.msra.mxu0 %v507_v62  ;;  %v607_v57 = vld [vmem:[#allocation6 + $0x1168] sm:$0xff]  ;;  %v622_v61 = vld [vmem:[#allocation6 + $0x11e0] sm:$0xff] }
 0x118   :  { %3975 = vmatpush3.msra.mxu1 %v539_v24  ;;  %3941 = vmatprep.subr.mxu0 %v522_v0  ;;  %v574_v62 = vld [vmem:[#allocation6 + $0x1060] sm:$0xff]  ;;  %v589_v0 = vld [vmem:[#allocation6 + $0x10d8] sm:$0xff] }
 0x119   :  { %3976 = vmatprep.subr.mxu1 %v554_v1  ;;  %3942 = vmatpush3.msra.mxu0 %v506_v3  ;;  %v606_v24 = vld [vmem:[#allocation6 + $0x1160] sm:$0xff]  ;;  %v621_v1 = vld [vmem:[#allocation6 + $0x11d8] sm:$0xff] }
 0x11a   :  { %3977 = vmatpush3.msra.mxu1 %v538_v4  ;;  %3943 = vmatprep.subr.mxu0 %v521_v5  ;;  %v573_v3 = vld [vmem:[#allocation6 + $0x1058] sm:$0xff]  ;;  %v588_v5 = vld [vmem:[#allocation6 + $0x10d0] sm:$0xff] }
 0x11b   :  { %3978 = vmatprep.subr.mxu1 %v553_v6  ;;  %3944 = vmatpush3.msra.mxu0 %v505_v8  ;;  %v605_v4 = vld [vmem:[#allocation6 + $0x1158] sm:$0xff]  ;;  %v620_v6 = vld [vmem:[#allocation6 + $0x11d0] sm:$0xff] }
 0x11c   :  { %3979 = vmatpush3.msra.mxu1 %v537_v9  ;;  %3945 = vmatprep.subr.mxu0 %v520_v11  ;;  %v572_v8 = vld [vmem:[#allocation6 + $0x1050] sm:$0xff]  ;;  %v587_v11 = vld [vmem:[#allocation6 + $0x10c8] sm:$0xff] }
 0x11d   :  { %3980 = vmatprep.subr.mxu1 %v552_v12  ;;  %3946 = vmatpush3.msra.mxu0 %v504_v14  ;;  %v604_v9 = vld [vmem:[#allocation6 + $0x1150] sm:$0xff]  ;;  %v619_v12 = vld [vmem:[#allocation6 + $0x11c8] sm:$0xff] }
 0x11e   :  { %3981 = vmatpush3.msra.mxu1 %v536_v15  ;;  %3947 = vmatprep.subr.mxu0 %v519_v17  ;;  %v571_v14 = vld [vmem:[#allocation6 + $0x1048] sm:$0xff]  ;;  %v586_v17 = vld [vmem:[#allocation6 + $0x10c0] sm:$0xff] }
 0x11f   :  { %3982 = vmatprep.subr.mxu1 %v551_v18  ;;  %3948 = vmatpush3.msra.mxu0 %v503_v19  ;;  %v603_v15 = vld [vmem:[#allocation6 + $0x1148] sm:$0xff]  ;;  %v618_v18 = vld [vmem:[#allocation6 + $0x11c0] sm:$0xff] }
 0x120   :  { %3983 = vmatpush3.msra.mxu1 %v535_v21  ;;  %3949 = vmatprep.subr.mxu0 %v518_v22  ;;  %v570_v19 = vld [vmem:[#allocation6 + $0x1040] sm:$0xff]  ;;  %v585_v22 = vld [vmem:[#allocation6 + $0x10b8] sm:$0xff] }
 0x121   :  { %3984 = vmatprep.subr.mxu1 %v550_v47  ;;  %3950 = vmatpush3.msra.mxu0 %v502_v23  ;;  %v602_v21 = vld [vmem:[#allocation6 + $0x1140] sm:$0xff]  ;;  %v617_v47 = vld [vmem:[#allocation6 + $0x11b8] sm:$0xff] }
 0x122   :  { %3985 = vmatpush3.msra.mxu1 %v534_v25  ;;  %3951 = vmatprep.subr.mxu0 %v517_v26  ;;  %v569_v23 = vld [vmem:[#allocation6 + $0x1038] sm:$0xff]  ;;  %v584_v26 = vld [vmem:[#allocation6 + $0x10b0] sm:$0xff] }
 0x123   :  { %3986 = vmatprep.subr.mxu1 %v549_v27  ;;  %3952 = vmatpush3.msra.mxu0 %v501_v28  ;;  %v601_v25 = vld [vmem:[#allocation6 + $0x1138] sm:$0xff]  ;;  %v616_v27 = vld [vmem:[#allocation6 + $0x11b0] sm:$0xff] }
 0x124   :  { %3987 = vmatpush3.msra.mxu1 %v533_v29  ;;  %3953 = vmatprep.subr.mxu0 %v516_v50  ;;  %v568_v28 = vld [vmem:[#allocation6 + $0x1030] sm:$0xff]  ;;  %v583_v50 = vld [vmem:[#allocation6 + $0x10a8] sm:$0xff] }
 0x125   :  { %3988 = vmatprep.subr.mxu1 %v548_v30  ;;  %3954 = vmatpush3.msra.mxu0 %v500_v31  ;;  %v600_v29 = vld [vmem:[#allocation6 + $0x1130] sm:$0xff]  ;;  %v615_v30 = vld [vmem:[#allocation6 + $0x11a8] sm:$0xff] }
 0x126   :  { %3989 = vmatpush3.msra.mxu1 %v532_v32  ;;  %3955 = vmatprep.subr.mxu0 %v515_v33  ;;  %v567_v31 = vld [vmem:[#allocation6 + $0x1028] sm:$0xff]  ;;  %v582_v33 = vld [vmem:[#allocation6 + $0x10a0] sm:$0xff] }
 0x127   :  { %3990 = vmatprep.subr.mxu1 %v547_v59  ;;  %3956 = vmatpush3.msra.mxu0 %v499_v34  ;;  %v599_v32 = vld [vmem:[#allocation6 + $0x1128] sm:$0xff]  ;;  %v614_v59 = vld [vmem:[#allocation6 + $0x11a0] sm:$0xff] }
 0x128   :  { %3991 = vmatpush3.msra.mxu1 %v531_v35  ;;  %3957 = vmatprep.subr.mxu0 %v514_v36  ;;  %v566_v34 = vld [vmem:[#allocation6 + $0x1020] sm:$0xff]  ;;  %v581_v36 = vld [vmem:[#allocation6 + $0x1098] sm:$0xff] }
 0x129   :  { %3992 = vmatprep.subr.mxu1 %v546_v37  ;;  %3958 = vmatpush3.msra.mxu0 %v498_v39  ;;  %v598_v35 = vld [vmem:[#allocation6 + $0x1120] sm:$0xff]  ;;  %v613_v37 = vld [vmem:[#allocation6 + $0x1198] sm:$0xff] }
 0x12a   :  { %2364 = vmatprep.mubr.f32.mxu0 %v1139_v38  ;;  %3993 = vmatpush3.msra.mxu1 %v530_v41  ;;  %v565_v38 = vld [vmem:[#allocation6 + $0x1018] sm:$0xff]  ;;  %v612_v41 = vld [vmem:[#allocation6 + $0x1190] sm:$0xff] }
 0x12b   :  { %2365 = vmatmul.mubr.f32.vlgmr.msra.gmra.mxu0 %v1135_v40  ;;  %2434 = vmatprep.mubr.f32.mxu1 %v1147_v42  ;;  %v597_v39 = vld [vmem:[#allocation6 + $0x1118] sm:$0xff]  ;;  %v580_v40 = vld [vmem:[#allocation6 + $0x1090] sm:$0xff] }
 0x12c   :  { %3997 = vmatprep.subr.mxu0 %v593_v43  ;;  %4032 = vmatprep.subr.mxu1 %v625_v45  ;;  %v564_v42 = vld [vmem:[#allocation6 + $0x1010] sm:$0xff]  ;;  %v579_v45 = vld [vmem:[#allocation6 + $0x1088] sm:$0xff] }
 0x12d   :  { %2435 = vmatmul.mubr.f32.vlgmr.msra.gmra.mxu1 %v1143_v44  ;;  %3998 = vmatpush3.msra.mxu0 %v577_v46  ;;  %v596_v43 = vld [vmem:[#allocation6 + $0x1110] sm:$0xff]  ;;  %v4687_v44 = vld [vmem:[#allocation3 + $0x20] sm:$0xff] }
 0x12e   :  { %4033 = vmatpush3.msra.mxu1 %v609_v48  ;;  %3999 = vmatprep.subr.mxu0 %v592_v49  ;;  %v611_v46 = vld [vmem:[#allocation6 + $0x1188] sm:$0xff] }
 0x12f   :  { %4034 = vmatprep.subr.mxu1 %v624_v51  ;;  %4000 = vmatpush3.msra.mxu0 %v576_v52  ;;  %v563_v48 = vld [vmem:[#allocation6 + $0x1008] sm:$0xff]  ;;  %v578_v51 = vld [vmem:[#allocation6 + $0x1080] sm:$0xff] }
 0x130   :  { %4035 = vmatpush3.msra.mxu1 %v608_v53  ;;  %4001 = vmatprep.subr.mxu0 %v591_v54  ;;  %v595_v49 = vld [vmem:[#allocation6 + $0x1108] sm:$0xff]  ;;  %v610_v52 = vld [vmem:[#allocation6 + $0x1180] sm:$0xff]  ;;  %v1155_v53 = vrot.slane %v4687_v44, %v4592_v56 }
 0x131   :  { %4036 = vmatprep.subr.mxu1 %v623_v55  ;;  %4002 = vmatpush3.msra.mxu0 %v575_v20  ;;  %v562_v54 = vld [vmem:[#allocation6 + $0x1000] sm:$0xff]  ;;  %v1151_v55 = vrot.slane %v4687_v44, %v4597_v60 }
 0x132   :  { %4037 = vmatpush3.msra.mxu1 %v607_v57  ;;  %4003 = vmatprep.subr.mxu0 %v590_v58  ;;  %v594_v20 = vld [vmem:[#allocation6 + $0x1100] sm:$0xff]  ;;  %v1163_v57 = vrot.slane %v4687_v44, %v4600_v63  ;;  %v657_v58 = vld [vmem:[#allocation6 + $0x12f8] sm:$0xff] }
 0x133   :  { %4038 = vmatprep.subr.mxu1 %v622_v61  ;;  %4004 = vmatpush3.msra.mxu0 %v574_v62  ;;  %v1159_v61 = vrot.slane %v4687_v44, %v4603_v2  ;;  %v689_v62 = vld [vmem:[#allocation6 + $0x13f8] sm:$0xff] }
 0x134   :  { %4039 = vmatpush3.msra.mxu1 %v606_v24  ;;  %4005 = vmatprep.subr.mxu0 %v589_v0  ;;  %v641_v24 = vld [vmem:[#allocation6 + $0x1278] sm:$0xff] }
 0x135   :  { %4040 = vmatprep.subr.mxu1 %v621_v1  ;;  %4006 = vmatpush3.msra.mxu0 %v573_v3  ;;  %v673_v0 = vld [vmem:[#allocation6 + $0x1378] sm:$0xff]  ;;  %v656_v1 = vld [vmem:[#allocation6 + $0x12f0] sm:$0xff] }
 0x136   :  { %4041 = vmatpush3.msra.mxu1 %v605_v4  ;;  %4007 = vmatprep.subr.mxu0 %v588_v5  ;;  %v688_v3 = vld [vmem:[#allocation6 + $0x13f0] sm:$0xff] }
 0x137   :  { %4042 = vmatprep.subr.mxu1 %v620_v6  ;;  %4008 = vmatpush3.msra.mxu0 %v572_v8  ;;  %v640_v4 = vld [vmem:[#allocation6 + $0x1270] sm:$0xff]  ;;  %v655_v6 = vld [vmem:[#allocation6 + $0x12e8] sm:$0xff] }
 0x138   :  { %4043 = vmatpush3.msra.mxu1 %v604_v9  ;;  %4009 = vmatprep.subr.mxu0 %v587_v11  ;;  %v672_v5 = vld [vmem:[#allocation6 + $0x1370] sm:$0xff]  ;;  %v687_v8 = vld [vmem:[#allocation6 + $0x13e8] sm:$0xff] }
 0x139   :  { %4044 = vmatprep.subr.mxu1 %v619_v12  ;;  %4010 = vmatpush3.msra.mxu0 %v571_v14  ;;  %v639_v9 = vld [vmem:[#allocation6 + $0x1268] sm:$0xff]  ;;  %v654_v12 = vld [vmem:[#allocation6 + $0x12e0] sm:$0xff] }
 0x13a   :  { %4045 = vmatpush3.msra.mxu1 %v603_v15  ;;  %4011 = vmatprep.subr.mxu0 %v586_v17  ;;  %v671_v11 = vld [vmem:[#allocation6 + $0x1368] sm:$0xff]  ;;  %v686_v14 = vld [vmem:[#allocation6 + $0x13e0] sm:$0xff] }
 0x13b   :  { %4046 = vmatprep.subr.mxu1 %v618_v18  ;;  %4012 = vmatpush3.msra.mxu0 %v570_v19  ;;  %v638_v15 = vld [vmem:[#allocation6 + $0x1260] sm:$0xff]  ;;  %v653_v18 = vld [vmem:[#allocation6 + $0x12d8] sm:$0xff] }
 0x13c   :  { %4047 = vmatpush3.msra.mxu1 %v602_v21  ;;  %4013 = vmatprep.subr.mxu0 %v585_v22  ;;  %v670_v17 = vld [vmem:[#allocation6 + $0x1360] sm:$0xff]  ;;  %v685_v19 = vld [vmem:[#allocation6 + $0x13d8] sm:$0xff] }
 0x13d   :  { %4048 = vmatprep.subr.mxu1 %v617_v47  ;;  %4014 = vmatpush3.msra.mxu0 %v569_v23  ;;  %v637_v21 = vld [vmem:[#allocation6 + $0x1258] sm:$0xff]  ;;  %v652_v47 = vld [vmem:[#allocation6 + $0x12d0] sm:$0xff] }
 0x13e   :  { %4049 = vmatpush3.msra.mxu1 %v601_v25  ;;  %4015 = vmatprep.subr.mxu0 %v584_v26  ;;  %v669_v22 = vld [vmem:[#allocation6 + $0x1358] sm:$0xff]  ;;  %v684_v23 = vld [vmem:[#allocation6 + $0x13d0] sm:$0xff] }
 0x13f   :  { %4050 = vmatprep.subr.mxu1 %v616_v27  ;;  %4016 = vmatpush3.msra.mxu0 %v568_v28  ;;  %v636_v25 = vld [vmem:[#allocation6 + $0x1250] sm:$0xff]  ;;  %v651_v27 = vld [vmem:[#allocation6 + $0x12c8] sm:$0xff] }
 0x140   :  { %4051 = vmatpush3.msra.mxu1 %v600_v29  ;;  %4017 = vmatprep.subr.mxu0 %v583_v50  ;;  %v668_v26 = vld [vmem:[#allocation6 + $0x1350] sm:$0xff]  ;;  %v683_v28 = vld [vmem:[#allocation6 + $0x13c8] sm:$0xff] }
 0x141   :  { %4052 = vmatprep.subr.mxu1 %v615_v30  ;;  %4018 = vmatpush3.msra.mxu0 %v567_v31  ;;  %v635_v29 = vld [vmem:[#allocation6 + $0x1248] sm:$0xff]  ;;  %v650_v30 = vld [vmem:[#allocation6 + $0x12c0] sm:$0xff] }
 0x142   :  { %4053 = vmatpush3.msra.mxu1 %v599_v32  ;;  %4019 = vmatprep.subr.mxu0 %v582_v33  ;;  %v667_v50 = vld [vmem:[#allocation6 + $0x1348] sm:$0xff]  ;;  %v682_v31 = vld [vmem:[#allocation6 + $0x13c0] sm:$0xff] }
 0x143   :  { %4054 = vmatprep.subr.mxu1 %v614_v59  ;;  %4020 = vmatpush3.msra.mxu0 %v566_v34  ;;  %v634_v32 = vld [vmem:[#allocation6 + $0x1240] sm:$0xff]  ;;  %v649_v59 = vld [vmem:[#allocation6 + $0x12b8] sm:$0xff] }
 0x144   :  { %4055 = vmatpush3.msra.mxu1 %v598_v35  ;;  %4021 = vmatprep.subr.mxu0 %v581_v36  ;;  %v666_v33 = vld [vmem:[#allocation6 + $0x1340] sm:$0xff]  ;;  %v681_v34 = vld [vmem:[#allocation6 + $0x13b8] sm:$0xff] }
 0x145   :  { %4056 = vmatprep.subr.mxu1 %v613_v37  ;;  %4022 = vmatpush3.msra.mxu0 %v565_v38  ;;  %v633_v35 = vld [vmem:[#allocation6 + $0x1238] sm:$0xff]  ;;  %v648_v37 = vld [vmem:[#allocation6 + $0x12b0] sm:$0xff] }
 0x146   :  { %4057 = vmatpush3.msra.mxu1 %v597_v39  ;;  %4023 = vmatprep.subr.mxu0 %v580_v40  ;;  %v665_v36 = vld [vmem:[#allocation6 + $0x1338] sm:$0xff]  ;;  %v680_v38 = vld [vmem:[#allocation6 + $0x13b0] sm:$0xff] }
 0x147   :  { %4058 = vmatprep.subr.mxu1 %v612_v41  ;;  %4024 = vmatpush3.msra.mxu0 %v564_v42  ;;  %v632_v39 = vld [vmem:[#allocation6 + $0x1230] sm:$0xff]  ;;  %v647_v41 = vld [vmem:[#allocation6 + $0x12a8] sm:$0xff] }
 0x148   :  { %4059 = vmatpush3.msra.mxu1 %v596_v43  ;;  %4025 = vmatprep.subr.mxu0 %v579_v45  ;;  %v664_v40 = vld [vmem:[#allocation6 + $0x1330] sm:$0xff]  ;;  %v679_v42 = vld [vmem:[#allocation6 + $0x13a8] sm:$0xff] }
 0x149   :  { %4060 = vmatprep.subr.mxu1 %v611_v46  ;;  %4026 = vmatpush3.msra.mxu0 %v563_v48  ;;  %v631_v43 = vld [vmem:[#allocation6 + $0x1228] sm:$0xff]  ;;  %v646_v46 = vld [vmem:[#allocation6 + $0x12a0] sm:$0xff] }
 0x14a   :  { %4061 = vmatpush3.msra.mxu1 %v595_v49  ;;  %4027 = vmatprep.subr.mxu0 %v578_v51  ;;  %v663_v45 = vld [vmem:[#allocation6 + $0x1328] sm:$0xff]  ;;  %v678_v48 = vld [vmem:[#allocation6 + $0x13a0] sm:$0xff] }
 0x14b   :  { %4062 = vmatprep.subr.mxu1 %v610_v52  ;;  %4028 = vmatpush3.msra.mxu0 %v562_v54  ;;  %v630_v49 = vld [vmem:[#allocation6 + $0x1220] sm:$0xff]  ;;  %v645_v52 = vld [vmem:[#allocation6 + $0x1298] sm:$0xff] }
 0x14c   :  { %2504 = vmatprep.mubr.f32.mxu0 %v1155_v53  ;;  %4063 = vmatpush3.msra.mxu1 %v594_v20  ;;  %v662_v51 = vld [vmem:[#allocation6 + $0x1320] sm:$0xff]  ;;  %v677_v53 = vld [vmem:[#allocation6 + $0x1398] sm:$0xff]  ;;  %v644_v20 = vld [vmem:[#allocation6 + $0x1290] sm:$0xff] }
 0x14d   :  { %2505 = vmatmul.mubr.f32.vlgmr.msra.gmra.mxu0 %v1151_v55  ;;  %2574 = vmatprep.mubr.f32.mxu1 %v1163_v57  ;;  %v629_v54 = vld [vmem:[#allocation6 + $0x1218] sm:$0xff]  ;;  %v676_v57 = vld [vmem:[#allocation6 + $0x1390] sm:$0xff] }
 0x14e   :  { %4067 = vmatprep.subr.mxu0 %v657_v58  ;;  %4102 = vmatprep.subr.mxu1 %v689_v62  ;;  %v661_v55 = vld [vmem:[#allocation6 + $0x1318] sm:$0xff]  ;;  %v628_v58 = vld [vmem:[#allocation6 + $0x1210] sm:$0xff]  ;;  %v643_v62 = vld [vmem:[#allocation6 + $0x1288] sm:$0xff] }
 0x14f   :  { %2575 = vmatmul.mubr.f32.vlgmr.msra.gmra.mxu1 %v1159_v61  ;;  %4068 = vmatpush3.msra.mxu0 %v641_v24  ;;  %v660_v61 = vld [vmem:[#allocation6 + $0x1310] sm:$0xff]  ;;  %v675_v24 = vld [vmem:[#allocation6 + $0x1388] sm:$0xff] }
 0x150   :  { %4103 = vmatpush3.msra.mxu1 %v673_v0  ;;  %4069 = vmatprep.subr.mxu0 %v656_v1  ;;  %v627_v0 = vld [vmem:[#allocation6 + $0x1208] sm:$0xff] }
 0x151   :  { %4104 = vmatprep.subr.mxu1 %v688_v3  ;;  %4070 = vmatpush3.msra.mxu0 %v640_v4  ;;  %v659_v1 = vld [vmem:[#allocation6 + $0x1308] sm:$0xff]  ;;  %v642_v3 = vld [vmem:[#allocation6 + $0x1280] sm:$0xff] }
 0x152   :  { %4105 = vmatpush3.msra.mxu1 %v672_v5  ;;  %4071 = vmatprep.subr.mxu0 %v655_v6  ;;  %v674_v4 = vld [vmem:[#allocation6 + $0x1380] sm:$0xff]  ;;  %v1171_v5 = vrot.slane %v4687_v44, %v4614_v7 }
 0x153   :  { %4106 = vmatprep.subr.mxu1 %v687_v8  ;;  %4072 = vmatpush3.msra.mxu0 %v639_v9  ;;  %v626_v6 = vld [vmem:[#allocation6 + $0x1200] sm:$0xff]  ;;  %v1167_v8 = vrot.slane %v4687_v44, %v4617_v10 }
 0x154   :  { %4107 = vmatpush3.msra.mxu1 %v671_v11  ;;  %4073 = vmatprep.subr.mxu0 %v654_v12  ;;  %v658_v9 = vld [vmem:[#allocation6 + $0x1300] sm:$0xff]  ;;  %v1179_v11 = vrot.slane %v4687_v44, %v4620_v13  ;;  %v721_v12 = vld [vmem:[#allocation6 + $0x14f8] sm:$0xff] }
 0x155   :  { %4108 = vmatprep.subr.mxu1 %v686_v14  ;;  %4074 = vmatpush3.msra.mxu0 %v638_v15  ;;  %v1175_v14 = vrot.slane %v4687_v44, %v4623_v16  ;;  %v753_v15 = vld [vmem:[#allocation6 + $0x15f8] sm:$0xff]  ;;  %v703_v44 = vld [vmem:[#allocation6 + $0x1468] sm:$0xff] }
 0x156   :  { %4109 = vmatpush3.msra.mxu1 %v670_v17  ;;  %4075 = vmatprep.subr.mxu0 %v653_v18  ;;  %v705_v17 = vld [vmem:[#allocation6 + $0x1478] sm:$0xff] }
 0x157   :  { %4110 = vmatprep.subr.mxu1 %v685_v19  ;;  %4076 = vmatpush3.msra.mxu0 %v637_v21  ;;  %v737_v18 = vld [vmem:[#allocation6 + $0x1578] sm:$0xff]  ;;  %v720_v19 = vld [vmem:[#allocation6 + $0x14f0] sm:$0xff] }
 0x158   :  { %4111 = vmatpush3.msra.mxu1 %v669_v22  ;;  %4077 = vmatprep.subr.mxu0 %v652_v47  ;;  %v752_v21 = vld [vmem:[#allocation6 + $0x15f0] sm:$0xff] }
 0x159   :  { %4112 = vmatprep.subr.mxu1 %v684_v23  ;;  %4078 = vmatpush3.msra.mxu0 %v636_v25  ;;  %v704_v22 = vld [vmem:[#allocation6 + $0x1470] sm:$0xff]  ;;  %v719_v23 = vld [vmem:[#allocation6 + $0x14e8] sm:$0xff] }
 0x15a   :  { %4113 = vmatpush3.msra.mxu1 %v668_v26  ;;  %4079 = vmatprep.subr.mxu0 %v651_v27  ;;  %v736_v47 = vld [vmem:[#allocation6 + $0x1570] sm:$0xff]  ;;  %v751_v25 = vld [vmem:[#allocation6 + $0x15e8] sm:$0xff]  ;;  %v718_v27 = vld [vmem:[#allocation6 + $0x14e0] sm:$0xff] }
 0x15b   :  { %4114 = vmatprep.subr.mxu1 %v683_v28  ;;  %4080 = vmatpush3.msra.mxu0 %v635_v29  ;;  %v735_v26 = vld [vmem:[#allocation6 + $0x1568] sm:$0xff]  ;;  %v750_v28 = vld [vmem:[#allocation6 + $0x15e0] sm:$0xff] }
 0x15c   :  { %4115 = vmatpush3.msra.mxu1 %v667_v50  ;;  %4081 = vmatprep.subr.mxu0 %v650_v30  ;;  %v702_v29 = vld [vmem:[#allocation6 + $0x1460] sm:$0xff]  ;;  %v717_v30 = vld [vmem:[#allocation6 + $0x14d8] sm:$0xff] }
 0x15d   :  { %4116 = vmatprep.subr.mxu1 %v682_v31  ;;  %4082 = vmatpush3.msra.mxu0 %v634_v32  ;;  %v734_v50 = vld [vmem:[#allocation6 + $0x1560] sm:$0xff]  ;;  %v749_v31 = vld [vmem:[#allocation6 + $0x15d8] sm:$0xff] }
 0x15e   :  { %4117 = vmatpush3.msra.mxu1 %v666_v33  ;;  %4083 = vmatprep.subr.mxu0 %v649_v59  ;;  %v701_v32 = vld [vmem:[#allocation6 + $0x1458] sm:$0xff]  ;;  %v716_v59 = vld [vmem:[#allocation6 + $0x14d0] sm:$0xff] }
 0x15f   :  { %4118 = vmatprep.subr.mxu1 %v681_v34  ;;  %4084 = vmatpush3.msra.mxu0 %v633_v35  ;;  %v733_v33 = vld [vmem:[#allocation6 + $0x1558] sm:$0xff]  ;;  %v748_v34 = vld [vmem:[#allocation6 + $0x15d0] sm:$0xff] }
 0x160   :  { %4119 = vmatpush3.msra.mxu1 %v665_v36  ;;  %4085 = vmatprep.subr.mxu0 %v648_v37  ;;  %v700_v35 = vld [vmem:[#allocation6 + $0x1450] sm:$0xff]  ;;  %v715_v37 = vld [vmem:[#allocation6 + $0x14c8] sm:$0xff] }
 0x161   :  { %4120 = vmatprep.subr.mxu1 %v680_v38  ;;  %4086 = vmatpush3.msra.mxu0 %v632_v39  ;;  %v732_v36 = vld [vmem:[#allocation6 + $0x1550] sm:$0xff]  ;;  %v747_v38 = vld [vmem:[#allocation6 + $0x15c8] sm:$0xff] }
 0x162   :  { %4121 = vmatpush3.msra.mxu1 %v664_v40  ;;  %4087 = vmatprep.subr.mxu0 %v647_v41  ;;  %v699_v39 = vld [vmem:[#allocation6 + $0x1448] sm:$0xff]  ;;  %v714_v41 = vld [vmem:[#allocation6 + $0x14c0] sm:$0xff] }
 0x163   :  { %4122 = vmatprep.subr.mxu1 %v679_v42  ;;  %4088 = vmatpush3.msra.mxu0 %v631_v43  ;;  %v731_v40 = vld [vmem:[#allocation6 + $0x1548] sm:$0xff]  ;;  %v746_v42 = vld [vmem:[#allocation6 + $0x15c0] sm:$0xff] }
 0x164   :  { %4123 = vmatpush3.msra.mxu1 %v663_v45  ;;  %4089 = vmatprep.subr.mxu0 %v646_v46  ;;  %v698_v43 = vld [vmem:[#allocation6 + $0x1440] sm:$0xff]  ;;  %v713_v46 = vld [vmem:[#allocation6 + $0x14b8] sm:$0xff] }
 0x165   :  { %4124 = vmatprep.subr.mxu1 %v678_v48  ;;  %4090 = vmatpush3.msra.mxu0 %v630_v49  ;;  %v730_v45 = vld [vmem:[#allocation6 + $0x1540] sm:$0xff]  ;;  %v745_v48 = vld [vmem:[#allocation6 + $0x15b8] sm:$0xff] }
 0x166   :  { %4125 = vmatpush3.msra.mxu1 %v662_v51  ;;  %4091 = vmatprep.subr.mxu0 %v645_v52  ;;  %v697_v49 = vld [vmem:[#allocation6 + $0x1438] sm:$0xff]  ;;  %v712_v52 = vld [vmem:[#allocation6 + $0x14b0] sm:$0xff] }
 0x167   :  { %4126 = vmatprep.subr.mxu1 %v677_v53  ;;  %4092 = vmatpush3.msra.mxu0 %v629_v54  ;;  %v729_v51 = vld [vmem:[#allocation6 + $0x1538] sm:$0xff]  ;;  %v744_v53 = vld [vmem:[#allocation6 + $0x15b0] sm:$0xff] }
 0x168   :  { %4127 = vmatpush3.msra.mxu1 %v661_v55  ;;  %4093 = vmatprep.subr.mxu0 %v644_v20  ;;  %v696_v54 = vld [vmem:[#allocation6 + $0x1430] sm:$0xff]  ;;  %v711_v20 = vld [vmem:[#allocation6 + $0x14a8] sm:$0xff] }
 0x169   :  { %4128 = vmatprep.subr.mxu1 %v676_v57  ;;  %4094 = vmatpush3.msra.mxu0 %v628_v58  ;;  %v728_v55 = vld [vmem:[#allocation6 + $0x1530] sm:$0xff]  ;;  %v743_v57 = vld [vmem:[#allocation6 + $0x15a8] sm:$0xff] }
 0x16a   :  { %4129 = vmatpush3.msra.mxu1 %v660_v61  ;;  %4095 = vmatprep.subr.mxu0 %v643_v62  ;;  %v695_v58 = vld [vmem:[#allocation6 + $0x1428] sm:$0xff]  ;;  %v710_v62 = vld [vmem:[#allocation6 + $0x14a0] sm:$0xff] }
 0x16b   :  { %4130 = vmatprep.subr.mxu1 %v675_v24  ;;  %4096 = vmatpush3.msra.mxu0 %v627_v0  ;;  %v727_v61 = vld [vmem:[#allocation6 + $0x1528] sm:$0xff]  ;;  %v742_v24 = vld [vmem:[#allocation6 + $0x15a0] sm:$0xff] }
 0x16c   :  { %4131 = vmatpush3.msra.mxu1 %v659_v1  ;;  %4097 = vmatprep.subr.mxu0 %v642_v3  ;;  %v694_v0 = vld [vmem:[#allocation6 + $0x1420] sm:$0xff]  ;;  %v709_v3 = vld [vmem:[#allocation6 + $0x1498] sm:$0xff] }
 0x16d   :  { %4132 = vmatprep.subr.mxu1 %v674_v4  ;;  %4098 = vmatpush3.msra.mxu0 %v626_v6  ;;  %v726_v1 = vld [vmem:[#allocation6 + $0x1520] sm:$0xff]  ;;  %v741_v4 = vld [vmem:[#allocation6 + $0x1598] sm:$0xff] }
 0x16e   :  { %2644 = vmatprep.mubr.f32.mxu0 %v1171_v5  ;;  %4133 = vmatpush3.msra.mxu1 %v658_v9  ;;  %v693_v5 = vld [vmem:[#allocation6 + $0x1418] sm:$0xff]  ;;  %v740_v9 = vld [vmem:[#allocation6 + $0x1590] sm:$0xff] }
 0x16f   :  { %2645 = vmatmul.mubr.f32.vlgmr.msra.gmra.mxu0 %v1167_v8  ;;  %2714 = vmatprep.mubr.f32.mxu1 %v1179_v11  ;;  %v725_v6 = vld [vmem:[#allocation6 + $0x1518] sm:$0xff]  ;;  %v708_v8 = vld [vmem:[#allocation6 + $0x1490] sm:$0xff] }
 0x170   :  { %4137 = vmatprep.subr.mxu0 %v721_v12  ;;  %4172 = vmatprep.subr.mxu1 %v753_v15  ;;  %v692_v11 = vld [vmem:[#allocation6 + $0x1410] sm:$0xff]  ;;  %v707_v15 = vld [vmem:[#allocation6 + $0x1488] sm:$0xff] }
 0x171   :  { %2715 = vmatmul.mubr.f32.vlgmr.msra.gmra.mxu1 %v1175_v14  ;;  %4138 = vmatpush3.msra.mxu0 %v705_v17  ;;  %v724_v12 = vld [vmem:[#allocation6 + $0x1510] sm:$0xff]  ;;  %v739_v17 = vld [vmem:[#allocation6 + $0x1588] sm:$0xff] }
 0x172   :  { %4173 = vmatpush3.msra.mxu1 %v737_v18  ;;  %4139 = vmatprep.subr.mxu0 %v720_v19  ;;  %v4705_v14 = vld [vmem:[#allocation3 + $0x28] sm:$0xff] }
 0x173   :  { %4174 = vmatprep.subr.mxu1 %v752_v21  ;;  %4140 = vmatpush3.msra.mxu0 %v704_v22  ;;  %v691_v18 = vld [vmem:[#allocation6 + $0x1408] sm:$0xff]  ;;  %v706_v21 = vld [vmem:[#allocation6 + $0x1480] sm:$0xff] }
 0x174   :  { %4175 = vmatpush3.msra.mxu1 %v736_v47  ;;  %4141 = vmatprep.subr.mxu0 %v719_v23  ;;  %v723_v19 = vld [vmem:[#allocation6 + $0x1508] sm:$0xff]  ;;  %v738_v22 = vld [vmem:[#allocation6 + $0x1580] sm:$0xff]  ;;  %v1187_v47 = vrot.slane %v4705_v14, %v4592_v56 }
 0x175   :  { %4176 = vmatprep.subr.mxu1 %v751_v25  ;;  %4142 = vmatpush3.msra.mxu0 %v703_v44  ;;  %v690_v23 = vld [vmem:[#allocation6 + $0x1400] sm:$0xff]  ;;  %v1183_v25 = vrot.slane %v4705_v14, %v4597_v60 }
 0x176   :  { %4177 = vmatpush3.msra.mxu1 %v735_v26  ;;  %4143 = vmatprep.subr.mxu0 %v718_v27  ;;  %v722_v44 = vld [vmem:[#allocation6 + $0x1500] sm:$0xff]  ;;  %v1195_v26 = vrot.slane %v4705_v14, %v4600_v63  ;;  %v785_v27 = vld [vmem:[#allocation6 + $0x16f8] sm:$0xff] }
 0x177   :  { %4178 = vmatprep.subr.mxu1 %v750_v28  ;;  %4144 = vmatpush3.msra.mxu0 %v702_v29  ;;  %v1191_v28 = vrot.slane %v4705_v14, %v4603_v2  ;;  %v817_v29 = vld [vmem:[#allocation6 + $0x17f8] sm:$0xff] }
 0x178   :  { %4179 = vmatpush3.msra.mxu1 %v734_v50  ;;  %4145 = vmatprep.subr.mxu0 %v717_v30  ;;  %v769_v50 = vld [vmem:[#allocation6 + $0x1678] sm:$0xff] }
 0x179   :  { %4180 = vmatprep.subr.mxu1 %v749_v31  ;;  %4146 = vmatpush3.msra.mxu0 %v701_v32  ;;  %v801_v30 = vld [vmem:[#allocation6 + $0x1778] sm:$0xff]  ;;  %v784_v31 = vld [vmem:[#allocation6 + $0x16f0] sm:$0xff] }
 0x17a   :  { %4181 = vmatpush3.msra.mxu1 %v733_v33  ;;  %4147 = vmatprep.subr.mxu0 %v716_v59  ;;  %v816_v32 = vld [vmem:[#allocation6 + $0x17f0] sm:$0xff] }
 0x17b   :  { %4182 = vmatprep.subr.mxu1 %v748_v34  ;;  %4148 = vmatpush3.msra.mxu0 %v700_v35  ;;  %v768_v33 = vld [vmem:[#allocation6 + $0x1670] sm:$0xff]  ;;  %v783_v34 = vld [vmem:[#allocation6 + $0x16e8] sm:$0xff] }
 0x17c   :  { %4183 = vmatpush3.msra.mxu1 %v732_v36  ;;  %4149 = vmatprep.subr.mxu0 %v715_v37  ;;  %v800_v59 = vld [vmem:[#allocation6 + $0x1770] sm:$0xff]  ;;  %v815_v35 = vld [vmem:[#allocation6 + $0x17e8] sm:$0xff] }
 0x17d   :  { %4184 = vmatprep.subr.mxu1 %v747_v38  ;;  %4150 = vmatpush3.msra.mxu0 %v699_v39  ;;  %v767_v36 = vld [vmem:[#allocation6 + $0x1668] sm:$0xff]  ;;  %v782_v38 = vld [vmem:[#allocation6 + $0x16e0] sm:$0xff] }
 0x17e   :  { %4185 = vmatpush3.msra.mxu1 %v731_v40  ;;  %4151 = vmatprep.subr.mxu0 %v714_v41  ;;  %v799_v37 = vld [vmem:[#allocation6 + $0x1768] sm:$0xff]  ;;  %v814_v39 = vld [vmem:[#allocation6 + $0x17e0] sm:$0xff] }
 0x17f   :  { %4186 = vmatprep.subr.mxu1 %v746_v42  ;;  %4152 = vmatpush3.msra.mxu0 %v698_v43  ;;  %v766_v40 = vld [vmem:[#allocation6 + $0x1660] sm:$0xff]  ;;  %v781_v42 = vld [vmem:[#allocation6 + $0x16d8] sm:$0xff] }
 0x180   :  { %4187 = vmatpush3.msra.mxu1 %v730_v45  ;;  %4153 = vmatprep.subr.mxu0 %v713_v46  ;;  %v798_v41 = vld [vmem:[#allocation6 + $0x1760] sm:$0xff]  ;;  %v813_v43 = vld [vmem:[#allocation6 + $0x17d8] sm:$0xff] }
 0x181   :  { %4188 = vmatprep.subr.mxu1 %v745_v48  ;;  %4154 = vmatpush3.msra.mxu0 %v697_v49  ;;  %v765_v45 = vld [vmem:[#allocation6 + $0x1658] sm:$0xff]  ;;  %v780_v48 = vld [vmem:[#allocation6 + $0x16d0] sm:$0xff] }
 0x182   :  { %4189 = vmatpush3.msra.mxu1 %v729_v51  ;;  %4155 = vmatprep.subr.mxu0 %v712_v52  ;;  %v797_v46 = vld [vmem:[#allocation6 + $0x1758] sm:$0xff]  ;;  %v812_v49 = vld [vmem:[#allocation6 + $0x17d0] sm:$0xff] }
 0x183   :  { %4190 = vmatprep.subr.mxu1 %v744_v53  ;;  %4156 = vmatpush3.msra.mxu0 %v696_v54  ;;  %v764_v51 = vld [vmem:[#allocation6 + $0x1650] sm:$0xff]  ;;  %v779_v53 = vld [vmem:[#allocation6 + $0x16c8] sm:$0xff] }
 0x184   :  { %4191 = vmatpush3.msra.mxu1 %v728_v55  ;;  %4157 = vmatprep.subr.mxu0 %v711_v20  ;;  %v796_v52 = vld [vmem:[#allocation6 + $0x1750] sm:$0xff]  ;;  %v811_v54 = vld [vmem:[#allocation6 + $0x17c8] sm:$0xff] }
 0x185   :  { %4192 = vmatprep.subr.mxu1 %v743_v57  ;;  %4158 = vmatpush3.msra.mxu0 %v695_v58  ;;  %v763_v55 = vld [vmem:[#allocation6 + $0x1648] sm:$0xff]  ;;  %v778_v57 = vld [vmem:[#allocation6 + $0x16c0] sm:$0xff] }
 0x186   :  { %4193 = vmatpush3.msra.mxu1 %v727_v61  ;;  %4159 = vmatprep.subr.mxu0 %v710_v62  ;;  %v795_v20 = vld [vmem:[#allocation6 + $0x1748] sm:$0xff]  ;;  %v810_v58 = vld [vmem:[#allocation6 + $0x17c0] sm:$0xff] }
 0x187   :  { %4194 = vmatprep.subr.mxu1 %v742_v24  ;;  %4160 = vmatpush3.msra.mxu0 %v694_v0  ;;  %v762_v61 = vld [vmem:[#allocation6 + $0x1640] sm:$0xff]  ;;  %v777_v24 = vld [vmem:[#allocation6 + $0x16b8] sm:$0xff] }
 0x188   :  { %4195 = vmatpush3.msra.mxu1 %v726_v1  ;;  %4161 = vmatprep.subr.mxu0 %v709_v3  ;;  %v794_v62 = vld [vmem:[#allocation6 + $0x1740] sm:$0xff]  ;;  %v809_v0 = vld [vmem:[#allocation6 + $0x17b8] sm:$0xff] }
 0x189   :  { %4196 = vmatprep.subr.mxu1 %v741_v4  ;;  %4162 = vmatpush3.msra.mxu0 %v693_v5  ;;  %v761_v1 = vld [vmem:[#allocation6 + $0x1638] sm:$0xff]  ;;  %v776_v4 = vld [vmem:[#allocation6 + $0x16b0] sm:$0xff] }
 0x18a   :  { %4197 = vmatpush3.msra.mxu1 %v725_v6  ;;  %4163 = vmatprep.subr.mxu0 %v708_v8  ;;  %v793_v3 = vld [vmem:[#allocation6 + $0x1738] sm:$0xff]  ;;  %v808_v5 = vld [vmem:[#allocation6 + $0x17b0] sm:$0xff] }
 0x18b   :  { %4198 = vmatprep.subr.mxu1 %v740_v9  ;;  %4164 = vmatpush3.msra.mxu0 %v692_v11  ;;  %v760_v6 = vld [vmem:[#allocation6 + $0x1630] sm:$0xff]  ;;  %v775_v9 = vld [vmem:[#allocation6 + $0x16a8] sm:$0xff] }
 0x18c   :  { %4199 = vmatpush3.msra.mxu1 %v724_v12  ;;  %4165 = vmatprep.subr.mxu0 %v707_v15  ;;  %v792_v8 = vld [vmem:[#allocation6 + $0x1730] sm:$0xff]  ;;  %v807_v11 = vld [vmem:[#allocation6 + $0x17a8] sm:$0xff] }
 0x18d   :  { %4200 = vmatprep.subr.mxu1 %v739_v17  ;;  %4166 = vmatpush3.msra.mxu0 %v691_v18  ;;  %v759_v12 = vld [vmem:[#allocation6 + $0x1628] sm:$0xff]  ;;  %v774_v17 = vld [vmem:[#allocation6 + $0x16a0] sm:$0xff] }
 0x18e   :  { %4201 = vmatpush3.msra.mxu1 %v723_v19  ;;  %4167 = vmatprep.subr.mxu0 %v706_v21  ;;  %v791_v15 = vld [vmem:[#allocation6 + $0x1728] sm:$0xff]  ;;  %v806_v18 = vld [vmem:[#allocation6 + $0x17a0] sm:$0xff] }
 0x18f   :  { %4202 = vmatprep.subr.mxu1 %v738_v22  ;;  %4168 = vmatpush3.msra.mxu0 %v690_v23  ;;  %v758_v19 = vld [vmem:[#allocation6 + $0x1620] sm:$0xff]  ;;  %v773_v22 = vld [vmem:[#allocation6 + $0x1698] sm:$0xff] }
 0x190   :  { %2784 = vmatprep.mubr.f32.mxu0 %v1187_v47  ;;  %4203 = vmatpush3.msra.mxu1 %v722_v44  ;;  %v790_v21 = vld [vmem:[#allocation6 + $0x1720] sm:$0xff]  ;;  %v805_v47 = vld [vmem:[#allocation6 + $0x1798] sm:$0xff]  ;;  %v772_v44 = vld [vmem:[#allocation6 + $0x1690] sm:$0xff] }
 0x191   :  { %2785 = vmatmul.mubr.f32.vlgmr.msra.gmra.mxu0 %v1183_v25  ;;  %2854 = vmatprep.mubr.f32.mxu1 %v1195_v26  ;;  %v757_v23 = vld [vmem:[#allocation6 + $0x1618] sm:$0xff]  ;;  %v804_v26 = vld [vmem:[#allocation6 + $0x1790] sm:$0xff] }
 0x192   :  { %4207 = vmatprep.subr.mxu0 %v785_v27  ;;  %4242 = vmatprep.subr.mxu1 %v817_v29  ;;  %v789_v25 = vld [vmem:[#allocation6 + $0x1718] sm:$0xff]  ;;  %v756_v27 = vld [vmem:[#allocation6 + $0x1610] sm:$0xff]  ;;  %v771_v29 = vld [vmem:[#allocation6 + $0x1688] sm:$0xff] }
 0x193   :  { %2855 = vmatmul.mubr.f32.vlgmr.msra.gmra.mxu1 %v1191_v28  ;;  %4208 = vmatpush3.msra.mxu0 %v769_v50  ;;  %v788_v28 = vld [vmem:[#allocation6 + $0x1710] sm:$0xff]  ;;  %v803_v50 = vld [vmem:[#allocation6 + $0x1788] sm:$0xff] }
 0x194   :  { %4243 = vmatpush3.msra.mxu1 %v801_v30  ;;  %4209 = vmatprep.subr.mxu0 %v784_v31  ;;  %v755_v30 = vld [vmem:[#allocation6 + $0x1608] sm:$0xff] }
 0x195   :  { %4244 = vmatprep.subr.mxu1 %v816_v32  ;;  %4210 = vmatpush3.msra.mxu0 %v768_v33  ;;  %v787_v31 = vld [vmem:[#allocation6 + $0x1708] sm:$0xff]  ;;  %v770_v32 = vld [vmem:[#allocation6 + $0x1680] sm:$0xff] }
 0x196   :  { %4245 = vmatpush3.msra.mxu1 %v800_v59  ;;  %4211 = vmatprep.subr.mxu0 %v783_v34  ;;  %v802_v33 = vld [vmem:[#allocation6 + $0x1780] sm:$0xff]  ;;  %v1203_v59 = vrot.slane %v4705_v14, %v4614_v7 }
 0x197   :  { %4246 = vmatprep.subr.mxu1 %v815_v35  ;;  %4212 = vmatpush3.msra.mxu0 %v767_v36  ;;  %v754_v34 = vld [vmem:[#allocation6 + $0x1600] sm:$0xff]  ;;  %v1199_v35 = vrot.slane %v4705_v14, %v4617_v10 }
 0x198   :  { %4247 = vmatpush3.msra.mxu1 %v799_v37  ;;  %4213 = vmatprep.subr.mxu0 %v782_v38  ;;  %v786_v36 = vld [vmem:[#allocation6 + $0x1700] sm:$0xff]  ;;  %v1211_v37 = vrot.slane %v4705_v14, %v4620_v13  ;;  %v849_v38 = vld [vmem:[#allocation6 + $0x18f8] sm:$0xff] }
 0x199   :  { %4248 = vmatprep.subr.mxu1 %v814_v39  ;;  %4214 = vmatpush3.msra.mxu0 %v766_v40  ;;  %v1207_v39 = vrot.slane %v4705_v14, %v4623_v16  ;;  %v881_v40 = vld [vmem:[#allocation6 + $0x19f8] sm:$0xff]  ;;  %v831_v14 = vld [vmem:[#allocation6 + $0x1868] sm:$0xff] }
 0x19a   :  { %4249 = vmatpush3.msra.mxu1 %v798_v41  ;;  %4215 = vmatprep.subr.mxu0 %v781_v42  ;;  %v833_v41 = vld [vmem:[#allocation6 + $0x1878] sm:$0xff] }
 0x19b   :  { %4250 = vmatprep.subr.mxu1 %v813_v43  ;;  %4216 = vmatpush3.msra.mxu0 %v765_v45  ;;  %v865_v42 = vld [vmem:[#allocation6 + $0x1978] sm:$0xff]  ;;  %v848_v43 = vld [vmem:[#allocation6 + $0x18f0] sm:$0xff] }
 0x19c   :  { %4251 = vmatpush3.msra.mxu1 %v797_v46  ;;  %4217 = vmatprep.subr.mxu0 %v780_v48  ;;  %v880_v45 = vld [vmem:[#allocation6 + $0x19f0] sm:$0xff] }
 0x19d   :  { %4252 = vmatprep.subr.mxu1 %v812_v49  ;;  %4218 = vmatpush3.msra.mxu0 %v764_v51  ;;  %v832_v46 = vld [vmem:[#allocation6 + $0x1870] sm:$0xff]  ;;  %v847_v49 = vld [vmem:[#allocation6 + $0x18e8] sm:$0xff] }
 0x19e   :  { %4253 = vmatpush3.msra.mxu1 %v796_v52  ;;  %4219 = vmatprep.subr.mxu0 %v779_v53  ;;  %v864_v48 = vld [vmem:[#allocation6 + $0x1970] sm:$0xff]  ;;  %v879_v51 = vld [vmem:[#allocation6 + $0x19e8] sm:$0xff]  ;;  %v846_v53 = vld [vmem:[#allocation6 + $0x18e0] sm:$0xff] }
 0x19f   :  { %4254 = vmatprep.subr.mxu1 %v811_v54  ;;  %4220 = vmatpush3.msra.mxu0 %v763_v55  ;;  %v863_v52 = vld [vmem:[#allocation6 + $0x1968] sm:$0xff]  ;;  %v878_v54 = vld [vmem:[#allocation6 + $0x19e0] sm:$0xff] }
 0x1a0   :  { %4255 = vmatpush3.msra.mxu1 %v795_v20  ;;  %4221 = vmatprep.subr.mxu0 %v778_v57  ;;  %v830_v55 = vld [vmem:[#allocation6 + $0x1860] sm:$0xff]  ;;  %v845_v57 = vld [vmem:[#allocation6 + $0x18d8] sm:$0xff] }
 0x1a1   :  { %4256 = vmatprep.subr.mxu1 %v810_v58  ;;  %4222 = vmatpush3.msra.mxu0 %v762_v61  ;;  %v862_v20 = vld [vmem:[#allocation6 + $0x1960] sm:$0xff]  ;;  %v877_v58 = vld [vmem:[#allocation6 + $0x19d8] sm:$0xff] }
 0x1a2   :  { %4257 = vmatpush3.msra.mxu1 %v794_v62  ;;  %4223 = vmatprep.subr.mxu0 %v777_v24  ;;  %v829_v61 = vld [vmem:[#allocation6 + $0x1858] sm:$0xff]  ;;  %v844_v24 = vld [vmem:[#allocation6 + $0x18d0] sm:$0xff] }
 0x1a3   :  { %4258 = vmatprep.subr.mxu1 %v809_v0  ;;  %4224 = vmatpush3.msra.mxu0 %v761_v1  ;;  %v861_v62 = vld [vmem:[#allocation6 + $0x1958] sm:$0xff]  ;;  %v876_v0 = vld [vmem:[#allocation6 + $0x19d0] sm:$0xff] }
 0x1a4   :  { %4259 = vmatpush3.msra.mxu1 %v793_v3  ;;  %4225 = vmatprep.subr.mxu0 %v776_v4  ;;  %v828_v1 = vld [vmem:[#allocation6 + $0x1850] sm:$0xff]  ;;  %v843_v4 = vld [vmem:[#allocation6 + $0x18c8] sm:$0xff] }
 0x1a5   :  { %4260 = vmatprep.subr.mxu1 %v808_v5  ;;  %4226 = vmatpush3.msra.mxu0 %v760_v6  ;;  %v860_v3 = vld [vmem:[#allocation6 + $0x1950] sm:$0xff]  ;;  %v875_v5 = vld [vmem:[#allocation6 + $0x19c8] sm:$0xff] }
 0x1a6   :  { %4261 = vmatpush3.msra.mxu1 %v792_v8  ;;  %4227 = vmatprep.subr.mxu0 %v775_v9  ;;  %v827_v6 = vld [vmem:[#allocation6 + $0x1848] sm:$0xff]  ;;  %v842_v9 = vld [vmem:[#allocation6 + $0x18c0] sm:$0xff] }
 0x1a7   :  { %4262 = vmatprep.subr.mxu1 %v807_v11  ;;  %4228 = vmatpush3.msra.mxu0 %v759_v12  ;;  %v859_v8 = vld [vmem:[#allocation6 + $0x1948] sm:$0xff]  ;;  %v874_v11 = vld [vmem:[#allocation6 + $0x19c0] sm:$0xff] }
 0x1a8   :  { %4263 = vmatpush3.msra.mxu1 %v791_v15  ;;  %4229 = vmatprep.subr.mxu0 %v774_v17  ;;  %v826_v12 = vld [vmem:[#allocation6 + $0x1840] sm:$0xff]  ;;  %v841_v17 = vld [vmem:[#allocation6 + $0x18b8] sm:$0xff] }
 0x1a9   :  { %4264 = vmatprep.subr.mxu1 %v806_v18  ;;  %4230 = vmatpush3.msra.mxu0 %v758_v19  ;;  %v858_v15 = vld [vmem:[#allocation6 + $0x1940] sm:$0xff]  ;;  %v873_v18 = vld [vmem:[#allocation6 + $0x19b8] sm:$0xff] }
 0x1aa   :  { %4265 = vmatpush3.msra.mxu1 %v790_v21  ;;  %4231 = vmatprep.subr.mxu0 %v773_v22  ;;  %v825_v19 = vld [vmem:[#allocation6 + $0x1838] sm:$0xff]  ;;  %v840_v22 = vld [vmem:[#allocation6 + $0x18b0] sm:$0xff] }
 0x1ab   :  { %4266 = vmatprep.subr.mxu1 %v805_v47  ;;  %4232 = vmatpush3.msra.mxu0 %v757_v23  ;;  %v857_v21 = vld [vmem:[#allocation6 + $0x1938] sm:$0xff]  ;;  %v872_v47 = vld [vmem:[#allocation6 + $0x19b0] sm:$0xff] }
 0x1ac   :  { %4267 = vmatpush3.msra.mxu1 %v789_v25  ;;  %4233 = vmatprep.subr.mxu0 %v772_v44  ;;  %v824_v23 = vld [vmem:[#allocation6 + $0x1830] sm:$0xff]  ;;  %v839_v44 = vld [vmem:[#allocation6 + $0x18a8] sm:$0xff] }
 0x1ad   :  { %4268 = vmatprep.subr.mxu1 %v804_v26  ;;  %4234 = vmatpush3.msra.mxu0 %v756_v27  ;;  %v856_v25 = vld [vmem:[#allocation6 + $0x1930] sm:$0xff]  ;;  %v871_v26 = vld [vmem:[#allocation6 + $0x19a8] sm:$0xff] }
 0x1ae   :  { %4269 = vmatpush3.msra.mxu1 %v788_v28  ;;  %4235 = vmatprep.subr.mxu0 %v771_v29  ;;  %v823_v27 = vld [vmem:[#allocation6 + $0x1828] sm:$0xff]  ;;  %v838_v29 = vld [vmem:[#allocation6 + $0x18a0] sm:$0xff] }
 0x1af   :  { %4270 = vmatprep.subr.mxu1 %v803_v50  ;;  %4236 = vmatpush3.msra.mxu0 %v755_v30  ;;  %v855_v28 = vld [vmem:[#allocation6 + $0x1928] sm:$0xff]  ;;  %v870_v50 = vld [vmem:[#allocation6 + $0x19a0] sm:$0xff] }
 0x1b0   :  { %4271 = vmatpush3.msra.mxu1 %v787_v31  ;;  %4237 = vmatprep.subr.mxu0 %v770_v32  ;;  %v822_v30 = vld [vmem:[#allocation6 + $0x1820] sm:$0xff]  ;;  %v837_v32 = vld [vmem:[#allocation6 + $0x1898] sm:$0xff] }
 0x1b1   :  { %4272 = vmatprep.subr.mxu1 %v802_v33  ;;  %4238 = vmatpush3.msra.mxu0 %v754_v34  ;;  %v854_v31 = vld [vmem:[#allocation6 + $0x1920] sm:$0xff]  ;;  %v869_v33 = vld [vmem:[#allocation6 + $0x1998] sm:$0xff] }
 0x1b2   :  { %2924 = vmatprep.mubr.f32.mxu0 %v1203_v59  ;;  %4273 = vmatpush3.msra.mxu1 %v786_v36  ;;  %v821_v59 = vld [vmem:[#allocation6 + $0x1818] sm:$0xff]  ;;  %v868_v36 = vld [vmem:[#allocation6 + $0x1990] sm:$0xff] }
 0x1b3   :  { %2925 = vmatmul.mubr.f32.vlgmr.msra.gmra.mxu0 %v1199_v35  ;;  %2994 = vmatprep.mubr.f32.mxu1 %v1211_v37  ;;  %v853_v34 = vld [vmem:[#allocation6 + $0x1918] sm:$0xff]  ;;  %v836_v35 = vld [vmem:[#allocation6 + $0x1890] sm:$0xff] }
 0x1b4   :  { %4277 = vmatprep.subr.mxu0 %v849_v38  ;;  %4312 = vmatprep.subr.mxu1 %v881_v40  ;;  %v820_v37 = vld [vmem:[#allocation6 + $0x1810] sm:$0xff]  ;;  %v835_v40 = vld [vmem:[#allocation6 + $0x1888] sm:$0xff] }
 0x1b5   :  { %2995 = vmatmul.mubr.f32.vlgmr.msra.gmra.mxu1 %v1207_v39  ;;  %4278 = vmatpush3.msra.mxu0 %v833_v41  ;;  %v852_v38 = vld [vmem:[#allocation6 + $0x1910] sm:$0xff]  ;;  %v867_v41 = vld [vmem:[#allocation6 + $0x1988] sm:$0xff] }
 0x1b6   :  { %4313 = vmatpush3.msra.mxu1 %v865_v42  ;;  %4279 = vmatprep.subr.mxu0 %v848_v43  ;;  %v4723_v39 = vld [vmem:[#allocation3 + $0x30] sm:$0xff]  ;;  %v819_v42 = vld [vmem:[#allocation6 + $0x1808] sm:$0xff] }
 0x1b7   :  { %4314 = vmatprep.subr.mxu1 %v880_v45  ;;  %4280 = vmatpush3.msra.mxu0 %v832_v46  ;;  %v851_v43 = vld [vmem:[#allocation6 + $0x1908] sm:$0xff]  ;;  %v834_v45 = vld [vmem:[#allocation6 + $0x1880] sm:$0xff] }
 0x1b8   :  { %4315 = vmatpush3.msra.mxu1 %v864_v48  ;;  %4281 = vmatprep.subr.mxu0 %v847_v49  ;;  %v866_v46 = vld [vmem:[#allocation6 + $0x1980] sm:$0xff]  ;;  %v1219_v48 = vrot.slane %v4723_v39, %v4592_v56 }
 0x1b9   :  { %4316 = vmatprep.subr.mxu1 %v879_v51  ;;  %4282 = vmatpush3.msra.mxu0 %v831_v14  ;;  %v818_v49 = vld [vmem:[#allocation6 + $0x1800] sm:$0xff]  ;;  %v1215_v51 = vrot.slane %v4723_v39, %v4597_v60 }
 0x1ba   :  { %4317 = vmatpush3.msra.mxu1 %v863_v52  ;;  %4283 = vmatprep.subr.mxu0 %v846_v53  ;;  %v850_v14 = vld [vmem:[#allocation6 + $0x1900] sm:$0xff]  ;;  %v1227_v52 = vrot.slane %v4723_v39, %v4600_v63  ;;  %v913_v53 = vld [vmem:[#allocation6 + $0x1af8] sm:$0xff] }
 0x1bb   :  { %4318 = vmatprep.subr.mxu1 %v878_v54  ;;  %4284 = vmatpush3.msra.mxu0 %v830_v55  ;;  %v1223_v54 = vrot.slane %v4723_v39, %v4603_v2  ;;  %v945_v55 = vld [vmem:[#allocation6 + $0x1bf8] sm:$0xff] }
 0x1bc   :  { %4319 = vmatpush3.msra.mxu1 %v862_v20  ;;  %4285 = vmatprep.subr.mxu0 %v845_v57  ;;  %v897_v20 = vld [vmem:[#allocation6 + $0x1a78] sm:$0xff] }
 0x1bd   :  { %4320 = vmatprep.subr.mxu1 %v877_v58  ;;  %4286 = vmatpush3.msra.mxu0 %v829_v61  ;;  %v929_v57 = vld [vmem:[#allocation6 + $0x1b78] sm:$0xff]  ;;  %v912_v58 = vld [vmem:[#allocation6 + $0x1af0] sm:$0xff] }
 0x1be   :  { %4321 = vmatpush3.msra.mxu1 %v861_v62  ;;  %4287 = vmatprep.subr.mxu0 %v844_v24  ;;  %v944_v61 = vld [vmem:[#allocation6 + $0x1bf0] sm:$0xff] }
 0x1bf   :  { %4322 = vmatprep.subr.mxu1 %v876_v0  ;;  %4288 = vmatpush3.msra.mxu0 %v828_v1  ;;  %v896_v62 = vld [vmem:[#allocation6 + $0x1a70] sm:$0xff]  ;;  %v911_v0 = vld [vmem:[#allocation6 + $0x1ae8] sm:$0xff] }
 0x1c0   :  { %4323 = vmatpush3.msra.mxu1 %v860_v3  ;;  %4289 = vmatprep.subr.mxu0 %v843_v4  ;;  %v928_v24 = vld [vmem:[#allocation6 + $0x1b70] sm:$0xff]  ;;  %v943_v1 = vld [vmem:[#allocation6 + $0x1be8] sm:$0xff] }
 0x1c1   :  { %4324 = vmatprep.subr.mxu1 %v875_v5  ;;  %4290 = vmatpush3.msra.mxu0 %v827_v6  ;;  %v895_v3 = vld [vmem:[#allocation6 + $0x1a68] sm:$0xff]  ;;  %v910_v5 = vld [vmem:[#allocation6 + $0x1ae0] sm:$0xff] }
 0x1c2   :  { %4325 = vmatpush3.msra.mxu1 %v859_v8  ;;  %4291 = vmatprep.subr.mxu0 %v842_v9  ;;  %v927_v4 = vld [vmem:[#allocation6 + $0x1b68] sm:$0xff]  ;;  %v942_v6 = vld [vmem:[#allocation6 + $0x1be0] sm:$0xff] }
 0x1c3   :  { %4326 = vmatprep.subr.mxu1 %v874_v11  ;;  %4292 = vmatpush3.msra.mxu0 %v826_v12  ;;  %v894_v8 = vld [vmem:[#allocation6 + $0x1a60] sm:$0xff]  ;;  %v909_v11 = vld [vmem:[#allocation6 + $0x1ad8] sm:$0xff] }
 0x1c4   :  { %4327 = vmatpush3.msra.mxu1 %v858_v15  ;;  %4293 = vmatprep.subr.mxu0 %v841_v17  ;;  %v926_v9 = vld [vmem:[#allocation6 + $0x1b60] sm:$0xff]  ;;  %v941_v12 = vld [vmem:[#allocation6 + $0x1bd8] sm:$0xff] }
 0x1c5   :  { %4328 = vmatprep.subr.mxu1 %v873_v18  ;;  %4294 = vmatpush3.msra.mxu0 %v825_v19  ;;  %v893_v15 = vld [vmem:[#allocation6 + $0x1a58] sm:$0xff]  ;;  %v908_v18 = vld [vmem:[#allocation6 + $0x1ad0] sm:$0xff] }
 0x1c6   :  { %4329 = vmatpush3.msra.mxu1 %v857_v21  ;;  %4295 = vmatprep.subr.mxu0 %v840_v22  ;;  %v925_v17 = vld [vmem:[#allocation6 + $0x1b58] sm:$0xff]  ;;  %v940_v19 = vld [vmem:[#allocation6 + $0x1bd0] sm:$0xff] }
 0x1c7   :  { %4330 = vmatprep.subr.mxu1 %v872_v47  ;;  %4296 = vmatpush3.msra.mxu0 %v824_v23  ;;  %v892_v21 = vld [vmem:[#allocation6 + $0x1a50] sm:$0xff]  ;;  %v907_v47 = vld [vmem:[#allocation6 + $0x1ac8] sm:$0xff] }
 0x1c8   :  { %4331 = vmatpush3.msra.mxu1 %v856_v25  ;;  %4297 = vmatprep.subr.mxu0 %v839_v44  ;;  %v924_v22 = vld [vmem:[#allocation6 + $0x1b50] sm:$0xff]  ;;  %v939_v23 = vld [vmem:[#allocation6 + $0x1bc8] sm:$0xff] }
 0x1c9   :  { %4332 = vmatprep.subr.mxu1 %v871_v26  ;;  %4298 = vmatpush3.msra.mxu0 %v823_v27  ;;  %v891_v25 = vld [vmem:[#allocation6 + $0x1a48] sm:$0xff]  ;;  %v906_v26 = vld [vmem:[#allocation6 + $0x1ac0] sm:$0xff] }
 0x1ca   :  { %4333 = vmatpush3.msra.mxu1 %v855_v28  ;;  %4299 = vmatprep.subr.mxu0 %v838_v29  ;;  %v923_v44 = vld [vmem:[#allocation6 + $0x1b48] sm:$0xff]  ;;  %v938_v27 = vld [vmem:[#allocation6 + $0x1bc0] sm:$0xff] }
 0x1cb   :  { %4334 = vmatprep.subr.mxu1 %v870_v50  ;;  %4300 = vmatpush3.msra.mxu0 %v822_v30  ;;  %v890_v28 = vld [vmem:[#allocation6 + $0x1a40] sm:$0xff]  ;;  %v905_v50 = vld [vmem:[#allocation6 + $0x1ab8] sm:$0xff] }
 0x1cc   :  { %4335 = vmatpush3.msra.mxu1 %v854_v31  ;;  %4301 = vmatprep.subr.mxu0 %v837_v32  ;;  %v922_v29 = vld [vmem:[#allocation6 + $0x1b40] sm:$0xff]  ;;  %v937_v30 = vld [vmem:[#allocation6 + $0x1bb8] sm:$0xff] }
 0x1cd   :  { %4336 = vmatprep.subr.mxu1 %v869_v33  ;;  %4302 = vmatpush3.msra.mxu0 %v821_v59  ;;  %v889_v31 = vld [vmem:[#allocation6 + $0x1a38] sm:$0xff]  ;;  %v904_v33 = vld [vmem:[#allocation6 + $0x1ab0] sm:$0xff] }
 0x1ce   :  { %4337 = vmatpush3.msra.mxu1 %v853_v34  ;;  %4303 = vmatprep.subr.mxu0 %v836_v35  ;;  %v921_v32 = vld [vmem:[#allocation6 + $0x1b38] sm:$0xff]  ;;  %v936_v59 = vld [vmem:[#allocation6 + $0x1bb0] sm:$0xff] }
 0x1cf   :  { %4338 = vmatprep.subr.mxu1 %v868_v36  ;;  %4304 = vmatpush3.msra.mxu0 %v820_v37  ;;  %v888_v34 = vld [vmem:[#allocation6 + $0x1a30] sm:$0xff]  ;;  %v903_v36 = vld [vmem:[#allocation6 + $0x1aa8] sm:$0xff] }
 0x1d0   :  { %4339 = vmatpush3.msra.mxu1 %v852_v38  ;;  %4305 = vmatprep.subr.mxu0 %v835_v40  ;;  %v920_v35 = vld [vmem:[#allocation6 + $0x1b30] sm:$0xff]  ;;  %v935_v37 = vld [vmem:[#allocation6 + $0x1ba8] sm:$0xff] }
 0x1d1   :  { %4340 = vmatprep.subr.mxu1 %v867_v41  ;;  %4306 = vmatpush3.msra.mxu0 %v819_v42  ;;  %v887_v38 = vld [vmem:[#allocation6 + $0x1a28] sm:$0xff]  ;;  %v902_v41 = vld [vmem:[#allocation6 + $0x1aa0] sm:$0xff] }
 0x1d2   :  { %4341 = vmatpush3.msra.mxu1 %v851_v43  ;;  %4307 = vmatprep.subr.mxu0 %v834_v45  ;;  %v919_v40 = vld [vmem:[#allocation6 + $0x1b28] sm:$0xff]  ;;  %v934_v42 = vld [vmem:[#allocation6 + $0x1ba0] sm:$0xff] }
 0x1d3   :  { %4342 = vmatprep.subr.mxu1 %v866_v46  ;;  %4308 = vmatpush3.msra.mxu0 %v818_v49  ;;  %v886_v43 = vld [vmem:[#allocation6 + $0x1a20] sm:$0xff]  ;;  %v901_v46 = vld [vmem:[#allocation6 + $0x1a98] sm:$0xff] }
 0x1d4   :  { %3064 = vmatprep.mubr.f32.mxu0 %v1219_v48  ;;  %4343 = vmatpush3.msra.mxu1 %v850_v14  ;;  %v918_v45 = vld [vmem:[#allocation6 + $0x1b20] sm:$0xff]  ;;  %v933_v48 = vld [vmem:[#allocation6 + $0x1b98] sm:$0xff]  ;;  %v900_v14 = vld [vmem:[#allocation6 + $0x1a90] sm:$0xff] }
 0x1d5   :  { %3065 = vmatmul.mubr.f32.vlgmr.msra.gmra.mxu0 %v1215_v51  ;;  %3134 = vmatprep.mubr.f32.mxu1 %v1227_v52  ;;  %v885_v49 = vld [vmem:[#allocation6 + $0x1a18] sm:$0xff]  ;;  %v932_v52 = vld [vmem:[#allocation6 + $0x1b90] sm:$0xff] }
 0x1d6   :  { %4347 = vmatprep.subr.mxu0 %v913_v53  ;;  %4382 = vmatprep.subr.mxu1 %v945_v55  ;;  %v917_v51 = vld [vmem:[#allocation6 + $0x1b18] sm:$0xff]  ;;  %v884_v53 = vld [vmem:[#allocation6 + $0x1a10] sm:$0xff]  ;;  %v899_v55 = vld [vmem:[#allocation6 + $0x1a88] sm:$0xff] }
 0x1d7   :  { %3135 = vmatmul.mubr.f32.vlgmr.msra.gmra.mxu1 %v1223_v54  ;;  %4348 = vmatpush3.msra.mxu0 %v897_v20  ;;  %v916_v54 = vld [vmem:[#allocation6 + $0x1b10] sm:$0xff]  ;;  %v931_v20 = vld [vmem:[#allocation6 + $0x1b88] sm:$0xff] }
 0x1d8   :  { %4383 = vmatpush3.msra.mxu1 %v929_v57  ;;  %4349 = vmatprep.subr.mxu0 %v912_v58  ;;  %v883_v57 = vld [vmem:[#allocation6 + $0x1a08] sm:$0xff] }
 0x1d9   :  { %4384 = vmatprep.subr.mxu1 %v944_v61  ;;  %4350 = vmatpush3.msra.mxu0 %v896_v62  ;;  %v915_v58 = vld [vmem:[#allocation6 + $0x1b08] sm:$0xff]  ;;  %v898_v61 = vld [vmem:[#allocation6 + $0x1a80] sm:$0xff] }
 0x1da   :  { %4385 = vmatpush3.msra.mxu1 %v928_v24  ;;  %4351 = vmatprep.subr.mxu0 %v911_v0  ;;  %v930_v62 = vld [vmem:[#allocation6 + $0x1b80] sm:$0xff]  ;;  %v1235_v24 = vrot.slane %v4723_v39, %v4614_v7  ;;  %v1009_v7 = vld [vmem:[#allocation6 + $0x1df8] sm:$0xff] }
 0x1db   :  { %4386 = vmatprep.subr.mxu1 %v943_v1  ;;  %4352 = vmatpush3.msra.mxu0 %v895_v3  ;;  %v882_v0 = vld [vmem:[#allocation6 + $0x1a00] sm:$0xff]  ;;  %v1231_v1 = vrot.slane %v4723_v39, %v4617_v10  ;;  %v976_v10 = vld [vmem:[#allocation6 + $0x1cf0] sm:$0xff] }
 0x1dc   :  { %4387 = vmatpush3.msra.mxu1 %v927_v4  ;;  %4353 = vmatprep.subr.mxu0 %v910_v5  ;;  %v914_v3 = vld [vmem:[#allocation6 + $0x1b00] sm:$0xff]  ;;  %v1243_v4 = vrot.slane %v4723_v39, %v4620_v13  ;;  %v977_v5 = vld [vmem:[#allocation6 + $0x1cf8] sm:$0xff]  ;;  %v960_v13 = vld [vmem:[#allocation6 + $0x1c70] sm:$0xff] }
 0x1dd   :  { %4388 = vmatprep.subr.mxu1 %v942_v6  ;;  %4354 = vmatpush3.msra.mxu0 %v894_v8  ;;  %v1239_v6 = vrot.slane %v4723_v39, %v4623_v16  ;;  %v961_v8 = vld [vmem:[#allocation6 + $0x1c78] sm:$0xff]  ;;  %v959_v16 = vld [vmem:[#allocation6 + $0x1c68] sm:$0xff] }
 0x1de   :  { %4389 = vmatpush3.msra.mxu1 %v926_v9  ;;  %4355 = vmatprep.subr.mxu0 %v909_v11  ;;  %v993_v9 = vld [vmem:[#allocation6 + $0x1d78] sm:$0xff]  ;;  %v1008_v11 = vld [vmem:[#allocation6 + $0x1df0] sm:$0xff]  ;;  %v991_v39 = vld [vmem:[#allocation6 + $0x1d68] sm:$0xff] }
 0x1df   :  { %4390 = vmatprep.subr.mxu1 %v941_v12  ;;  %4356 = vmatpush3.msra.mxu0 %v893_v15  ;;  %v992_v12 = vld [vmem:[#allocation6 + $0x1d70] sm:$0xff]  ;;  %v975_v15 = vld [vmem:[#allocation6 + $0x1ce8] sm:$0xff] }
 0x1e0   :  { %4391 = vmatpush3.msra.mxu1 %v925_v17  ;;  %4357 = vmatprep.subr.mxu0 %v908_v18  ;;  %v1007_v17 = vld [vmem:[#allocation6 + $0x1de8] sm:$0xff]  ;;  %v974_v18 = vld [vmem:[#allocation6 + $0x1ce0] sm:$0xff] }
 0x1e1   :  { %4392 = vmatprep.subr.mxu1 %v940_v19  ;;  %4358 = vmatpush3.msra.mxu0 %v892_v21  ;;  %v1006_v19 = vld [vmem:[#allocation6 + $0x1de0] sm:$0xff] }
 0x1e2   :  { %4393 = vmatpush3.msra.mxu1 %v924_v22  ;;  %4359 = vmatprep.subr.mxu0 %v907_v47  ;;  %v958_v21 = vld [vmem:[#allocation6 + $0x1c60] sm:$0xff]  ;;  %v973_v47 = vld [vmem:[#allocation6 + $0x1cd8] sm:$0xff] }
 0x1e3   :  { %4394 = vmatprep.subr.mxu1 %v939_v23  ;;  %4360 = vmatpush3.msra.mxu0 %v891_v25  ;;  %v990_v22 = vld [vmem:[#allocation6 + $0x1d60] sm:$0xff]  ;;  %v1005_v23 = vld [vmem:[#allocation6 + $0x1dd8] sm:$0xff] }
 0x1e4   :  { %4395 = vmatpush3.msra.mxu1 %v923_v44  ;;  %4361 = vmatprep.subr.mxu0 %v906_v26  ;;  %v957_v25 = vld [vmem:[#allocation6 + $0x1c58] sm:$0xff]  ;;  %v972_v26 = vld [vmem:[#allocation6 + $0x1cd0] sm:$0xff] }
 0x1e5   :  { %4396 = vmatprep.subr.mxu1 %v938_v27  ;;  %4362 = vmatpush3.msra.mxu0 %v890_v28  ;;  %v989_v44 = vld [vmem:[#allocation6 + $0x1d58] sm:$0xff]  ;;  %v1004_v27 = vld [vmem:[#allocation6 + $0x1dd0] sm:$0xff] }
 0x1e6   :  { %4397 = vmatpush3.msra.mxu1 %v922_v29  ;;  %4363 = vmatprep.subr.mxu0 %v905_v50  ;;  %v956_v28 = vld [vmem:[#allocation6 + $0x1c50] sm:$0xff]  ;;  %v971_v50 = vld [vmem:[#allocation6 + $0x1cc8] sm:$0xff] }
 0x1e7   :  { %4398 = vmatprep.subr.mxu1 %v937_v30  ;;  %4364 = vmatpush3.msra.mxu0 %v889_v31  ;;  %v988_v29 = vld [vmem:[#allocation6 + $0x1d50] sm:$0xff]  ;;  %v1003_v30 = vld [vmem:[#allocation6 + $0x1dc8] sm:$0xff] }
 0x1e8   :  { %4399 = vmatpush3.msra.mxu1 %v921_v32  ;;  %4365 = vmatprep.subr.mxu0 %v904_v33  ;;  %v955_v31 = vld [vmem:[#allocation6 + $0x1c48] sm:$0xff]  ;;  %v970_v33 = vld [vmem:[#allocation6 + $0x1cc0] sm:$0xff] }
 0x1e9   :  { %4400 = vmatprep.subr.mxu1 %v936_v59  ;;  %4366 = vmatpush3.msra.mxu0 %v888_v34  ;;  %v987_v32 = vld [vmem:[#allocation6 + $0x1d48] sm:$0xff]  ;;  %v1002_v59 = vld [vmem:[#allocation6 + $0x1dc0] sm:$0xff] }
 0x1ea   :  { %4401 = vmatpush3.msra.mxu1 %v920_v35  ;;  %4367 = vmatprep.subr.mxu0 %v903_v36  ;;  %v954_v34 = vld [vmem:[#allocation6 + $0x1c40] sm:$0xff]  ;;  %v969_v36 = vld [vmem:[#allocation6 + $0x1cb8] sm:$0xff] }
 0x1eb   :  { %4402 = vmatprep.subr.mxu1 %v935_v37  ;;  %4368 = vmatpush3.msra.mxu0 %v887_v38  ;;  %v986_v35 = vld [vmem:[#allocation6 + $0x1d40] sm:$0xff]  ;;  %v1001_v37 = vld [vmem:[#allocation6 + $0x1db8] sm:$0xff] }
 0x1ec   :  { %4403 = vmatpush3.msra.mxu1 %v919_v40  ;;  %4369 = vmatprep.subr.mxu0 %v902_v41  ;;  %v953_v38 = vld [vmem:[#allocation6 + $0x1c38] sm:$0xff]  ;;  %v968_v41 = vld [vmem:[#allocation6 + $0x1cb0] sm:$0xff] }
 0x1ed   :  { %4404 = vmatprep.subr.mxu1 %v934_v42  ;;  %4370 = vmatpush3.msra.mxu0 %v886_v43  ;;  %v985_v40 = vld [vmem:[#allocation6 + $0x1d38] sm:$0xff]  ;;  %v1000_v42 = vld [vmem:[#allocation6 + $0x1db0] sm:$0xff] }
 0x1ee   :  { %4405 = vmatpush3.msra.mxu1 %v918_v45  ;;  %4371 = vmatprep.subr.mxu0 %v901_v46  ;;  %v952_v43 = vld [vmem:[#allocation6 + $0x1c30] sm:$0xff]  ;;  %v967_v46 = vld [vmem:[#allocation6 + $0x1ca8] sm:$0xff] }
 0x1ef   :  { %4406 = vmatprep.subr.mxu1 %v933_v48  ;;  %4372 = vmatpush3.msra.mxu0 %v885_v49  ;;  %v984_v45 = vld [vmem:[#allocation6 + $0x1d30] sm:$0xff]  ;;  %v999_v48 = vld [vmem:[#allocation6 + $0x1da8] sm:$0xff] }
 0x1f0   :  { %4407 = vmatpush3.msra.mxu1 %v917_v51  ;;  %4373 = vmatprep.subr.mxu0 %v900_v14  ;;  %v951_v49 = vld [vmem:[#allocation6 + $0x1c28] sm:$0xff]  ;;  %v966_v14 = vld [vmem:[#allocation6 + $0x1ca0] sm:$0xff] }
 0x1f1   :  { %4408 = vmatprep.subr.mxu1 %v932_v52  ;;  %4374 = vmatpush3.msra.mxu0 %v884_v53  ;;  %v983_v51 = vld [vmem:[#allocation6 + $0x1d28] sm:$0xff]  ;;  %v998_v52 = vld [vmem:[#allocation6 + $0x1da0] sm:$0xff] }
 0x1f2   :  { %4409 = vmatpush3.msra.mxu1 %v916_v54  ;;  %4375 = vmatprep.subr.mxu0 %v899_v55  ;;  %v950_v53 = vld [vmem:[#allocation6 + $0x1c20] sm:$0xff]  ;;  %v965_v55 = vld [vmem:[#allocation6 + $0x1c98] sm:$0xff] }
 0x1f3   :  { %4410 = vmatprep.subr.mxu1 %v931_v20  ;;  %4376 = vmatpush3.msra.mxu0 %v883_v57  ;;  %v982_v54 = vld [vmem:[#allocation6 + $0x1d20] sm:$0xff]  ;;  %v997_v20 = vld [vmem:[#allocation6 + $0x1d98] sm:$0xff] }
 0x1f4   :  { %4411 = vmatpush3.msra.mxu1 %v915_v58  ;;  %4377 = vmatprep.subr.mxu0 %v898_v61  ;;  %v949_v57 = vld [vmem:[#allocation6 + $0x1c18] sm:$0xff]  ;;  %v964_v61 = vld [vmem:[#allocation6 + $0x1c90] sm:$0xff] }
 0x1f5   :  { %4412 = vmatprep.subr.mxu1 %v930_v62  ;;  %4378 = vmatpush3.msra.mxu0 %v882_v0  ;;  %v981_v58 = vld [vmem:[#allocation6 + $0x1d18] sm:$0xff]  ;;  %v996_v62 = vld [vmem:[#allocation6 + $0x1d90] sm:$0xff] }
 0x1f6   :  { %3204 = vmatprep.mubr.f32.mxu0 %v1235_v24  ;;  %4413 = vmatpush3.msra.mxu1 %v914_v3  ;;  %v948_v24 = vld [vmem:[#allocation6 + $0x1c10] sm:$0xff]  ;;  %v963_v3 = vld [vmem:[#allocation6 + $0x1c88] sm:$0xff] }
 0x1f7   :  { %3205 = vmatmul.mubr.f32.vlgmr.msra.gmra.mxu0 %v1231_v1  ;;  %3274 = vmatprep.mubr.f32.mxu1 %v1243_v4  ;;  %v980_v0 = vld [vmem:[#allocation6 + $0x1d10] sm:$0xff]  ;;  %v49_v1 = vld [vmem:[#allocation3 + $0x38] sm:$0xf]  ;;  %v995_v4 = vld [vmem:[#allocation6 + $0x1d88] sm:$0xff] }
 0x1f8   :  { %4417 = vmatprep.subr.mxu0 %v977_v5  ;;  %4452 = vmatprep.subr.mxu1 %v1009_v7  ;;  %v947_v5 = vld [vmem:[#allocation6 + $0x1c08] sm:$0xff]  ;;  %v962_v7 = vld [vmem:[#allocation6 + $0x1c80] sm:$0xff] }
 0x1f9   :  { %3275 = vmatmul.mubr.f32.vlgmr.msra.gmra.mxu1 %v1239_v6  ;;  %4418 = vmatpush3.msra.mxu0 %v961_v8  ;;  %v979_v6 = vld [vmem:[#allocation6 + $0x1d08] sm:$0xff]  ;;  %v994_v8 = vld [vmem:[#allocation6 + $0x1d80] sm:$0xff] }
 0x1fa   :  { %4453 = vmatpush3.msra.mxu1 %v993_v9  ;;  %4419 = vmatprep.subr.mxu0 %v976_v10  ;;  %v1251_v9 = vrot.slane %v49_v1, %v4592_v56  ;;  %v946_v10 = vld [vmem:[#allocation6 + $0x1c00] sm:$0xff]  ;;  %v3469_v56 = vpop.f32.mrf.mxu0 }
 0x1fb   :  { %4454 = vmatprep.subr.mxu1 %v1008_v11  ;;  %4420 = vmatpush3.msra.mxu0 %v960_v13  ;;  %v1259_v11 = vrot.slane %v49_v1, %v4600_v63  ;;  %v978_v13 = vld [vmem:[#allocation6 + $0x1d00] sm:$0xff] }
 0x1fc   :  { %4455 = vmatpush3.msra.mxu1 %v992_v12  ;;  %4421 = vmatprep.subr.mxu0 %v975_v15  ;;  %v1247_v12 = vrot.slane %v49_v1, %v4597_v60  ;;  %v1255_v15 = vrot.slane %v49_v1, %v4603_v2 }
 0x1fd   :  { %4456 = vmatprep.subr.mxu1 %v1007_v17  ;;  %4422 = vmatpush3.msra.mxu0 %v959_v16  ;;  %v3504_v17 = vpop.f32.mrf.mxu1  ;;  %v3470_v16 = vpop.f32.mrf.mxu0 }
 0x1fe   :  { %4457 = vmatpush3.msra.mxu1 %v991_v39  ;;  %4423 = vmatprep.subr.mxu0 %v974_v18  ;;  %v3471_v63 = vadd.f32 %v3470_v16, %v3469_v56  ;;  %v1011_v18 = vstv %s4753_s2  ;;  %s4562_s2 = smov [#allocation8]  }
 0x1ff   :  { %4458 = vmatprep.subr.mxu1 %v1006_v19  ;;  %4424 = vmatpush3.msra.mxu0 %v958_v21  ;;  %v3539_v39 = vpop.f32.mrf.mxu0  ;;  %v3505_v60 = vpop.f32.mrf.mxu1  ;;  %s3427_s24 = sshll.u32 %s4562_s2, 4  ;;  %s3428_s24 = int_to_ptr.vmem [resolvable:$true] %s3427_s24 }
 0x200   :  { %4459 = vmatpush3.msra.mxu1 %v990_v22  ;;  %4425 = vmatprep.subr.mxu0 %v973_v47  ;;  %v1387_v21 = vadd.f32 %v3471_v63, %v1011_v18  ;;  %v3506_v22 = vadd.f32 %v3505_v60, %v3504_v17  ;;  %s4532_s25 = scalar_lea.vmem %s3428_s24, 16  ;;  %s4536_s26 = scalar_lea.vmem %s3428_s24, 32 }
 0x201   :  { %4460 = vmatprep.subr.mxu1 %v1005_v23  ;;  %4426 = vmatpush3.msra.mxu0 %v957_v25  ;;  %v3574_v19 = vpop.f32.mrf.mxu1  ;;  %v3540_v2 = vpop.f32.mrf.mxu0  ;;  %p4533_p10 = scmp.ne.s32.totalorder %s3428_s24, %s4532_s25  ;;  %p4537_p11 = scmp.lt.s32.totalorder %s3428_s24, %s3428_s24 }
 0x202   :  { %4461 = vmatpush3.msra.mxu1 %v989_v44  ;;  %4427 = vmatprep.subr.mxu0 %v972_v26  ;;  %v3541_v23 = vadd.f32 %v3540_v2, %v3539_v39  ;;  %v1457_v44 = vadd.f32 %v3506_v22, %v1387_v21  ;;  %p4538_p12 = scmp.lt.s32.totalorder %s4536_s26, %s4532_s25 }
 0x203   :  { %4462 = vmatprep.subr.mxu1 %v1004_v27  ;;  %4428 = vmatpush3.msra.mxu0 %v956_v28  ;;  %v3609_v47 = vpop.f32.mrf.mxu0  ;;  %v3575_v25 = vpop.f32.mrf.mxu1 }
 0x204   :  { %4463 = vmatpush3.msra.mxu1 %v988_v29  ;;  %4429 = vmatprep.subr.mxu0 %v971_v50  ;;  %v1527_v28 = vadd.f32 %v3541_v23, %v1457_v44  ;;  %v3576_v29 = vadd.f32 %v3575_v25, %v3574_v19  ;;  %p4539_p13 = por %p4538_p12, %p4537_p11 }
 0x205   :  { %4464 = vmatprep.subr.mxu1 %v1003_v30  ;;  %4430 = vmatpush3.msra.mxu0 %v955_v31  ;;  %v3644_v26 = vpop.f32.mrf.mxu1  ;;  %v3610_v27 = vpop.f32.mrf.mxu0 }
 0x206   :  { %4465 = vmatpush3.msra.mxu1 %v987_v32  ;;  %4431 = vmatprep.subr.mxu0 %v970_v33  ;;  %v3611_v30 = vadd.f32 %v3610_v27, %v3609_v47  ;;  %v1597_v32 = vadd.f32 %v3576_v29, %v1527_v28  ;;  %p4540_p0 = pnand %p4539_p13, %p4533_p10 }
 0x207   :  { %4466 = vmatprep.subr.mxu1 %v1002_v59  ;;  %4432 = vmatpush3.msra.mxu0 %v954_v34  ;;  %v3679_v50 = vpop.f32.mrf.mxu0  ;;  %v3645_v31 = vpop.f32.mrf.mxu1 }
 0x208   :  { %4467 = vmatpush3.msra.mxu1 %v986_v35  ;;  %4433 = vmatprep.subr.mxu0 %v969_v36  ;;  %v1667_v34 = vadd.f32 %v3611_v30, %v1597_v32  ;;  %v3646_v35 = vadd.f32 %v3645_v31, %v3644_v26 }
 0x209   :  { %4468 = vmatprep.subr.mxu1 %v1001_v37  ;;  %4434 = vmatpush3.msra.mxu0 %v953_v38  ;;  %v3714_v33 = vpop.f32.mrf.mxu1  ;;  %v3680_v59 = vpop.f32.mrf.mxu0 }
 0x20a   :  { %4469 = vmatpush3.msra.mxu1 %v985_v40  ;;  %4435 = vmatprep.subr.mxu0 %v968_v41  ;;  %v3681_v37 = vadd.f32 %v3680_v59, %v3679_v50  ;;  %v1737_v40 = vadd.f32 %v3646_v35, %v1667_v34 }
 0x20b   :  { %4470 = vmatprep.subr.mxu1 %v1000_v42  ;;  %4436 = vmatpush3.msra.mxu0 %v952_v43  ;;  %v3749_v36 = vpop.f32.mrf.mxu0  ;;  %v3715_v38 = vpop.f32.mrf.mxu1 }
 0x20c   :  { %4471 = vmatpush3.msra.mxu1 %v984_v45  ;;  %4437 = vmatprep.subr.mxu0 %v967_v46  ;;  %v1807_v43 = vadd.f32 %v3681_v37, %v1737_v40  ;;  %v3716_v45 = vadd.f32 %v3715_v38, %v3714_v33 }
 0x20d   :  { %4472 = vmatprep.subr.mxu1 %v999_v48  ;;  %4438 = vmatpush3.msra.mxu0 %v951_v49  ;;  %v3784_v41 = vpop.f32.mrf.mxu1  ;;  %v3750_v42 = vpop.f32.mrf.mxu0 }
 0x20e   :  { %4473 = vmatpush3.msra.mxu1 %v983_v51  ;;  %4439 = vmatprep.subr.mxu0 %v966_v14  ;;  %v3751_v48 = vadd.f32 %v3750_v42, %v3749_v36  ;;  %v1877_v51 = vadd.f32 %v3716_v45, %v1807_v43 }
 0x20f   :  { %4474 = vmatprep.subr.mxu1 %v998_v52  ;;  %4440 = vmatpush3.msra.mxu0 %v950_v53  ;;  %v3819_v46 = vpop.f32.mrf.mxu0  ;;  %v3785_v49 = vpop.f32.mrf.mxu1 }
 0x210   :  { %4475 = vmatpush3.msra.mxu1 %v982_v54  ;;  %4441 = vmatprep.subr.mxu0 %v965_v55  ;;  %v1947_v53 = vadd.f32 %v3751_v48, %v1877_v51  ;;  %v3786_v54 = vadd.f32 %v3785_v49, %v3784_v41 }
 0x211   :  { %4476 = vmatprep.subr.mxu1 %v997_v20  ;;  %4442 = vmatpush3.msra.mxu0 %v949_v57  ;;  %v3854_v14 = vpop.f32.mrf.mxu1  ;;  %v3820_v52 = vpop.f32.mrf.mxu0 }
 0x212   :  { %4477 = vmatpush3.msra.mxu1 %v981_v58  ;;  %4443 = vmatprep.subr.mxu0 %v964_v61  ;;  %v3821_v20 = vadd.f32 %v3820_v52, %v3819_v46  ;;  %v2017_v58 = vadd.f32 %v3786_v54, %v1947_v53 }
 0x213   :  { %4478 = vmatprep.subr.mxu1 %v996_v62  ;;  %4444 = vmatpush3.msra.mxu0 %v948_v24  ;;  %v3889_v55 = vpop.f32.mrf.mxu0  ;;  %v3855_v57 = vpop.f32.mrf.mxu1 }
 0x214   :  { %4479 = vmatpush3.msra.mxu1 %v980_v0  ;;  %4445 = vmatprep.subr.mxu0 %v963_v3  ;;  %v2087_v24 = vadd.f32 %v3821_v20, %v2017_v58  ;;  %v3856_v0 = vadd.f32 %v3855_v57, %v3854_v14 }
 0x215   :  { %4480 = vmatprep.subr.mxu1 %v995_v4  ;;  %4446 = vmatpush3.msra.mxu0 %v947_v5  ;;  %v3924_v61 = vpop.f32.mrf.mxu1  ;;  %v3890_v62 = vpop.f32.mrf.mxu0 }
 0x216   :  { %4481 = vmatpush3.msra.mxu1 %v979_v6  ;;  %4447 = vmatprep.subr.mxu0 %v962_v7  ;;  %v3891_v3 = vadd.f32 %v3890_v62, %v3889_v55  ;;  %v2157_v5 = vadd.f32 %v3856_v0, %v2087_v24 }
 0x217   :  { %4482 = vmatprep.subr.mxu1 %v994_v8  ;;  %4448 = vmatpush3.msra.mxu0 %v946_v10  ;;  %v3959_v1 = vpop.f32.mrf.mxu0  ;;  %v3925_v4 = vpop.f32.mrf.mxu1 }
 0x218   :  { %3344 = vmatprep.mubr.f32.mxu0 %v1251_v9  ;;  %4483 = vmatpush3.msra.mxu1 %v978_v13  ;;  %v2227_v8 = vadd.f32 %v3891_v3, %v2157_v5  ;;  %v3926_v9 = vadd.f32 %v3925_v4, %v3924_v61 }
 0x219   :  { %3414 = vmatprep.mubr.f32.mxu1 %v1259_v11  ;;  %3345 = vmatmul.mubr.f32.vlgmr.msra.gmra.mxu0 %v1247_v12  ;;  %v3994_v6 = vpop.f32.mrf.mxu1  ;;  %v3960_v7 = vpop.f32.mrf.mxu0 }
 0x21a   :  { %3415 = vmatmul.mubr.f32.vlgmr.msra.gmra.mxu1 %v1255_v15  ;;  %v3961_v11 = vadd.f32 %v3960_v7, %v3959_v1  ;;  %v2297_v12 = vadd.f32 %v3926_v9, %v2227_v8 }
 0x21b   :  { %v4029_v10 = vpop.f32.mrf.mxu0  ;;  %v3995_v13 = vpop.f32.mrf.mxu1 }
 0x21c   :  { %v2367_v17 = vadd.f32 %v3961_v11, %v2297_v12  ;;  %v3996_v16 = vadd.f32 %v3995_v13, %v3994_v6 }
 0x21d   :  { %v4064_v15 = vpop.f32.mrf.mxu1  ;;  %v4030_v56 = vpop.f32.mrf.mxu0 }
 0x21e   :  { %v4031_v63 = vadd.f32 %v4030_v56, %v4029_v10  ;;  %v2437_v60 = vadd.f32 %v3996_v16, %v2367_v17 }
 0x21f   :  { %v4065_v18 = vpop.f32.mrf.mxu1 }
 0x220   :  { %v2507_v21 = vadd.f32 %v4031_v63, %v2437_v60  ;;  %v4066_v22 = vadd.f32 %v4065_v18, %v4064_v15 }
 0x222   :  { %v2577_v44 = vadd.f32 %v4066_v22, %v2507_v21 }
 0x22f   :  { %v4099_v39 = vpop.f32.mrf.mxu0 }
 0x231   :  { %v4134_v19 = vpop.f32.mrf.mxu1  ;;  %v4100_v2 = vpop.f32.mrf.mxu0 }
 0x232   :  { %v4101_v23 = vadd.f32 %v4100_v2, %v4099_v39 }
 0x233   :  { %v4135_v25 = vpop.f32.mrf.mxu1 }
 0x234   :  { %v2647_v28 = vadd.f32 %v4101_v23, %v2577_v44  ;;  %v4136_v29 = vadd.f32 %v4135_v25, %v4134_v19 }
 0x236   :  { %v2717_v32 = vadd.f32 %v4136_v29, %v2647_v28 }
 0x251   :  { %v4169_v47 = vpop.f32.mrf.mxu0 }
 0x253   :  { %v4204_v26 = vpop.f32.mrf.mxu1  ;;  %v4170_v27 = vpop.f32.mrf.mxu0 }
 0x254   :  { %v4171_v30 = vadd.f32 %v4170_v27, %v4169_v47 }
 0x255   :  { %v4205_v31 = vpop.f32.mrf.mxu1 }
 0x256   :  { %v2787_v34 = vadd.f32 %v4171_v30, %v2717_v32  ;;  %v4206_v35 = vadd.f32 %v4205_v31, %v4204_v26 }
 0x258   :  { %v2857_v40 = vadd.f32 %v4206_v35, %v2787_v34 }
 0x273   :  { %v4239_v50 = vpop.f32.mrf.mxu0 }
 0x275   :  { %v4274_v33 = vpop.f32.mrf.mxu1  ;;  %v4240_v59 = vpop.f32.mrf.mxu0 }
 0x276   :  { %v4241_v37 = vadd.f32 %v4240_v59, %v4239_v50 }
 0x277   :  { %v4275_v38 = vpop.f32.mrf.mxu1 }
 0x278   :  { %v2927_v43 = vadd.f32 %v4241_v37, %v2857_v40  ;;  %v4276_v45 = vadd.f32 %v4275_v38, %v4274_v33 }
 0x27a   :  { %v2997_v51 = vadd.f32 %v4276_v45, %v2927_v43 }
 0x295   :  { %v4309_v36 = vpop.f32.mrf.mxu0 }
 0x297   :  { %v4344_v41 = vpop.f32.mrf.mxu1  ;;  %v4310_v42 = vpop.f32.mrf.mxu0 }
 0x298   :  { %v4311_v48 = vadd.f32 %v4310_v42, %v4309_v36 }
 0x299   :  { %v4345_v49 = vpop.f32.mrf.mxu1 }
 0x29a   :  { %v3067_v53 = vadd.f32 %v4311_v48, %v2997_v51  ;;  %v4346_v54 = vadd.f32 %v4345_v49, %v4344_v41 }
 0x29c   :  { %v3137_v57 = vadd.f32 %v4346_v54, %v3067_v53 }
 0x2b7   :  { %v4379_v46 = vpop.f32.mrf.mxu0 }
 0x2b9   :  { %v4414_v14 = vpop.f32.mrf.mxu1  ;;  %v4380_v52 = vpop.f32.mrf.mxu0 }
 0x2ba   :  { %v4381_v55 = vadd.f32 %v4380_v52, %v4379_v46 }
 0x2bb   :  { %v4415_v20 = vpop.f32.mrf.mxu1 }
 0x2bc   :  { %v3207_v58 = vadd.f32 %v4381_v55, %v3137_v57  ;;  %v4416_v61 = vadd.f32 %v4415_v20, %v4414_v14 }
 0x2be   :  { %v3277_v3 = vadd.f32 %v4416_v61, %v3207_v58 }
 0x2d9   :  { %v4449_v62 = vpop.f32.mrf.mxu0 }
 0x2da   :  { %v4484_v24 = vpop.f32.mrf.mxu1 }
 0x2db   :  { %v4450_v0 = vpop.f32.mrf.mxu0 }
 0x2dc   :  { %v4485_v1 = vpop.f32.mrf.mxu1  ;;  %v4451_v4 = vadd.f32 %v4450_v0, %v4449_v62 }
 0x2dd   :  { %v4486_v6 = vadd.f32 %v4485_v1, %v4484_v24 }
 0x2de   :  { %v3347_v5 = vadd.f32 %v4451_v4, %v3277_v3 }
 0x2e0   :  { %v3417_v7 = vadd.f32 %v4486_v6, %v3347_v5 }
 0x2e2   :  { %3420 = vst [vmem:[#allocation8] sm:$0x1] %v3417_v7 }
 0x2e3   :  { %4543 = shalt.err (!%p4540_p0)
}
 0x2e4   :  { %3430 = dma.vmem_to_hbm [thread:$0]  %s3428_s24, 16, %s4754_s3, [#allocation5]  }
 0x2e5   :  { %4556 = dma.done.wait [#allocation5], 16  }
 0x2e6   :  { %4557 = vsyncadd [#allocation5], 4294967280 }
 0x2e7   :  { %3434 = vsyncpa [#allocation4], 1 }
 0x2e8   :  { %3435 = vsyncpa [#allocation7], 1 }
 0x2e9   :  { %3436 = vsyncpa [#allocation5], 1 }

</bundles_post_ra>
